<compile_context>
chip_gen: v5e
topology: v5e:2x2
jax: 0.10.0
libtpu: 0.0.40
codegen_flags: <defaults>
</compile_context>

<pallas_src>
import functools

import jax
import jax.numpy as jnp
from jax.experimental import pallas as pl
from jax.experimental.pallas import tpu as pltpu

EPS = 1e-5
DEFAULT_ROW_TILE = 1024            # point rows per grid step; f32 h3 tile = 4 MiB (fits v7x 64 MiB VMEM)
VMEM_LIMIT_BYTES = 32 * 1024 * 1024  # raise v5e's 16 MiB scoped default; <= v7x physical


def _row_tile(n, cap):
    """Largest tile that divides n, is <= cap and a multiple of 8 (else n itself)."""
    if n <= cap:
        return n
    for t in range(cap - cap % 8, 7, -8):
        if n % t == 0:
            return t
    return n


def _mm(a, w):
    """MXU matmul; operand dtype follows the weight (bf16 on v6e/v7x), f32 accumulate."""
    return jnp.dot(a.astype(w.dtype), w, preferred_element_type=jnp.float32)


def _col_stats(h):
    """Column sum / sum-of-squares via an MXU ones-matmul (keeps VPU/XLU slots free)."""
    ones = jnp.ones((1, h.shape[0]), jnp.float32)
    s = jnp.dot(ones, h, preferred_element_type=jnp.float32)
    q = jnp.dot(ones, h * h, preferred_element_type=jnp.float32)
    return s, q


def _conv_relu(h, w_ref, b_ref):
    return jnp.maximum(_mm(h, w_ref[...]) + b_ref[...], 0.0)


def _apply_fold(h, ss_ref):
    # ss rows: [0] scale = gamma*rsqrt(var+eps), [1] shift = beta - mu*scale
    return h * ss_ref[0:1, :] + ss_ref[1:2, :]


def _accumulate_stats(first, s, q, sum_ref, sq_ref):
    @pl.when(first)
    def _():
        sum_ref[...] = jnp.zeros_like(sum_ref)
        sq_ref[...] = jnp.zeros_like(sq_ref)

    sum_ref[...] += s
    sq_ref[...] += q


def _stage1_kernel(x_ref, w1_ref, b1_ref, sum_ref, sq_ref):
    first = jnp.logical_and(pl.program_id(0) == 0, pl.program_id(1) == 0)
    h1 = _conv_relu(x_ref[...], w1_ref, b1_ref)                    # (T, 64)
    s, q = _col_stats(h1)
    _accumulate_stats(first, s, q, sum_ref, sq_ref)


def _stage2_kernel(x_ref, ss1_ref, w1_ref, b1_ref, w2_ref, b2_ref, sum_ref, sq_ref):
    first = jnp.logical_and(pl.program_id(0) == 0, pl.program_id(1) == 0)
    h1 = _apply_fold(_conv_relu(x_ref[...], w1_ref, b1_ref), ss1_ref)
    h2 = _conv_relu(h1, w2_ref, b2_ref)                            # (T, 128)
    s, q = _col_stats(h2)
    _accumulate_stats(first, s, q, sum_ref, sq_ref)


def _stage3_kernel(B, N,
                   x_ref, ss1_ref, ss2_ref,
                   w1_ref, b1_ref, w2_ref, b2_ref,
                   w3_ref, p3_ref,                      # p3 = [b3; g3; be3]
                   w4_ref, p4_ref, w5_ref, p5_ref,      # p4/p5 = [b; g; be]
                   w6_ref, b6_ref,                      # b6 already includes identity
                   out_ref,
                   sum3, sq3, mx, mn):
    b = pl.program_id(0)
    t = pl.program_id(1)
    first = jnp.logical_and(b == 0, t == 0)
    last = jnp.logical_and(b == pl.num_programs(0) - 1, t == pl.num_programs(1) - 1)

    # recompute cheap early layers with folded bn1/bn2, then conv3 (pre-BN)
    h = _apply_fold(_conv_relu(x_ref[...], w1_ref, b1_ref), ss1_ref)
    h = _apply_fold(_conv_relu(h, w2_ref, b2_ref), ss2_ref)
    h3 = jnp.maximum(_mm(h, w3_ref[...]) + p3_ref[0:1, :], 0.0)    # (T, 1024)

    s, q = _col_stats(h3)

    @pl.when(first)
    def _():
        sum3[...] = jnp.zeros_like(sum3)
        sq3[...] = jnp.zeros_like(sq3)
        mx[...] = jnp.full(mx.shape, -jnp.inf, jnp.float32)
        mn[...] = jnp.full(mn.shape, jnp.inf, jnp.float32)

    sum3[...] += s
    sq3[...] += q

    # per-batch running max/min of the pre-BN activation (for MaxPool after bn3)
    tmax = jnp.max(h3, axis=0, keepdims=True)                      # (1, 1024)
    tmin = jnp.min(h3, axis=0, keepdims=True)
    rows = jax.lax.broadcasted_iota(jnp.int32, mx.shape, 0)
    sel = rows == b
    mx[...] = jnp.where(sel, jnp.maximum(mx[...], tmax), mx[...])
    mn[...] = jnp.where(sel, jnp.minimum(mn[...], tmin), mn[...])

    # epilogue: fold bn3, pool, and run the tiny FC head once (B rows only)
    @pl.when(last)
    def _():
        inv_m = 1.0 / float(B * N)
        mu3 = sum3[...] * inv_m
        var3 = jnp.maximum(sq3[...] * inv_m - mu3 * mu3, 0.0)
        sc3 = p3_ref[1:2, :] * jax.lax.rsqrt(var3 + EPS)
        sh3 = p3_ref[2:3, :] - mu3 * sc3
        pooled = jnp.where(sc3 >= 0.0, mx[...] * sc3, mn[...] * sc3) + sh3   # (B, 1024)

        def fc_bn(f, w_ref, p_ref):
            f = jnp.maximum(_mm(f, w_ref[...]) + p_ref[0:1, :], 0.0)
            mu = jnp.mean(f, axis=0, keepdims=True)
            var = jnp.maximum(jnp.mean(f * f, axis=0, keepdims=True) - mu * mu, 0.0)
            sc = p_ref[1:2, :] * jax.lax.rsqrt(var + EPS)
            return f * sc + (p_ref[2:3, :] - mu * sc)

        f = fc_bn(pooled, w4_ref, p4_ref)                          # (B, 512)
        f = fc_bn(f, w5_ref, p5_ref)                               # (B, 256)
        out_ref[...] = _mm(f, w6_ref[...]) + b6_ref[...]           # identity already in bias


def tnet_forward(x, params, *, dimension, num_points, use_bf16=True,
                 row_tile=DEFAULT_ROW_TILE):
    """x: (B, dimension, num_points) float32 -> (B, dimension, dimension) float32."""
    (w1, b1, g1, be1, w2, b2, g2, be2, w3, b3, g3, be3,
     w4, b4, g4, be4, w5, b5, g5, be5, w6, b6) = params
    B = x.shape[0]
    N = num_points
    DIM = dimension
    assert x.shape == (B, DIM, N)

    # NCL -> channels-last (B, N, DIM).
    # TODO(synk): fold this transpose into the first conv (contract over DIM in-kernel).
    xt = jnp.transpose(x, (0, 2, 1))

    T = _row_tile(N, row_tile)
    nt = N // T
    grid = (B, nt)

    # conv1's contraction (width DIM=3/4) is <0.2% of the FLOPs: keep it (and the raw
    # point coordinates) in f32; only the wide conv2/conv3 matmuls use bf16 operands.
    conv_dtype = jnp.bfloat16 if use_bf16 else jnp.float32
    w1c = w1                      # always f32
    w2c = w2.astype(conv_dtype)
    w3c = w3.astype(conv_dtype)

    # pack per-channel vectors to cut operand / DMA count; fold identity into b6
    p3 = jnp.concatenate([b3, g3, be3], axis=0)                    # (3, 1024)
    p4 = jnp.concatenate([b4, g4, be4], axis=0)                    # (3, 512)
    p5 = jnp.concatenate([b5, g5, be5], axis=0)                    # (3, 256)
    eye_flat = jnp.eye(DIM, dtype=jnp.float32).reshape(1, DIM * DIM)
    b6e = b6 + eye_flat

    x_spec = pl.BlockSpec((None, T, DIM), lambda b, t: (b, t, 0))

    def res(shape):   # whole-array, VMEM-resident across the grid
        return pl.BlockSpec(shape, lambda b, t: (0, 0))

    cparams = pltpu.CompilerParams(
        # Global BN batch statistics make both grid axes a serial reduction.
        # TODO(synk): shard the point axis across v7x's 2 TensorCores with a
        # cross-core reduction of the BN statistics.
        dimension_semantics=("arbitrary", "arbitrary"),
        vmem_limit_bytes=VMEM_LIMIT_BYTES,
    )

    f32 = jnp.float32
    inv_m = 1.0 / float(B * N)

    def fold(s, q, g, be):
        mu = s * inv_m
        var = jnp.maximum(q * inv_m - mu * mu, 0.0)
        sc = g * jax.lax.rsqrt(var + EPS)
        return jnp.concatenate([sc, be - mu * sc], axis=0)         # (2, C)

    def stat_shapes(c):
        return (jax.ShapeDtypeStruct((1, c), f32),) * 2

    def stat_specs(c):
        return (res((1, c)), res((1, c)))

    # ---- stage 1: bn1 statistics --------------------------------------------
    sum1, sq1 = pl.pallas_call(
        _stage1_kernel,
        grid=grid,
        in_specs=[x_spec, res(w1c.shape), res(b1.shape)],
        out_specs=stat_specs(64),
        out_shape=stat_shapes(64),
        compiler_params=cparams,
    )(xt, w1c, b1)
    ss1 = fold(sum1, sq1, g1, be1)

    # ---- stage 2: bn2 statistics --------------------------------------------
    sum2, sq2 = pl.pallas_call(
        _stage2_kernel,
        grid=grid,
        in_specs=[x_spec, res(ss1.shape), res(w1c.shape), res(b1.shape),
                  res(w2c.shape), res(b2.shape)],
        out_specs=stat_specs(128),
        out_shape=stat_shapes(128),
        compiler_params=cparams,
    )(xt, ss1, w1c, b1, w2c, b2)
    ss2 = fold(sum2, sq2, g2, be2)

    # ---- stage 3: conv3 + bn3 + max-pool + FC head ---------------------------
    out_flat = pl.pallas_call(
        functools.partial(_stage3_kernel, B, N),
        grid=grid,
        in_specs=[x_spec, res(ss1.shape), res(ss2.shape),
                  res(w1c.shape), res(b1.shape), res(w2c.shape), res(b2.shape),
                  res(w3c.shape), res(p3.shape),
                  res(w4.shape), res(p4.shape),
                  res(w5.shape), res(p5.shape),
                  res(w6.shape), res(b6e.shape)],
        out_specs=res((B, DIM * DIM)),
        out_shape=jax.ShapeDtypeStruct((B, DIM * DIM), f32),
        scratch_shapes=[pltpu.VMEM((1, 1024), f32),   # bn3 sum
                        pltpu.VMEM((1, 1024), f32),   # bn3 sum of squares
                        pltpu.VMEM((B, 1024), f32),   # per-batch running max
                        pltpu.VMEM((B, 1024), f32)],  # per-batch running min
        compiler_params=cparams,
    )(xt, ss1, ss2, w1c, b1, w2c, b2, w3c, p3, w4, p4, w5, p5, w6, b6e)

    return out_flat.reshape(B, DIM, DIM)


def init_params(key, dimension):
    """Deterministic synthetic parameters matching the PyTorch module shapes.

    Weights are stored transposed relative to torch (in_features, out_features) so the
    kernels can do x @ W. 1-D params are stored as (1, C) rows for VMEM friendliness.
    """
    sizes = [
        (dimension, 64), (64, 128), (128, 1024),                    # conv1..3 (k=1)
        (1024, 512), (512, 256), (256, dimension * dimension),      # linear1..3
    ]
    bn_channels = [64, 128, 1024, 512, 256]

    keys = jax.random.split(key, 32)
    ki = iter(range(32))

    params = []
    for li, (fin, fout) in enumerate(sizes):
        w = jax.random.normal(keys[next(ki)], (fin, fout), jnp.float32) * (1.0 / jnp.sqrt(fin))
        b = jax.random.normal(keys[next(ki)], (1, fout), jnp.float32) * 0.01
        params.append(w)
        params.append(b)
        if li < 5:  # layers followed by BatchNorm
            g = 1.0 + 0.1 * jax.random.normal(keys[next(ki)], (1, bn_channels[li]), jnp.float32)
            be = 0.1 * jax.random.normal(keys[next(ki)], (1, bn_channels[li]), jnp.float32)
            params.append(g)
            params.append(be)
    return tuple(params)


def tnet_reference(x, params, *, dimension, num_points):
    """Pure-JAX reference of the same forward pass (training-mode BatchNorm)."""
    (w1, b1, g1, be1, w2, b2, g2, be2, w3, b3, g3, be3,
     w4, b4, g4, be4, w5, b5, g5, be5, w6, b6) = params
    B = x.shape[0]

    def bn(h, g, be):
        mu = jnp.mean(h, axis=0, keepdims=True)
        var = jnp.mean((h - mu) ** 2, axis=0, keepdims=True)
        return (h - mu) / jnp.sqrt(var + EPS) * g + be

    h = jnp.transpose(x, (0, 2, 1)).reshape(B * num_points, dimension)
    h = bn(jnp.maximum(h @ w1 + b1, 0.0), g1, be1)
    h = bn(jnp.maximum(h @ w2 + b2, 0.0), g2, be2)
    h = bn(jnp.maximum(h @ w3 + b3, 0.0), g3, be3)
    pooled = jnp.max(h.reshape(B, num_points, 1024), axis=1)
    f = bn(jnp.maximum(pooled @ w4 + b4, 0.0), g4, be4)
    f = bn(jnp.maximum(f @ w5 + b5, 0.0), g5, be5)
    f = f @ w6 + b6
    return f.reshape(B, dimension, dimension) + jnp.eye(dimension, dtype=jnp.float32)[None]


if __name__ == "__main__":
    B, DIM, N = 2, 4, 16  # batch, point dimension, num_points

    key = jax.random.PRNGKey(0)
    k_x, k_p = jax.random.split(key)
    x = jax.random.normal(k_x, (B, DIM, N), jnp.float32)
    params = init_params(k_p, DIM)

    ref = tnet_reference(x, params, dimension=DIM, num_points=N)

    # f32 path: exact math match against the pure-JAX reference.
    fwd_f32 = jax.jit(functools.partial(tnet_forward, dimension=DIM, num_points=N,
                                        use_bf16=False))
    out_f32 = jax.block_until_ready(fwd_f32(x, params))
    assert out_f32.shape == (B, DIM, DIM)
    assert jnp.allclose(out_f32, ref, rtol=1e-2, atol=1e-2), "f32 path mismatch vs reference"

    # bf16 conv-matmul path (throughput path on v6e/v7x).  Training-mode BatchNorm at
    # these toy statistic sizes (32 rows for bn1-3, batch=2 for bn4/5) amplifies bf16
    # rounding via rsqrt(var+eps), so an element-wise tolerance vs the f32 reference is
    # not a meaningful check here; kernel math is validated by the f32 path above.
    fwd_bf16 = jax.jit(functools.partial(tnet_forward, dimension=DIM, num_points=N,
                                         use_bf16=True))
    out_bf16 = jax.block_until_ready(fwd_bf16(x, params))
    assert out_bf16.shape == (B, DIM, DIM)
    assert bool(jnp.all(jnp.isfinite(out_bf16))), "bf16 path produced non-finite values"

    print("KERNEL_OK")
</pallas_src>

<mosaic_0001>
module attributes {stable_mosaic.version = 11 : i64} {
  func.func @_stage2_kernel(%arg0: i32, %arg1: i32, %arg2: memref<1x16x4xf32, #tpu.memory_space<vmem>>, %arg3: memref<2x64xf32, #tpu.memory_space<vmem>>, %arg4: memref<4x64xf32, #tpu.memory_space<vmem>>, %arg5: memref<1x64xf32, #tpu.memory_space<vmem>>, %arg6: memref<64x128xf32, #tpu.memory_space<vmem>>, %arg7: memref<1x128xf32, #tpu.memory_space<vmem>>, %arg8: memref<1x128xf32, #tpu.memory_space<vmem>>, %arg9: memref<1x128xf32, #tpu.memory_space<vmem>>) attributes {dimension_semantics = [#tpu.dimension_semantics<arbitrary>, #tpu.dimension_semantics<arbitrary>], iteration_bounds = array<i64: 2, 1>, scalar_prefetch = 0 : i64, scratch_operands = 0 : i64, tpu.core_type = #tpu.core_type<tc>, window_params = [{transform_indices = @transform_0, window_bounds = array<i64: 1, 16, 4>}, {pipeline_mode = #tpu.pipeline_mode<synchronous>, transform_indices = @transform_1, window_bounds = array<i64: 2, 64>}, {pipeline_mode = #tpu.pipeline_mode<synchronous>, transform_indices = @transform_2, window_bounds = array<i64: 4, 64>}, {pipeline_mode = #tpu.pipeline_mode<synchronous>, transform_indices = @transform_3, window_bounds = array<i64: 1, 64>}, {pipeline_mode = #tpu.pipeline_mode<synchronous>, transform_indices = @transform_4, window_bounds = array<i64: 64, 128>}, {pipeline_mode = #tpu.pipeline_mode<synchronous>, transform_indices = @transform_5, window_bounds = array<i64: 1, 128>}, {pipeline_mode = #tpu.pipeline_mode<synchronous>, transform_indices = @transform_6, window_bounds = array<i64: 1, 128>}, {pipeline_mode = #tpu.pipeline_mode<synchronous>, transform_indices = @transform_7, window_bounds = array<i64: 1, 128>}]} {
    %c0_i32 = arith.constant 0 : i32
    %0 = arith.cmpi eq, %arg0, %c0_i32 : i32
    %c0_i32_0 = arith.constant 0 : i32
    %1 = arith.cmpi eq, %arg1, %c0_i32_0 : i32
    %2 = arith.andi %0, %1 : i1
    %c0 = arith.constant 0 : index
    %c0_1 = arith.constant 0 : index
    %c0_2 = arith.constant 0 : index
    %3 = vector.load %arg2[%c0, %c0_1, %c0_2] : memref<1x16x4xf32, #tpu.memory_space<vmem>>, vector<1x16x4xf32>
    %4 = vector.shape_cast %3 : vector<1x16x4xf32> to vector<16x4xf32>
    %c0_3 = arith.constant 0 : index
    %c0_4 = arith.constant 0 : index
    %5 = vector.load %arg4[%c0_3, %c0_4] : memref<4x64xf32, #tpu.memory_space<vmem>>, vector<4x64xf32>
    %cst = arith.constant dense<0.000000e+00> : vector<16x64xf32>
    %6 = tpu.matmul %4, %5, %cst {dimension_numbers = #tpu.dot_dimension_numbers<[1], [0], [0], [1], [0, 0, 1, 1], [], []>} : vector<16x4xf32>, vector<4x64xf32>, vector<16x64xf32> -> vector<16x64xf32>
    %c0_5 = arith.constant 0 : index
    %c0_6 = arith.constant 0 : index
    %7 = vector.load %arg5[%c0_5, %c0_6] : memref<1x64xf32, #tpu.memory_space<vmem>>, vector<1x64xf32>
    %8 = vector.broadcast %7 : vector<1x64xf32> to vector<16x64xf32>
    %9 = arith.addf %6, %8 : vector<16x64xf32>
    %cst_7 = arith.constant 0.000000e+00 : f32
    %10 = vector.broadcast %cst_7 : f32 to vector<16x64xf32>
    %11 = arith.maximumf %9, %10 : vector<16x64xf32>
    %c0_8 = arith.constant 0 : index
    %c0_9 = arith.constant 0 : index
    %12 = vector.load %arg3[%c0_8, %c0_9] : memref<2x64xf32, #tpu.memory_space<vmem>>, vector<1x64xf32>
    %13 = vector.broadcast %12 : vector<1x64xf32> to vector<16x64xf32>
    %14 = arith.mulf %11, %13 : vector<16x64xf32>
    %c1 = arith.constant 1 : index
    %c0_10 = arith.constant 0 : index
    %15 = vector.load %arg3[%c1, %c0_10] : memref<2x64xf32, #tpu.memory_space<vmem>>, vector<1x64xf32>
    %16 = vector.broadcast %15 : vector<1x64xf32> to vector<16x64xf32>
    %17 = arith.addf %14, %16 : vector<16x64xf32>
    %c0_11 = arith.constant 0 : index
    %c0_12 = arith.constant 0 : index
    %18 = vector.load %arg6[%c0_11, %c0_12] : memref<64x128xf32, #tpu.memory_space<vmem>>, vector<64x128xf32>
    %cst_13 = arith.constant dense<0.000000e+00> : vector<16x128xf32>
    %19 = tpu.matmul %17, %18, %cst_13 {dimension_numbers = #tpu.dot_dimension_numbers<[1], [0], [0], [1], [0, 0, 1, 1], [], []>} : vector<16x64xf32>, vector<64x128xf32>, vector<16x128xf32> -> vector<16x128xf32>
    %c0_14 = arith.constant 0 : index
    %c0_15 = arith.constant 0 : index
    %20 = vector.load %arg7[%c0_14, %c0_15] : memref<1x128xf32, #tpu.memory_space<vmem>>, vector<1x128xf32>
    %21 = vector.broadcast %20 : vector<1x128xf32> to vector<16x128xf32>
    %22 = arith.addf %19, %21 : vector<16x128xf32>
    %cst_16 = arith.constant 0.000000e+00 : f32
    %23 = vector.broadcast %cst_16 : f32 to vector<16x128xf32>
    %24 = arith.maximumf %22, %23 : vector<16x128xf32>
    %cst_17 = arith.constant 1.000000e+00 : f32
    %25 = vector.broadcast %cst_17 : f32 to vector<1x16xf32>
    %cst_18 = arith.constant dense<0.000000e+00> : vector<1x128xf32>
    %26 = tpu.matmul %25, %24, %cst_18 {dimension_numbers = #tpu.dot_dimension_numbers<[1], [0], [0], [1], [0, 0, 1, 1], [], []>} : vector<1x16xf32>, vector<16x128xf32>, vector<1x128xf32> -> vector<1x128xf32>
    %27 = arith.mulf %24, %24 : vector<16x128xf32>
    %cst_19 = arith.constant dense<0.000000e+00> : vector<1x128xf32>
    %28 = tpu.matmul %25, %27, %cst_19 {dimension_numbers = #tpu.dot_dimension_numbers<[1], [0], [0], [1], [0, 0, 1, 1], [], []>} : vector<1x16xf32>, vector<16x128xf32>, vector<1x128xf32> -> vector<1x128xf32>
    %29 = arith.extui %2 : i1 to i32
    %c0_i32_20 = arith.constant 0 : i32
    %30 = arith.cmpi ne, %29, %c0_i32_20 : i32
    scf.if %30 {
      %cst_29 = arith.constant 0.000000e+00 : f32
      %37 = vector.broadcast %cst_29 : f32 to vector<1x128xf32>
      %c0_30 = arith.constant 0 : index
      %c0_31 = arith.constant 0 : index
      %38 = vector.load %arg8[%c0_30, %c0_31] : memref<1x128xf32, #tpu.memory_space<vmem>>, vector<1x128xf32>
      tpu.vector_store %arg8[%c0_30, %c0_31], %37 {strides = array<i32>} : memref<1x128xf32, #tpu.memory_space<vmem>>, vector<1x128xf32>,
      %cst_32 = arith.constant 0.000000e+00 : f32
      %39 = vector.broadcast %cst_32 : f32 to vector<1x128xf32>
      %c0_33 = arith.constant 0 : index
      %c0_34 = arith.constant 0 : index
      %40 = vector.load %arg9[%c0_33, %c0_34] : memref<1x128xf32, #tpu.memory_space<vmem>>, vector<1x128xf32>
      tpu.vector_store %arg9[%c0_33, %c0_34], %39 {strides = array<i32>} : memref<1x128xf32, #tpu.memory_space<vmem>>, vector<1x128xf32>,
    } else {
    }
    %c0_21 = arith.constant 0 : index
    %c0_22 = arith.constant 0 : index
    %31 = vector.load %arg8[%c0_21, %c0_22] : memref<1x128xf32, #tpu.memory_space<vmem>>, vector<1x128xf32>
    %32 = arith.addf %31, %26 : vector<1x128xf32>
    %c0_23 = arith.constant 0 : index
    %c0_24 = arith.constant 0 : index
    %33 = vector.load %arg8[%c0_23, %c0_24] : memref<1x128xf32, #tpu.memory_space<vmem>>, vector<1x128xf32>
    tpu.vector_store %arg8[%c0_23, %c0_24], %32 {strides = array<i32>} : memref<1x128xf32, #tpu.memory_space<vmem>>, vector<1x128xf32>,
    %c0_25 = arith.constant 0 : index
    %c0_26 = arith.constant 0 : index
    %34 = vector.load %arg9[%c0_25, %c0_26] : memref<1x128xf32, #tpu.memory_space<vmem>>, vector<1x128xf32>
    %35 = arith.addf %34, %28 : vector<1x128xf32>
    %c0_27 = arith.constant 0 : index
    %c0_28 = arith.constant 0 : index
    %36 = vector.load %arg9[%c0_27, %c0_28] : memref<1x128xf32, #tpu.memory_space<vmem>>, vector<1x128xf32>
    tpu.vector_store %arg9[%c0_27, %c0_28], %35 {strides = array<i32>} : memref<1x128xf32, #tpu.memory_space<vmem>>, vector<1x128xf32>,
    return
  }
  func.func @transform_0(%arg0: i32, %arg1: i32) -> (i32, i32, i32) {
    %c0_i32 = arith.constant 0 : i32
    %c0_i32_0 = arith.constant 0 : i32
    return %arg0, %arg1, %c0_i32 : i32, i32, i32
  }
  func.func @transform_1(%arg0: i32, %arg1: i32) -> (i32, i32) {
    %c0_i32 = arith.constant 0 : i32
    %c0_i32_0 = arith.constant 0 : i32
    %c0_i32_1 = arith.constant 0 : i32
    return %c0_i32, %c0_i32_0 : i32, i32
  }
  func.func @transform_2(%arg0: i32, %arg1: i32) -> (i32, i32) {
    %c0_i32 = arith.constant 0 : i32
    %c0_i32_0 = arith.constant 0 : i32
    %c0_i32_1 = arith.constant 0 : i32
    return %c0_i32, %c0_i32_0 : i32, i32
  }
  func.func @transform_3(%arg0: i32, %arg1: i32) -> (i32, i32) {
    %c0_i32 = arith.constant 0 : i32
    %c0_i32_0 = arith.constant 0 : i32
    %c0_i32_1 = arith.constant 0 : i32
    return %c0_i32, %c0_i32_0 : i32, i32
  }
  func.func @transform_4(%arg0: i32, %arg1: i32) -> (i32, i32) {
    %c0_i32 = arith.constant 0 : i32
    %c0_i32_0 = arith.constant 0 : i32
    %c0_i32_1 = arith.constant 0 : i32
    return %c0_i32, %c0_i32_0 : i32, i32
  }
  func.func @transform_5(%arg0: i32, %arg1: i32) -> (i32, i32) {
    %c0_i32 = arith.constant 0 : i32
    %c0_i32_0 = arith.constant 0 : i32
    %c0_i32_1 = arith.constant 0 : i32
    return %c0_i32, %c0_i32_0 : i32, i32
  }
  func.func @transform_6(%arg0: i32, %arg1: i32) -> (i32, i32) {
    %c0_i32 = arith.constant 0 : i32
    %c0_i32_0 = arith.constant 0 : i32
    %c0_i32_1 = arith.constant 0 : i32
    return %c0_i32, %c0_i32_0 : i32, i32
  }
  func.func @transform_7(%arg0: i32, %arg1: i32) -> (i32, i32) {
    %c0_i32 = arith.constant 0 : i32
    %c0_i32_0 = arith.constant 0 : i32
    %c0_i32_1 = arith.constant 0 : i32
    return %c0_i32, %c0_i32_0 : i32, i32
  }
}

module attributes {stable_mosaic.version = 11 : i64} {
  func.func @_stage1_kernel(%arg0: i32, %arg1: i32, %arg2: memref<1x16x4xf32, #tpu.memory_space<vmem>>, %arg3: memref<4x64xf32, #tpu.memory_space<vmem>>, %arg4: memref<1x64xf32, #tpu.memory_space<vmem>>, %arg5: memref<1x64xf32, #tpu.memory_space<vmem>>, %arg6: memref<1x64xf32, #tpu.memory_space<vmem>>) attributes {dimension_semantics = [#tpu.dimension_semantics<arbitrary>, #tpu.dimension_semantics<arbitrary>], iteration_bounds = array<i64: 2, 1>, scalar_prefetch = 0 : i64, scratch_operands = 0 : i64, tpu.core_type = #tpu.core_type<tc>, window_params = [{transform_indices = @transform_0, window_bounds = array<i64: 1, 16, 4>}, {pipeline_mode = #tpu.pipeline_mode<synchronous>, transform_indices = @transform_1, window_bounds = array<i64: 4, 64>}, {pipeline_mode = #tpu.pipeline_mode<synchronous>, transform_indices = @transform_2, window_bounds = array<i64: 1, 64>}, {pipeline_mode = #tpu.pipeline_mode<synchronous>, transform_indices = @transform_3, window_bounds = array<i64: 1, 64>}, {pipeline_mode = #tpu.pipeline_mode<synchronous>, transform_indices = @transform_4, window_bounds = array<i64: 1, 64>}]} {
    %c0_i32 = arith.constant 0 : i32
    %0 = arith.cmpi eq, %arg0, %c0_i32 : i32
    %c0_i32_0 = arith.constant 0 : i32
    %1 = arith.cmpi eq, %arg1, %c0_i32_0 : i32
    %2 = arith.andi %0, %1 : i1
    %c0 = arith.constant 0 : index
    %c0_1 = arith.constant 0 : index
    %c0_2 = arith.constant 0 : index
    %3 = vector.load %arg2[%c0, %c0_1, %c0_2] : memref<1x16x4xf32, #tpu.memory_space<vmem>>, vector<1x16x4xf32>
    %4 = vector.shape_cast %3 : vector<1x16x4xf32> to vector<16x4xf32>
    %c0_3 = arith.constant 0 : index
    %c0_4 = arith.constant 0 : index
    %5 = vector.load %arg3[%c0_3, %c0_4] : memref<4x64xf32, #tpu.memory_space<vmem>>, vector<4x64xf32>
    %cst = arith.constant dense<0.000000e+00> : vector<16x64xf32>
    %6 = tpu.matmul %4, %5, %cst {dimension_numbers = #tpu.dot_dimension_numbers<[1], [0], [0], [1], [0, 0, 1, 1], [], []>} : vector<16x4xf32>, vector<4x64xf32>, vector<16x64xf32> -> vector<16x64xf32>
    %c0_5 = arith.constant 0 : index
    %c0_6 = arith.constant 0 : index
    %7 = vector.load %arg4[%c0_5, %c0_6] : memref<1x64xf32, #tpu.memory_space<vmem>>, vector<1x64xf32>
    %8 = vector.broadcast %7 : vector<1x64xf32> to vector<16x64xf32>
    %9 = arith.addf %6, %8 : vector<16x64xf32>
    %cst_7 = arith.constant 0.000000e+00 : f32
    %10 = vector.broadcast %cst_7 : f32 to vector<16x64xf32>
    %11 = arith.maximumf %9, %10 : vector<16x64xf32>
    %cst_8 = arith.constant 1.000000e+00 : f32
    %12 = vector.broadcast %cst_8 : f32 to vector<1x16xf32>
    %cst_9 = arith.constant dense<0.000000e+00> : vector<1x64xf32>
    %13 = tpu.matmul %12, %11, %cst_9 {dimension_numbers = #tpu.dot_dimension_numbers<[1], [0], [0], [1], [0, 0, 1, 1], [], []>} : vector<1x16xf32>, vector<16x64xf32>, vector<1x64xf32> -> vector<1x64xf32>
    %14 = arith.mulf %11, %11 : vector<16x64xf32>
    %cst_10 = arith.constant dense<0.000000e+00> : vector<1x64xf32>
    %15 = tpu.matmul %12, %14, %cst_10 {dimension_numbers = #tpu.dot_dimension_numbers<[1], [0], [0], [1], [0, 0, 1, 1], [], []>} : vector<1x16xf32>, vector<16x64xf32>, vector<1x64xf32> -> vector<1x64xf32>
    %16 = arith.extui %2 : i1 to i32
    %c0_i32_11 = arith.constant 0 : i32
    %17 = arith.cmpi ne, %16, %c0_i32_11 : i32
    scf.if %17 {
      %cst_20 = arith.constant 0.000000e+00 : f32
      %24 = vector.broadcast %cst_20 : f32 to vector<1x64xf32>
      %c0_21 = arith.constant 0 : index
      %c0_22 = arith.constant 0 : index
      %25 = vector.load %arg5[%c0_21, %c0_22] : memref<1x64xf32, #tpu.memory_space<vmem>>, vector<1x64xf32>
      tpu.vector_store %arg5[%c0_21, %c0_22], %24 {strides = array<i32>} : memref<1x64xf32, #tpu.memory_space<vmem>>, vector<1x64xf32>,
      %cst_23 = arith.constant 0.000000e+00 : f32
      %26 = vector.broadcast %cst_23 : f32 to vector<1x64xf32>
      %c0_24 = arith.constant 0 : index
      %c0_25 = arith.constant 0 : index
      %27 = vector.load %arg6[%c0_24, %c0_25] : memref<1x64xf32, #tpu.memory_space<vmem>>, vector<1x64xf32>
      tpu.vector_store %arg6[%c0_24, %c0_25], %26 {strides = array<i32>} : memref<1x64xf32, #tpu.memory_space<vmem>>, vector<1x64xf32>,
    } else {
    }
    %c0_12 = arith.constant 0 : index
    %c0_13 = arith.constant 0 : index
    %18 = vector.load %arg5[%c0_12, %c0_13] : memref<1x64xf32, #tpu.memory_space<vmem>>, vector<1x64xf32>
    %19 = arith.addf %18, %13 : vector<1x64xf32>
    %c0_14 = arith.constant 0 : index
    %c0_15 = arith.constant 0 : index
    %20 = vector.load %arg5[%c0_14, %c0_15] : memref<1x64xf32, #tpu.memory_space<vmem>>, vector<1x64xf32>
    tpu.vector_store %arg5[%c0_14, %c0_15], %19 {strides = array<i32>} : memref<1x64xf32, #tpu.memory_space<vmem>>, vector<1x64xf32>,
    %c0_16 = arith.constant 0 : index
    %c0_17 = arith.constant 0 : index
    %21 = vector.load %arg6[%c0_16, %c0_17] : memref<1x64xf32, #tpu.memory_space<vmem>>, vector<1x64xf32>
    %22 = arith.addf %21, %15 : vector<1x64xf32>
    %c0_18 = arith.constant 0 : index
    %c0_19 = arith.constant 0 : index
    %23 = vector.load %arg6[%c0_18, %c0_19] : memref<1x64xf32, #tpu.memory_space<vmem>>, vector<1x64xf32>
    tpu.vector_store %arg6[%c0_18, %c0_19], %22 {strides = array<i32>} : memref<1x64xf32, #tpu.memory_space<vmem>>, vector<1x64xf32>,
    return
  }
  func.func @transform_0(%arg0: i32, %arg1: i32) -> (i32, i32, i32) {
    %c0_i32 = arith.constant 0 : i32
    %c0_i32_0 = arith.constant 0 : i32
    return %arg0, %arg1, %c0_i32 : i32, i32, i32
  }
  func.func @transform_1(%arg0: i32, %arg1: i32) -> (i32, i32) {
    %c0_i32 = arith.constant 0 : i32
    %c0_i32_0 = arith.constant 0 : i32
    %c0_i32_1 = arith.constant 0 : i32
    return %c0_i32, %c0_i32_0 : i32, i32
  }
  func.func @transform_2(%arg0: i32, %arg1: i32) -> (i32, i32) {
    %c0_i32 = arith.constant 0 : i32
    %c0_i32_0 = arith.constant 0 : i32
    %c0_i32_1 = arith.constant 0 : i32
    return %c0_i32, %c0_i32_0 : i32, i32
  }
  func.func @transform_3(%arg0: i32, %arg1: i32) -> (i32, i32) {
    %c0_i32 = arith.constant 0 : i32
    %c0_i32_0 = arith.constant 0 : i32
    %c0_i32_1 = arith.constant 0 : i32
    return %c0_i32, %c0_i32_0 : i32, i32
  }
  func.func @transform_4(%arg0: i32, %arg1: i32) -> (i32, i32) {
    %c0_i32 = arith.constant 0 : i32
    %c0_i32_0 = arith.constant 0 : i32
    %c0_i32_1 = arith.constant 0 : i32
    return %c0_i32, %c0_i32_0 : i32, i32
  }
}

module attributes {stable_mosaic.version = 11 : i64} {
  func.func @_stage3_kernel(%arg0: i32, %arg1: i32, %arg2: memref<1x16x4xf32, #tpu.memory_space<vmem>>, %arg3: memref<2x64xf32, #tpu.memory_space<vmem>>, %arg4: memref<2x128xf32, #tpu.memory_space<vmem>>, %arg5: memref<4x64xf32, #tpu.memory_space<vmem>>, %arg6: memref<1x64xf32, #tpu.memory_space<vmem>>, %arg7: memref<64x128xf32, #tpu.memory_space<vmem>>, %arg8: memref<1x128xf32, #tpu.memory_space<vmem>>, %arg9: memref<128x1024xf32, #tpu.memory_space<vmem>>, %arg10: memref<3x1024xf32, #tpu.memory_space<vmem>>, %arg11: memref<1024x512xf32, #tpu.memory_space<vmem>>, %arg12: memref<3x512xf32, #tpu.memory_space<vmem>>, %arg13: memref<512x256xf32, #tpu.memory_space<vmem>>, %arg14: memref<3x256xf32, #tpu.memory_space<vmem>>, %arg15: memref<256x16xf32, #tpu.memory_space<vmem>>, %arg16: memref<1x16xf32, #tpu.memory_space<vmem>>, %arg17: memref<2x16xf32, #tpu.memory_space<vmem>>, %arg18: memref<1x1024xf32, #tpu.memory_space<vmem>>, %arg19: memref<1x1024xf32, #tpu.memory_space<vmem>>, %arg20: memref<2x1024xf32, #tpu.memory_space<vmem>>, %arg21: memref<2x1024xf32, #tpu.memory_space<vmem>>) attributes {dimension_semantics = [#tpu.dimension_semantics<arbitrary>, #tpu.dimension_semantics<arbitrary>], iteration_bounds = array<i64: 2, 1>, scalar_prefetch = 0 : i64, scratch_operands = 4 : i64, tpu.core_type = #tpu.core_type<tc>, window_params = [{transform_indices = @transform_0, window_bounds = array<i64: 1, 16, 4>}, {pipeline_mode = #tpu.pipeline_mode<synchronous>, transform_indices = @transform_1, window_bounds = array<i64: 2, 64>}, {pipeline_mode = #tpu.pipeline_mode<synchronous>, transform_indices = @transform_2, window_bounds = array<i64: 2, 128>}, {pipeline_mode = #tpu.pipeline_mode<synchronous>, transform_indices = @transform_3, window_bounds = array<i64: 4, 64>}, {pipeline_mode = #tpu.pipeline_mode<synchronous>, transform_indices = @transform_4, window_bounds = array<i64: 1, 64>}, {pipeline_mode = #tpu.pipeline_mode<synchronous>, transform_indices = @transform_5, window_bounds = array<i64: 64, 128>}, {pipeline_mode = #tpu.pipeline_mode<synchronous>, transform_indices = @transform_6, window_bounds = array<i64: 1, 128>}, {pipeline_mode = #tpu.pipeline_mode<synchronous>, transform_indices = @transform_7, window_bounds = array<i64: 128, 1024>}, {pipeline_mode = #tpu.pipeline_mode<synchronous>, transform_indices = @transform_8, window_bounds = array<i64: 3, 1024>}, {pipeline_mode = #tpu.pipeline_mode<synchronous>, transform_indices = @transform_9, window_bounds = array<i64: 1024, 512>}, {pipeline_mode = #tpu.pipeline_mode<synchronous>, transform_indices = @transform_10, window_bounds = array<i64: 3, 512>}, {pipeline_mode = #tpu.pipeline_mode<synchronous>, transform_indices = @transform_11, window_bounds = array<i64: 512, 256>}, {pipeline_mode = #tpu.pipeline_mode<synchronous>, transform_indices = @transform_12, window_bounds = array<i64: 3, 256>}, {pipeline_mode = #tpu.pipeline_mode<synchronous>, transform_indices = @transform_13, window_bounds = array<i64: 256, 16>}, {pipeline_mode = #tpu.pipeline_mode<synchronous>, transform_indices = @transform_14, window_bounds = array<i64: 1, 16>}, {pipeline_mode = #tpu.pipeline_mode<synchronous>, transform_indices = @transform_15, window_bounds = array<i64: 2, 16>}]} {
    %c0_i32 = arith.constant 0 : i32
    %0 = arith.cmpi eq, %arg0, %c0_i32 : i32
    %c0_i32_0 = arith.constant 0 : i32
    %1 = arith.cmpi eq, %arg1, %c0_i32_0 : i32
    %2 = arith.andi %0, %1 : i1
    %c1_i32 = arith.constant 1 : i32
    %3 = arith.cmpi eq, %arg0, %c1_i32 : i32
    %c0_i32_1 = arith.constant 0 : i32
    %4 = arith.cmpi eq, %arg1, %c0_i32_1 : i32
    %5 = arith.andi %3, %4 : i1
    %c0 = arith.constant 0 : index
    %c0_2 = arith.constant 0 : index
    %c0_3 = arith.constant 0 : index
    %6 = vector.load %arg2[%c0, %c0_2, %c0_3] : memref<1x16x4xf32, #tpu.memory_space<vmem>>, vector<1x16x4xf32>
    %7 = vector.shape_cast %6 : vector<1x16x4xf32> to vector<16x4xf32>
    %c0_4 = arith.constant 0 : index
    %c0_5 = arith.constant 0 : index
    %8 = vector.load %arg5[%c0_4, %c0_5] : memref<4x64xf32, #tpu.memory_space<vmem>>, vector<4x64xf32>
    %cst = arith.constant dense<0.000000e+00> : vector<16x64xf32>
    %9 = tpu.matmul %7, %8, %cst {dimension_numbers = #tpu.dot_dimension_numbers<[1], [0], [0], [1], [0, 0, 1, 1], [], []>} : vector<16x4xf32>, vector<4x64xf32>, vector<16x64xf32> -> vector<16x64xf32>
    %c0_6 = arith.constant 0 : index
    %c0_7 = arith.constant 0 : index
    %10 = vector.load %arg6[%c0_6, %c0_7] : memref<1x64xf32, #tpu.memory_space<vmem>>, vector<1x64xf32>
    %11 = vector.broadcast %10 : vector<1x64xf32> to vector<16x64xf32>
    %12 = arith.addf %9, %11 : vector<16x64xf32>
    %cst_8 = arith.constant 0.000000e+00 : f32
    %13 = vector.broadcast %cst_8 : f32 to vector<16x64xf32>
    %14 = arith.maximumf %12, %13 : vector<16x64xf32>
    %c0_9 = arith.constant 0 : index
    %c0_10 = arith.constant 0 : index
    %15 = vector.load %arg3[%c0_9, %c0_10] : memref<2x64xf32, #tpu.memory_space<vmem>>, vector<1x64xf32>
    %16 = vector.broadcast %15 : vector<1x64xf32> to vector<16x64xf32>
    %17 = arith.mulf %14, %16 : vector<16x64xf32>
    %c1 = arith.constant 1 : index
    %c0_11 = arith.constant 0 : index
    %18 = vector.load %arg3[%c1, %c0_11] : memref<2x64xf32, #tpu.memory_space<vmem>>, vector<1x64xf32>
    %19 = vector.broadcast %18 : vector<1x64xf32> to vector<16x64xf32>
    %20 = arith.addf %17, %19 : vector<16x64xf32>
    %c0_12 = arith.constant 0 : index
    %c0_13 = arith.constant 0 : index
    %21 = vector.load %arg7[%c0_12, %c0_13] : memref<64x128xf32, #tpu.memory_space<vmem>>, vector<64x128xf32>
    %cst_14 = arith.constant dense<0.000000e+00> : vector<16x128xf32>
    %22 = tpu.matmul %20, %21, %cst_14 {dimension_numbers = #tpu.dot_dimension_numbers<[1], [0], [0], [1], [0, 0, 1, 1], [], []>} : vector<16x64xf32>, vector<64x128xf32>, vector<16x128xf32> -> vector<16x128xf32>
    %c0_15 = arith.constant 0 : index
    %c0_16 = arith.constant 0 : index
    %23 = vector.load %arg8[%c0_15, %c0_16] : memref<1x128xf32, #tpu.memory_space<vmem>>, vector<1x128xf32>
    %24 = vector.broadcast %23 : vector<1x128xf32> to vector<16x128xf32>
    %25 = arith.addf %22, %24 : vector<16x128xf32>
    %cst_17 = arith.constant 0.000000e+00 : f32
    %26 = vector.broadcast %cst_17 : f32 to vector<16x128xf32>
    %27 = arith.maximumf %25, %26 : vector<16x128xf32>
    %c0_18 = arith.constant 0 : index
    %c0_19 = arith.constant 0 : index
    %28 = vector.load %arg4[%c0_18, %c0_19] : memref<2x128xf32, #tpu.memory_space<vmem>>, vector<1x128xf32>
    %29 = vector.broadcast %28 : vector<1x128xf32> to vector<16x128xf32>
    %30 = arith.mulf %27, %29 : vector<16x128xf32>
    %c1_20 = arith.constant 1 : index
    %c0_21 = arith.constant 0 : index
    %31 = vector.load %arg4[%c1_20, %c0_21] : memref<2x128xf32, #tpu.memory_space<vmem>>, vector<1x128xf32>
    %32 = vector.broadcast %31 : vector<1x128xf32> to vector<16x128xf32>
    %33 = arith.addf %30, %32 : vector<16x128xf32>
    %c0_22 = arith.constant 0 : index
    %c0_23 = arith.constant 0 : index
    %34 = vector.load %arg9[%c0_22, %c0_23] : memref<128x1024xf32, #tpu.memory_space<vmem>>, vector<128x1024xf32>
    %cst_24 = arith.constant dense<0.000000e+00> : vector<16x1024xf32>
    %35 = tpu.matmul %33, %34, %cst_24 {dimension_numbers = #tpu.dot_dimension_numbers<[1], [0], [0], [1], [0, 0, 1, 1], [], []>} : vector<16x128xf32>, vector<128x1024xf32>, vector<16x1024xf32> -> vector<16x1024xf32>
    %c0_25 = arith.constant 0 : index
    %c0_26 = arith.constant 0 : index
    %36 = vector.load %arg10[%c0_25, %c0_26] : memref<3x1024xf32, #tpu.memory_space<vmem>>, vector<1x1024xf32>
    %37 = vector.broadcast %36 : vector<1x1024xf32> to vector<16x1024xf32>
    %38 = arith.addf %35, %37 : vector<16x1024xf32>
    %cst_27 = arith.constant 0.000000e+00 : f32
    %39 = vector.broadcast %cst_27 : f32 to vector<16x1024xf32>
    %40 = arith.maximumf %38, %39 : vector<16x1024xf32>
    %cst_28 = arith.constant 1.000000e+00 : f32
    %41 = vector.broadcast %cst_28 : f32 to vector<1x16xf32>
    %cst_29 = arith.constant dense<0.000000e+00> : vector<1x1024xf32>
    %42 = tpu.matmul %41, %40, %cst_29 {dimension_numbers = #tpu.dot_dimension_numbers<[1], [0], [0], [1], [0, 0, 1, 1], [], []>} : vector<1x16xf32>, vector<16x1024xf32>, vector<1x1024xf32> -> vector<1x1024xf32>
    %43 = arith.mulf %40, %40 : vector<16x1024xf32>
    %cst_30 = arith.constant dense<0.000000e+00> : vector<1x1024xf32>
    %44 = tpu.matmul %41, %43, %cst_30 {dimension_numbers = #tpu.dot_dimension_numbers<[1], [0], [0], [1], [0, 0, 1, 1], [], []>} : vector<1x16xf32>, vector<16x1024xf32>, vector<1x1024xf32> -> vector<1x1024xf32>
    %45 = arith.extui %2 : i1 to i32
    %c0_i32_31 = arith.constant 0 : i32
    %46 = arith.cmpi ne, %45, %c0_i32_31 : i32
    scf.if %46 {
      %cst_55 = arith.constant 0.000000e+00 : f32
      %74 = vector.broadcast %cst_55 : f32 to vector<1x1024xf32>
      %c0_56 = arith.constant 0 : index
      %c0_57 = arith.constant 0 : index
      %75 = vector.load %arg18[%c0_56, %c0_57] : memref<1x1024xf32, #tpu.memory_space<vmem>>, vector<1x1024xf32>
      tpu.vector_store %arg18[%c0_56, %c0_57], %74 {strides = array<i32>} : memref<1x1024xf32, #tpu.memory_space<vmem>>, vector<1x1024xf32>,
      %cst_58 = arith.constant 0.000000e+00 : f32
      %76 = vector.broadcast %cst_58 : f32 to vector<1x1024xf32>
      %c0_59 = arith.constant 0 : index
      %c0_60 = arith.constant 0 : index
      %77 = vector.load %arg19[%c0_59, %c0_60] : memref<1x1024xf32, #tpu.memory_space<vmem>>, vector<1x1024xf32>
      tpu.vector_store %arg19[%c0_59, %c0_60], %76 {strides = array<i32>} : memref<1x1024xf32, #tpu.memory_space<vmem>>, vector<1x1024xf32>,
      %cst_61 = arith.constant 0xFF800000 : f32
      %78 = vector.broadcast %cst_61 : f32 to vector<2x1024xf32>
      %c0_62 = arith.constant 0 : index
      %c0_63 = arith.constant 0 : index
      %79 = vector.load %arg20[%c0_62, %c0_63] : memref<2x1024xf32, #tpu.memory_space<vmem>>, vector<2x1024xf32>
      tpu.vector_store %arg20[%c0_62, %c0_63], %78 {strides = array<i32>} : memref<2x1024xf32, #tpu.memory_space<vmem>>, vector<2x1024xf32>,
      %cst_64 = arith.constant 0x7F800000 : f32
      %80 = vector.broadcast %cst_64 : f32 to vector<2x1024xf32>
      %c0_65 = arith.constant 0 : index
      %c0_66 = arith.constant 0 : index
      %81 = vector.load %arg21[%c0_65, %c0_66] : memref<2x1024xf32, #tpu.memory_space<vmem>>, vector<2x1024xf32>
      tpu.vector_store %arg21[%c0_65, %c0_66], %80 {strides = array<i32>} : memref<2x1024xf32, #tpu.memory_space<vmem>>, vector<2x1024xf32>,
    } else {
    }
    %c0_32 = arith.constant 0 : index
    %c0_33 = arith.constant 0 : index
    %47 = vector.load %arg18[%c0_32, %c0_33] : memref<1x1024xf32, #tpu.memory_space<vmem>>, vector<1x1024xf32>
    %48 = arith.addf %47, %42 : vector<1x1024xf32>
    %c0_34 = arith.constant 0 : index
    %c0_35 = arith.constant 0 : index
    %49 = vector.load %arg18[%c0_34, %c0_35] : memref<1x1024xf32, #tpu.memory_space<vmem>>, vector<1x1024xf32>
    tpu.vector_store %arg18[%c0_34, %c0_35], %48 {strides = array<i32>} : memref<1x1024xf32, #tpu.memory_space<vmem>>, vector<1x1024xf32>,
    %c0_36 = arith.constant 0 : index
    %c0_37 = arith.constant 0 : index
    %50 = vector.load %arg19[%c0_36, %c0_37] : memref<1x1024xf32, #tpu.memory_space<vmem>>, vector<1x1024xf32>
    %51 = arith.addf %50, %44 : vector<1x1024xf32>
    %c0_38 = arith.constant 0 : index
    %c0_39 = arith.constant 0 : index
    %52 = vector.load %arg19[%c0_38, %c0_39] : memref<1x1024xf32, #tpu.memory_space<vmem>>, vector<1x1024xf32>
    tpu.vector_store %arg19[%c0_38, %c0_39], %51 {strides = array<i32>} : memref<1x1024xf32, #tpu.memory_space<vmem>>, vector<1x1024xf32>,
    %cst_40 = arith.constant dense<0xFF800000> : vector<1024xf32>
    %53 = vector.multi_reduction <maximumf>, %40, %cst_40 [0] : vector<16x1024xf32> to vector<1024xf32>
    %54 = vector.shape_cast %53 : vector<1024xf32> to vector<1x1024xf32>
    %cst_41 = arith.constant dense<0x7F800000> : vector<1024xf32>
    %55 = vector.multi_reduction <minimumf>, %40, %cst_41 [0] : vector<16x1024xf32> to vector<1024xf32>
    %56 = vector.shape_cast %55 : vector<1024xf32> to vector<1x1024xf32>
    %57 = tpu.iota {dimensions = array<i32: 0>} : vector<2x1024xi32>
    %58 = vector.broadcast %arg0 : i32 to vector<2x1024xi32>
    %59 = arith.cmpi eq, %57, %58 : vector<2x1024xi32>
    %c0_42 = arith.constant 0 : index
    %c0_43 = arith.constant 0 : index
    %60 = vector.load %arg20[%c0_42, %c0_43] : memref<2x1024xf32, #tpu.memory_space<vmem>>, vector<2x1024xf32>
    %61 = vector.broadcast %54 : vector<1x1024xf32> to vector<2x1024xf32>
    %62 = arith.maximumf %60, %61 : vector<2x1024xf32>
    %c0_44 = arith.constant 0 : index
    %c0_45 = arith.constant 0 : index
    %63 = vector.load %arg20[%c0_44, %c0_45] : memref<2x1024xf32, #tpu.memory_space<vmem>>, vector<2x1024xf32>
    %64 = arith.select %59, %62, %63 : vector<2x1024xi1>, vector<2x1024xf32>
    %c0_46 = arith.constant 0 : index
    %c0_47 = arith.constant 0 : index
    %65 = vector.load %arg20[%c0_46, %c0_47] : memref<2x1024xf32, #tpu.memory_space<vmem>>, vector<2x1024xf32>
    tpu.vector_store %arg20[%c0_46, %c0_47], %64 {strides = array<i32>} : memref<2x1024xf32, #tpu.memory_space<vmem>>, vector<2x1024xf32>,
    %c0_48 = arith.constant 0 : index
    %c0_49 = arith.constant 0 : index
    %66 = vector.load %arg21[%c0_48, %c0_49] : memref<2x1024xf32, #tpu.memory_space<vmem>>, vector<2x1024xf32>
    %67 = vector.broadcast %56 : vector<1x1024xf32> to vector<2x1024xf32>
    %68 = arith.minimumf %66, %67 : vector<2x1024xf32>
    %c0_50 = arith.constant 0 : index
    %c0_51 = arith.constant 0 : index
    %69 = vector.load %arg21[%c0_50, %c0_51] : memref<2x1024xf32, #tpu.memory_space<vmem>>, vector<2x1024xf32>
    %70 = arith.select %59, %68, %69 : vector<2x1024xi1>, vector<2x1024xf32>
    %c0_52 = arith.constant 0 : index
    %c0_53 = arith.constant 0 : index
    %71 = vector.load %arg21[%c0_52, %c0_53] : memref<2x1024xf32, #tpu.memory_space<vmem>>, vector<2x1024xf32>
    tpu.vector_store %arg21[%c0_52, %c0_53], %70 {strides = array<i32>} : memref<2x1024xf32, #tpu.memory_space<vmem>>, vector<2x1024xf32>,
    %72 = arith.extui %5 : i1 to i32
    %c0_i32_54 = arith.constant 0 : i32
    %73 = arith.cmpi ne, %72, %c0_i32_54 : i32
    scf.if %73 {
      %c0_55 = arith.constant 0 : index
      %c0_56 = arith.constant 0 : index
      %74 = vector.load %arg18[%c0_55, %c0_56] : memref<1x1024xf32, #tpu.memory_space<vmem>>, vector<1x1024xf32>
      %cst_57 = arith.constant 3.125000e-02 : f32
      %75 = vector.broadcast %cst_57 : f32 to vector<1x1024xf32>
      %76 = arith.mulf %74, %75 : vector<1x1024xf32>
      %c0_58 = arith.constant 0 : index
      %c0_59 = arith.constant 0 : index
      %77 = vector.load %arg19[%c0_58, %c0_59] : memref<1x1024xf32, #tpu.memory_space<vmem>>, vector<1x1024xf32>
      %cst_60 = arith.constant 3.125000e-02 : f32
      %78 = vector.broadcast %cst_60 : f32 to vector<1x1024xf32>
      %79 = arith.mulf %77, %78 : vector<1x1024xf32>
      %80 = arith.mulf %76, %76 : vector<1x1024xf32>
      %81 = arith.subf %79, %80 : vector<1x1024xf32>
      %cst_61 = arith.constant 0.000000e+00 : f32
      %82 = vector.broadcast %cst_61 : f32 to vector<1x1024xf32>
      %83 = arith.maximumf %81, %82 : vector<1x1024xf32>
      %c1_62 = arith.constant 1 : index
      %c0_63 = arith.constant 0 : index
      %84 = vector.load %arg10[%c1_62, %c0_63] : memref<3x1024xf32, #tpu.memory_space<vmem>>, vector<1x1024xf32>
      %cst_64 = arith.constant 9.99999974E-6 : f32
      %85 = vector.broadcast %cst_64 : f32 to vector<1x1024xf32>
      %86 = arith.addf %83, %85 : vector<1x1024xf32>
      %87 = math.rsqrt %86 : vector<1x1024xf32>
      %88 = arith.mulf %84, %87 : vector<1x1024xf32>
      %c2 = arith.constant 2 : index
      %c0_65 = arith.constant 0 : index
      %89 = vector.load %arg10[%c2, %c0_65] : memref<3x1024xf32, #tpu.memory_space<vmem>>, vector<1x1024xf32>
      %90 = arith.mulf %76, %88 : vector<1x1024xf32>
      %91 = arith.subf %89, %90 : vector<1x1024xf32>
      %cst_66 = arith.constant 0.000000e+00 : f32
      %92 = vector.broadcast %cst_66 : f32 to vector<1x1024xf32>
      %93 = arith.cmpf oge, %88, %92 : vector<1x1024xf32>
      %c0_67 = arith.constant 0 : index
      %c0_68 = arith.constant 0 : index
      %94 = vector.load %arg20[%c0_67, %c0_68] : memref<2x1024xf32, #tpu.memory_space<vmem>>, vector<2x1024xf32>
      %95 = vector.broadcast %88 : vector<1x1024xf32> to vector<2x1024xf32>
      %96 = arith.mulf %94, %95 : vector<2x1024xf32>
      %c0_69 = arith.constant 0 : index
      %c0_70 = arith.constant 0 : index
      %97 = vector.load %arg21[%c0_69, %c0_70] : memref<2x1024xf32, #tpu.memory_space<vmem>>, vector<2x1024xf32>
      %98 = vector.broadcast %88 : vector<1x1024xf32> to vector<2x1024xf32>
      %99 = arith.mulf %97, %98 : vector<2x1024xf32>
      %100 = vector.shape_cast %93 : vector<1x1024xi1> to vector<1x1024xi1>
      %101 = vector.broadcast %100 : vector<1x1024xi1> to vector<2x1024xi1>
      %102 = arith.select %101, %96, %99 : vector<2x1024xi1>, vector<2x1024xf32>
      %103 = vector.broadcast %91 : vector<1x1024xf32> to vector<2x1024xf32>
      %104 = arith.addf %102, %103 : vector<2x1024xf32>
      %c0_71 = arith.constant 0 : index
      %c0_72 = arith.constant 0 : index
      %105 = vector.load %arg11[%c0_71, %c0_72] : memref<1024x512xf32, #tpu.memory_space<vmem>>, vector<1024x512xf32>
      %cst_73 = arith.constant dense<0.000000e+00> : vector<2x512xf32>
      %106 = tpu.matmul %104, %105, %cst_73 {dimension_numbers = #tpu.dot_dimension_numbers<[1], [0], [0], [1], [0, 0, 1, 1], [], []>} : vector<2x1024xf32>, vector<1024x512xf32>, vector<2x512xf32> -> vector<2x512xf32>
      %c0_74 = arith.constant 0 : index
      %c0_75 = arith.constant 0 : index
      %107 = vector.load %arg12[%c0_74, %c0_75] : memref<3x512xf32, #tpu.memory_space<vmem>>, vector<1x512xf32>
      %108 = vector.broadcast %107 : vector<1x512xf32> to vector<2x512xf32>
      %109 = arith.addf %106, %108 : vector<2x512xf32>
      %cst_76 = arith.constant 0.000000e+00 : f32
      %110 = vector.broadcast %cst_76 : f32 to vector<2x512xf32>
      %111 = arith.maximumf %109, %110 : vector<2x512xf32>
      %cst_77 = arith.constant dense<0.000000e+00> : vector<512xf32>
      %112 = vector.multi_reduction <add>, %111, %cst_77 [0] : vector<2x512xf32> to vector<512xf32>
      %113 = vector.shape_cast %112 : vector<512xf32> to vector<1x512xf32>
      %cst_78 = arith.constant 2.000000e+00 : f32
      %114 = vector.broadcast %cst_78 : f32 to vector<1x512xf32>
      %115 = arith.divf %113, %114 : vector<1x512xf32>
      %116 = arith.mulf %111, %111 : vector<2x512xf32>
      %cst_79 = arith.constant dense<0.000000e+00> : vector<512xf32>
      %117 = vector.multi_reduction <add>, %116, %cst_79 [0] : vector<2x512xf32> to vector<512xf32>
      %118 = vector.shape_cast %117 : vector<512xf32> to vector<1x512xf32>
      %cst_80 = arith.constant 2.000000e+00 : f32
      %119 = vector.broadcast %cst_80 : f32 to vector<1x512xf32>
      %120 = arith.divf %118, %119 : vector<1x512xf32>
      %121 = arith.mulf %115, %115 : vector<1x512xf32>
      %122 = arith.subf %120, %121 : vector<1x512xf32>
      %cst_81 = arith.constant 0.000000e+00 : f32
      %123 = vector.broadcast %cst_81 : f32 to vector<1x512xf32>
      %124 = arith.maximumf %122, %123 : vector<1x512xf32>
      %c1_82 = arith.constant 1 : index
      %c0_83 = arith.constant 0 : index
      %125 = vector.load %arg12[%c1_82, %c0_83] : memref<3x512xf32, #tpu.memory_space<vmem>>, vector<1x512xf32>
      %cst_84 = arith.constant 9.99999974E-6 : f32
      %126 = vector.broadcast %cst_84 : f32 to vector<1x512xf32>
      %127 = arith.addf %124, %126 : vector<1x512xf32>
      %128 = math.rsqrt %127 : vector<1x512xf32>
      %129 = arith.mulf %125, %128 : vector<1x512xf32>
      %130 = vector.broadcast %129 : vector<1x512xf32> to vector<2x512xf32>
      %131 = arith.mulf %111, %130 : vector<2x512xf32>
      %c2_85 = arith.constant 2 : index
      %c0_86 = arith.constant 0 : index
      %132 = vector.load %arg12[%c2_85, %c0_86] : memref<3x512xf32, #tpu.memory_space<vmem>>, vector<1x512xf32>
      %133 = arith.mulf %115, %129 : vector<1x512xf32>
      %134 = arith.subf %132, %133 : vector<1x512xf32>
      %135 = vector.broadcast %134 : vector<1x512xf32> to vector<2x512xf32>
      %136 = arith.addf %131, %135 : vector<2x512xf32>
      %c0_87 = arith.constant 0 : index
      %c0_88 = arith.constant 0 : index
      %137 = vector.load %arg13[%c0_87, %c0_88] : memref<512x256xf32, #tpu.memory_space<vmem>>, vector<512x256xf32>
      %cst_89 = arith.constant dense<0.000000e+00> : vector<2x256xf32>
      %138 = tpu.matmul %136, %137, %cst_89 {dimension_numbers = #tpu.dot_dimension_numbers<[1], [0], [0], [1], [0, 0, 1, 1], [], []>} : vector<2x512xf32>, vector<512x256xf32>, vector<2x256xf32> -> vector<2x256xf32>
      %c0_90 = arith.constant 0 : index
      %c0_91 = arith.constant 0 : index
      %139 = vector.load %arg14[%c0_90, %c0_91] : memref<3x256xf32, #tpu.memory_space<vmem>>, vector<1x256xf32>
      %140 = vector.broadcast %139 : vector<1x256xf32> to vector<2x256xf32>
      %141 = arith.addf %138, %140 : vector<2x256xf32>
      %cst_92 = arith.constant 0.000000e+00 : f32
      %142 = vector.broadcast %cst_92 : f32 to vector<2x256xf32>
      %143 = arith.maximumf %141, %142 : vector<2x256xf32>
      %cst_93 = arith.constant dense<0.000000e+00> : vector<256xf32>
      %144 = vector.multi_reduction <add>, %143, %cst_93 [0] : vector<2x256xf32> to vector<256xf32>
      %145 = vector.shape_cast %144 : vector<256xf32> to vector<1x256xf32>
      %cst_94 = arith.constant 2.000000e+00 : f32
      %146 = vector.broadcast %cst_94 : f32 to vector<1x256xf32>
      %147 = arith.divf %145, %146 : vector<1x256xf32>
      %148 = arith.mulf %143, %143 : vector<2x256xf32>
      %cst_95 = arith.constant dense<0.000000e+00> : vector<256xf32>
      %149 = vector.multi_reduction <add>, %148, %cst_95 [0] : vector<2x256xf32> to vector<256xf32>
      %150 = vector.shape_cast %149 : vector<256xf32> to vector<1x256xf32>
      %cst_96 = arith.constant 2.000000e+00 : f32
      %151 = vector.broadcast %cst_96 : f32 to vector<1x256xf32>
      %152 = arith.divf %150, %151 : vector<1x256xf32>
      %153 = arith.mulf %147, %147 : vector<1x256xf32>
      %154 = arith.subf %152, %153 : vector<1x256xf32>
      %cst_97 = arith.constant 0.000000e+00 : f32
      %155 = vector.broadcast %cst_97 : f32 to vector<1x256xf32>
      %156 = arith.maximumf %154, %155 : vector<1x256xf32>
      %c1_98 = arith.constant 1 : index
      %c0_99 = arith.constant 0 : index
      %157 = vector.load %arg14[%c1_98, %c0_99] : memref<3x256xf32, #tpu.memory_space<vmem>>, vector<1x256xf32>
      %cst_100 = arith.constant 9.99999974E-6 : f32
      %158 = vector.broadcast %cst_100 : f32 to vector<1x256xf32>
      %159 = arith.addf %156, %158 : vector<1x256xf32>
      %160 = math.rsqrt %159 : vector<1x256xf32>
      %161 = arith.mulf %157, %160 : vector<1x256xf32>
      %162 = vector.broadcast %161 : vector<1x256xf32> to vector<2x256xf32>
      %163 = arith.mulf %143, %162 : vector<2x256xf32>
      %c2_101 = arith.constant 2 : index
      %c0_102 = arith.constant 0 : index
      %164 = vector.load %arg14[%c2_101, %c0_102] : memref<3x256xf32, #tpu.memory_space<vmem>>, vector<1x256xf32>
      %165 = arith.mulf %147, %161 : vector<1x256xf32>
      %166 = arith.subf %164, %165 : vector<1x256xf32>
      %167 = vector.broadcast %166 : vector<1x256xf32> to vector<2x256xf32>
      %168 = arith.addf %163, %167 : vector<2x256xf32>
      %c0_103 = arith.constant 0 : index
      %c0_104 = arith.constant 0 : index
      %169 = vector.load %arg15[%c0_103, %c0_104] : memref<256x16xf32, #tpu.memory_space<vmem>>, vector<256x16xf32>
      %cst_105 = arith.constant dense<0.000000e+00> : vector<2x16xf32>
      %170 = tpu.matmul %168, %169, %cst_105 {dimension_numbers = #tpu.dot_dimension_numbers<[1], [0], [0], [1], [0, 0, 1, 1], [], []>} : vector<2x256xf32>, vector<256x16xf32>, vector<2x16xf32> -> vector<2x16xf32>
      %c0_106 = arith.constant 0 : index
      %c0_107 = arith.constant 0 : index
      %171 = vector.load %arg16[%c0_106, %c0_107] : memref<1x16xf32, #tpu.memory_space<vmem>>, vector<1x16xf32>
      %172 = vector.broadcast %171 : vector<1x16xf32> to vector<2x16xf32>
      %173 = arith.addf %170, %172 : vector<2x16xf32>
      %c0_108 = arith.constant 0 : index
      %c0_109 = arith.constant 0 : index
      %174 = vector.load %arg17[%c0_108, %c0_109] : memref<2x16xf32, #tpu.memory_space<vmem>>, vector<2x16xf32>
      tpu.vector_store %arg17[%c0_108, %c0_109], %173 {strides = array<i32>} : memref<2x16xf32, #tpu.memory_space<vmem>>, vector<2x16xf32>,
    } else {
    }
    return
  }
  func.func @transform_0(%arg0: i32, %arg1: i32) -> (i32, i32, i32) {
    %c0_i32 = arith.constant 0 : i32
    %c0_i32_0 = arith.constant 0 : i32
    return %arg0, %arg1, %c0_i32 : i32, i32, i32
  }
  func.func @transform_1(%arg0: i32, %arg1: i32) -> (i32, i32) {
    %c0_i32 = arith.constant 0 : i32
    %c0_i32_0 = arith.constant 0 : i32
    %c0_i32_1 = arith.constant 0 : i32
    return %c0_i32, %c0_i32_0 : i32, i32
  }
  func.func @transform_2(%arg0: i32, %arg1: i32) -> (i32, i32) {
    %c0_i32 = arith.constant 0 : i32
    %c0_i32_0 = arith.constant 0 : i32
    %c0_i32_1 = arith.constant 0 : i32
    return %c0_i32, %c0_i32_0 : i32, i32
  }
  func.func @transform_3(%arg0: i32, %arg1: i32) -> (i32, i32) {
    %c0_i32 = arith.constant 0 : i32
    %c0_i32_0 = arith.constant 0 : i32
    %c0_i32_1 = arith.constant 0 : i32
    return %c0_i32, %c0_i32_0 : i32, i32
  }
  func.func @transform_4(%arg0: i32, %arg1: i32) -> (i32, i32) {
    %c0_i32 = arith.constant 0 : i32
    %c0_i32_0 = arith.constant 0 : i32
    %c0_i32_1 = arith.constant 0 : i32
    return %c0_i32, %c0_i32_0 : i32, i32
  }
  func.func @transform_5(%arg0: i32, %arg1: i32) -> (i32, i32) {
    %c0_i32 = arith.constant 0 : i32
    %c0_i32_0 = arith.constant 0 : i32
    %c0_i32_1 = arith.constant 0 : i32
    return %c0_i32, %c0_i32_0 : i32, i32
  }
  func.func @transform_6(%arg0: i32, %arg1: i32) -> (i32, i32) {
    %c0_i32 = arith.constant 0 : i32
    %c0_i32_0 = arith.constant 0 : i32
    %c0_i32_1 = arith.constant 0 : i32
    return %c0_i32, %c0_i32_0 : i32, i32
  }
  func.func @transform_7(%arg0: i32, %arg1: i32) -> (i32, i32) {
    %c0_i32 = arith.constant 0 : i32
    %c0_i32_0 = arith.constant 0 : i32
    %c0_i32_1 = arith.constant 0 : i32
    return %c0_i32, %c0_i32_0 : i32, i32
  }
  func.func @transform_8(%arg0: i32, %arg1: i32) -> (i32, i32) {
    %c0_i32 = arith.constant 0 : i32
    %c0_i32_0 = arith.constant 0 : i32
    %c0_i32_1 = arith.constant 0 : i32
    return %c0_i32, %c0_i32_0 : i32, i32
  }
  func.func @transform_9(%arg0: i32, %arg1: i32) -> (i32, i32) {
    %c0_i32 = arith.constant 0 : i32
    %c0_i32_0 = arith.constant 0 : i32
    %c0_i32_1 = arith.constant 0 : i32
    return %c0_i32, %c0_i32_0 : i32, i32
  }
  func.func @transform_10(%arg0: i32, %arg1: i32) -> (i32, i32) {
    %c0_i32 = arith.constant 0 : i32
    %c0_i32_0 = arith.constant 0 : i32
    %c0_i32_1 = arith.constant 0 : i32
    return %c0_i32, %c0_i32_0 : i32, i32
  }
  func.func @transform_11(%arg0: i32, %arg1: i32) -> (i32, i32) {
    %c0_i32 = arith.constant 0 : i32
    %c0_i32_0 = arith.constant 0 : i32
    %c0_i32_1 = arith.constant 0 : i32
    return %c0_i32, %c0_i32_0 : i32, i32
  }
  func.func @transform_12(%arg0: i32, %arg1: i32) -> (i32, i32) {
    %c0_i32 = arith.constant 0 : i32
    %c0_i32_0 = arith.constant 0 : i32
    %c0_i32_1 = arith.constant 0 : i32
    return %c0_i32, %c0_i32_0 : i32, i32
  }
  func.func @transform_13(%arg0: i32, %arg1: i32) -> (i32, i32) {
    %c0_i32 = arith.constant 0 : i32
    %c0_i32_0 = arith.constant 0 : i32
    %c0_i32_1 = arith.constant 0 : i32
    return %c0_i32, %c0_i32_0 : i32, i32
  }
  func.func @transform_14(%arg0: i32, %arg1: i32) -> (i32, i32) {
    %c0_i32 = arith.constant 0 : i32
    %c0_i32_0 = arith.constant 0 : i32
    %c0_i32_1 = arith.constant 0 : i32
    return %c0_i32, %c0_i32_0 : i32, i32
  }
  func.func @transform_15(%arg0: i32, %arg1: i32) -> (i32, i32) {
    %c0_i32 = arith.constant 0 : i32
    %c0_i32_0 = arith.constant 0 : i32
    %c0_i32_1 = arith.constant 0 : i32
    return %c0_i32, %c0_i32_0 : i32, i32
  }
}

</mosaic_0001>

<bundles_post_ra>
// kernel: tnet_forward.4
= control target key start
LH: loop header
LB: loop body
LE: loop exit
PB: predicated region body
PF: predicated region fallthrough
CT: control target
= control target key end

     0   :  { %13 = vsyncpa [#allocation3], 0  ;;  %s1011_s0 = inlined_call_operand.vmem [shape: f32[2,16,4], index: 0, kind: input, shape index: {}]   ;;  %s1012_s1 = inlined_call_operand.vmem [shape: f32[2,64], index: 1, kind: input, shape index: {}]   ;;  %s1013_s2 = inlined_call_operand.hbm [shape: f32[4,64], index: 2, kind: input, shape index: {}]   ;;  %s1014_s3 = inlined_call_operand.hbm [shape: f32[1,64], index: 3, kind: input, shape index: {}]   ;;  %s1015_s4 = inlined_call_operand.hbm [shape: f32[64,128], index: 4, kind: input, shape index: {}]   ;;  %s1016_s5 = inlined_call_operand.hbm [shape: f32[1,128], index: 5, kind: input, shape index: {}]   ;;  %s1017_s6 = inlined_call_operand.vmem [shape: f32[1,128], index: 6, kind: output, shape index: {0}]   ;;  %s1018_s7 = inlined_call_operand.vmem [shape: f32[1,128], index: 7, kind: output, shape index: {1}]  }
   0x1   :  { %14 = vsyncpa [#allocation5], 0 }
   0x2   :  { %15 = vsyncpa [#allocation8], 0  ;;  %s899_s24 = smov 0   ;;  %s901_s25 = smov 0  }
   0x3   :  { %s903_s26 = smov 0  }
   0x4 LB: > { %s240_s29 = sshll.u32 %s1014_s3, 4  ;;  %s596_s30 = sadd.s32 4294967295, %s849_s26   ;;  %s849_s26 = sphi %s903_s26, %s21_s26   ;;  %s845_s25 = sphi %s901_s25, %s1023_s25   ;;  %s841_s24 = sphi %s899_s24, %s1022_s24   ;;  %s241_s29 = int_to_ptr.hbm [resolvable:$true] %s240_s29 }
   0x5   : > { %p597_p0 = scmp.ge.s32.totalorder %s849_s26, 1  ;;  %p213_p1 = scmp.lt.s32.totalorder %s849_s26, 3 }
   0x6   : > { %p920_p2 = scmp.eq.s32.totalorder %s596_s30, 0  ;;  %s851_s10 = smov [#allocation4]  }
   0x7   : > { %p924_p3 = pnand %p597_p0, %p213_p1  ;;  %s242_s11 = sshll.u32 %s851_s10, 4  ;;  %s243_s11 = int_to_ptr.vmem [resolvable:$true] %s242_s11 }
   0x8   : > { %s33_s13 = sadd.s32 1, %s845_s25  ;;  %s228_s16 = sshll.u32 %s1013_s2, 4  ;;  %s229_s16 = int_to_ptr.hbm [resolvable:$true] %s228_s16 }
   0x9   : > { %p638_p4 = pneg %p924_p3  ;;  %p35_p6 = scmp.ge.s32.totalorder %s33_s13, 2 }
   0xa   : > { %s251_s19 = sshll.u32 %s1015_s4, 4  ;;  %s852_s20 = smov [#allocation2]   ;;  %s252_s19 = int_to_ptr.hbm [resolvable:$true] %s251_s19 }
   0xb   : > { %p932_p5 = pnand %p920_p2, %p638_p4  ;;  %s1025_s13 = smov (%p35_p6, %s33_s13), 0 }
   0xc   : > { %s230_s21 = sshll.u32 %s852_s20, 4  ;;  %s853_s22 = smov [#allocation6]   ;;  %s231_s21 = int_to_ptr.vmem [resolvable:$true] %s230_s21 }
   0xd   : > { %644 = dma.hbm_to_vmem [thread:$0]  (!%p932_p5), %s241_s29, 16, %s243_s11, [#allocation5]  }
   0xe   : > { %641 = dma.hbm_to_vmem [thread:$0]  (!%p932_p5), %s229_s16, 64, %s231_s21, [#allocation3]  }
   0xf   : > { %s253_s23 = sshll.u32 %s853_s22, 4  ;;  %s854_s27 = smov 128   ;;  %s254_s23 = int_to_ptr.vmem [resolvable:$true] %s253_s23 }
  0x10   : > { %s855_s28 = smov 8   ;;  %s266_s10 = sshll.u32 %s1016_s5, 4  ;;  %s267_s10 = int_to_ptr.hbm [resolvable:$true] %s266_s10 }
  0x11   : > { %647 = dma.hbm_to_vmem [thread:$0]  (!%p932_p5), %s252_s19, 1024, %s254_s23, [#allocation5], %s854_s27, %s854_s27, %s855_s28  }
  0x12   : > { %s856_s11 = smov [#allocation7]   ;;  %294 = sbr.rel (%p924_p3) target bundleno = 449 (0x1c1), region = 44 }
  0x13   : > { %s268_s14 = sshll.u32 %s856_s11, 4  ;;  %s269_s14 = int_to_ptr.vmem [resolvable:$true] %s268_s14 }
  0x14   : > { %650 = dma.hbm_to_vmem [thread:$0]  (!%p932_p5), %s267_s10, 16, %s269_s14, [#allocation8]  }
  0x17   : > { %828 = dma.done.wait (%p920_p2), [#allocation3], 64  }
  0x18   : > { %830 = vsyncadd (%p920_p2), [#allocation3], 4294967232 }
  0x19   : > { %832 = dma.done.wait (%p920_p2), [#allocation5], 1040  }
  0x1a   : > { %834 = vsyncadd (%p920_p2), [#allocation5], 4294966256 }
  0x1b   : > { %836 = dma.done.wait (%p920_p2), [#allocation8], 16  }
  0x1c   : > { %838 = vsyncadd (%p920_p2), [#allocation8], 4294967280  ;;  %p351_p7 = scmp.eq.s32.totalorder %s841_s24, 0  ;;  %p342_p8 = scmp.lt.s32.totalorder %s841_s24, 1  ;;  %vm369_vm0 = vcmask 1043456   ;;  %vm362_vm1 = vcmask 31744  }
  0x1d   : > { %v357_v0 = vld [vmem:[#allocation2] sm:$0xf]  ;;  %v412_v3 = vld [vmem:[#allocation6 + $0x30] sm:$0xff]  ;;  %v411_v4 = vld [vmem:[#allocation6 + $0x28] sm:$0xff]  ;;  %vm418_vm2 = vcmask 523264   ;;  %vm450_vm3 = vcmask 130048  }
  0x1e   : > { %s343_s9 = scalar_select %p342_p8, %s841_s24, 1  ;;  %611 = vmatpush.msk.msra.mxu0 %vm369_vm0, %v357_v0  ;;  %v413_v2 = vld [vmem:[#allocation6 + $0x38] sm:$0xff]  ;;  %v410_v6 = vld [vmem:[#allocation6 + $0x20] sm:$0xff]  ;;  %v408_v8 = vld [vmem:[#allocation6 + $0x10] sm:$0xff]  ;;  %v857_v33 = vmov 1.0   ;;  %v858_v36 = vmov (%p351_p7), 0.0  }
  0x1f   : > { %433 = vmatpush.msra.mxu1 %v413_v2  ;;  %v409_v7 = vld [vmem:[#allocation6 + $0x18] sm:$0xff]  ;;  %v407_v9 = vld [vmem:[#allocation6 + $0x8] sm:$0xff]  ;;  %v406_v10 = vld [vmem:[#allocation6] sm:$0xff]  ;;  %498 = vst [vmem:[%s1017_s6] sm:$0x1] (%p351_p7), %v858_v36 }
  0x20   : > { %s620_s12 = sshll.u32 %s343_s9, 4  ;;  %v691_v11 = vld [vmem:[#allocation4] ss:$0 sm:$0xff]  ;;  %v692_v14 = vld [vmem:[%s1012_s1] ss:$0 sm:$0xff]  ;;  %499 = vst [vmem:[%s1018_s7] sm:$0x1] (%p351_p7), %v858_v36 }
  0x21   : > { %s349_s17 = scalar_lea.vmem %s1011_s0, %s620_s12  ;;  %434 = vmatpush.msra.mxu1 %v412_v3  ;;  %v693_v16 = vld [vmem:[%s1012_s1 + $0x1] ss:$0 sm:$0xff]  ;;  %v694_v25 = vld [vmem:[#allocation7] ss:$0 sm:$0xff] }
  0x22   : > { %v355_v1 = vld [vmem:[%s349_s17] sm:$0xff]  ;;  %v356_v5 = vld [vmem:[%s349_s17 + $0x8] sm:$0xff] }
  0x23   : > { %612 = vmatmul.msk.f32.vlgmr.msra.gmra.mxu0 %vm362_vm1, %v355_v1  ;;  %435 = vmatpush.msra.mxu1 %v411_v4 }
  0x25   : > { %436 = vmatpush.msra.mxu1 %v410_v6 }
  0x27   : > { %437 = vmatpush.msra.mxu1 %v409_v7 }
  0x29   : > { %438 = vmatpush.msra.mxu1 %v408_v8 }
  0x2b   : > { %613 = vmatmul.msk.f32.gmra.mxu0 %vm362_vm1, %v356_v5  ;;  %439 = vmatpush.msra.mxu1 %v407_v9 }
  0x2d   : > { %440 = vmatpush.msra.mxu1 %v406_v10 }
  0xa0   : > { %v390_v12 = vpop.f32.mrf.mxu0 }
  0xa1   : > { %v391_v13 = vadd.f32 %v691_v11, %v390_v12 }
  0xa3   : > { %v396_v15 = vmax.f32 %v391_v13, 0.0 }
  0xa5   : > { %v400_v17 = vmul.f32 %v692_v14, %v396_v15 }
  0xa7   : > { %v404_v18 = vadd.f32 %v693_v16, %v400_v17 }
  0xa8   : > { %v393_v19 = vpop.f32.mrf.mxu0 }
  0xa9   : > { %v394_v20 = vadd.f32 %v691_v11, %v393_v19  ;;  %614 = vmatmul.msk.f32.vlgmr.msra.gmra.mxu1 %vm418_vm2, %v404_v18 }
  0xab   : > { %v397_v21 = vmax.f32 %v394_v20, 0.0 }
  0xad   : > { %v401_v22 = vmul.f32 %v692_v14, %v397_v21 }
  0xaf   : > { %v405_v23 = vadd.f32 %v693_v16, %v401_v22 }
  0xb1   : > { %615 = vmatmul.msk.f32.gmra.mxu1 %vm418_vm2, %v405_v23 }
 0x126   : > { %v442_v24 = vpop.f32.mrf.mxu1 }
 0x127   : > { %v443_v26 = vadd.f32 %v694_v25, %v442_v24 }
 0x129   : > { %v448_v29 = vmax.f32 %v443_v26, 0.0 }
 0x12b   : > { %v474_v32 = vmul.f32 %v448_v29, %v448_v29 }
 0x12e   : > { %v445_v27 = vpop.f32.mrf.mxu1 }
 0x12f   : > { %v446_v28 = vadd.f32 %v694_v25, %v445_v27 }
 0x131   : > { %v449_v30 = vmax.f32 %v446_v28, 0.0 }
 0x133   : > { %468 = vmatpush.msra.mxu2 %v449_v30  ;;  %v475_v31 = vmul.f32 %v449_v30, %v449_v30 }
 0x135   : > { %469 = vmatpush.msra.mxu2 %v448_v29  ;;  %490 = vmatpush.msra.mxu3 %v475_v31 }
 0x136   : > { %616 = vmatmul.msk.f32.vlgmr.msra.gmra.mxu2 %vm450_vm3, %v857_v33 }
 0x137   : > { %491 = vmatpush.msra.mxu3 %v474_v32 }
 0x138   : > { %617 = vmatmul.msk.f32.vlgmr.msra.gmra.mxu3 %vm450_vm3, %v857_v33 }
 0x1b7   : > { %497 = sbr.rel (!%p351_p7) target bundleno = 444 (0x1bc), region = 64 }
 0x1b9   : > { %v471_v34 = vpop.f32.mrf.mxu2 }
 0x1bb   : > { %v493_v35 = vpop.f32.mrf.mxu3 }
 0x1bc PF: > { %v500_v37 = vld [vmem:[%s1017_s6] sm:$0x1] }
 0x1bd   : > { %v503_v38 = vld [vmem:[%s1018_s7] sm:$0x1]  ;;  %v501_v39 = vadd.f32 %v500_v37, %v471_v34 }
 0x1be   : > { %v504_v40 = vadd.f32 %v503_v38, %v493_v35 }
 0x1bf   : > { %502 = vst [vmem:[%s1017_s6] sm:$0x1] %v501_v39 }
 0x1c0   : > { %505 = vst [vmem:[%s1018_s7] sm:$0x1] %v504_v40 }
 0x1c1 PF: > { %s21_s26 = sadd.s32 1, %s849_s26   ;;  %s1022_s24 = smov %s845_s25 }
 0x1c2   : > { %p18_p9 = scmp.ge.s32.totalorder %s21_s26, 4   ;;  %s1023_s25 = smov %s1025_s13 }
 0x1c4   :  { %20 = sbr.rel (!%p18_p9) target bundleno = 4 (0x4), region = 99 }
 0x1c9   :  { %523 = vsyncpa [#allocation3], 1 }
 0x1ca   :  { %525 = vsyncpa [#allocation3 + $0x1], 1 }
 0x1cb   :  { %526 = vsyncpa [#allocation5], 1 }
 0x1cc   :  { %527 = vsyncpa [#allocation8], 1 }

// kernel: tnet_forward.3
= control target key start
LH: loop header
LB: loop body
LE: loop exit
PB: predicated region body
PF: predicated region fallthrough
CT: control target
= control target key end

     0   :  { %10 = vsyncpa [#allocation3], 0  ;;  %s689_s0 = inlined_call_operand.vmem [shape: f32[2,16,4], index: 0, kind: input, shape index: {}]   ;;  %s690_s1 = inlined_call_operand.hbm [shape: f32[4,64], index: 1, kind: input, shape index: {}]   ;;  %s691_s2 = inlined_call_operand.hbm [shape: f32[1,64], index: 2, kind: input, shape index: {}]   ;;  %s692_s3 = inlined_call_operand.vmem [shape: f32[1,64], index: 3, kind: output, shape index: {0}]   ;;  %s693_s4 = inlined_call_operand.vmem [shape: f32[1,64], index: 4, kind: output, shape index: {1}]  }
   0x1   :  { %11 = vsyncpa [#allocation5], 0  ;;  %s605_s15 = smov 0   ;;  %s607_s16 = smov 0  }
   0x2   :  { %s609_s17 = smov 0  }
   0x3 LB: > { %s415_s18 = sadd.s32 4294967295, %s574_s17   ;;  %s29_s19 = sadd.s32 1, %s570_s16  ;;  %s574_s17 = sphi %s609_s17, %s17_s17   ;;  %s570_s16 = sphi %s607_s16, %s697_s16   ;;  %s566_s15 = sphi %s605_s15, %s696_s15  }
   0x4   : > { %p31_p0 = scmp.ge.s32.totalorder %s29_s19, 2  ;;  %p416_p1 = scmp.ge.s32.totalorder %s574_s17, 1 }
   0x5   : > { %p146_p2 = scmp.lt.s32.totalorder %s574_s17, 3  ;;  %p630_p4 = scmp.eq.s32.totalorder %s415_s18, 0 }
   0x6   : > { %s699_s19 = smov (%p31_p0, %s29_s19), 0  ;;  %s158_s24 = sshll.u32 %s690_s1, 4  ;;  %s159_s24 = int_to_ptr.hbm [resolvable:$true] %s158_s24 }
   0x7   : > { %p626_p3 = pnand %p416_p1, %p146_p2  ;;  %s576_s25 = smov [#allocation2]  }
   0x8   : > { %s160_s26 = sshll.u32 %s576_s25, 4  ;;  %s170_s29 = sshll.u32 %s691_s2, 4  ;;  %s161_s26 = int_to_ptr.vmem [resolvable:$true] %s160_s26  ;;  %s171_s29 = int_to_ptr.hbm [resolvable:$true] %s170_s29 }
   0x9   : > { %p444_p5 = pneg %p626_p3  ;;  %s577_s30 = smov [#allocation4]  }
   0xa   : > { %s172_s5 = sshll.u32 %s577_s30, 4  ;;  %198 = sbr.rel (%p626_p3) target bundleno = 303 (0x12f), region = 32  ;;  %s173_s5 = int_to_ptr.vmem [resolvable:$true] %s172_s5 }
   0xb   : > { %p445_p6 = pnand %p630_p4, %p444_p5 }
   0xd   : > { %447 = dma.hbm_to_vmem [thread:$0]  (!%p445_p6), %s159_s24, 64, %s161_s26, [#allocation3]  }
   0xe   : > { %450 = dma.hbm_to_vmem [thread:$0]  (!%p445_p6), %s171_s29, 16, %s173_s5, [#allocation5]  }
   0xf   : > { %557 = dma.done.wait (%p630_p4), [#allocation3], 64  }
  0x10   : > { %559 = vsyncadd (%p630_p4), [#allocation3], 4294967232 }
  0x11   : > { %561 = dma.done.wait (%p630_p4), [#allocation5], 16  }
  0x12   : > { %563 = vsyncadd (%p630_p4), [#allocation5], 4294967280  ;;  %p230_p7 = scmp.lt.s32.totalorder %s566_s15, 1  ;;  %p239_p8 = scmp.eq.s32.totalorder %s566_s15, 0  ;;  %vm257_vm0 = vcmask 1043456   ;;  %vm250_vm1 = vcmask 31744  }
  0x13   : > { %v245_v0 = vld [vmem:[#allocation2] sm:$0xf]  ;;  %v483_v4 = vld [vmem:[#allocation4] ss:$0 sm:$0xff]  ;;  %vm286_vm2 = vcmask 130048   ;;  %v578_v12 = vmov 1.0  }
  0x14   : > { %s231_s6 = scalar_select %p230_p7, %s566_s15, 1  ;;  %435 = vmatpush.msk.msra.mxu3 %vm257_vm0, %v245_v0  ;;  %426 = vmatpush.msk.msra.mxu0 %vm257_vm0, %v245_v0  ;;  %vm334_vm3 = vcmask (%p239_p8), 516096   ;;  %v579_v15 = vmov (%p239_p8), 0.0  }
  0x15   : > { %335 = vst.msk [vmem:[%s692_s3] sm:$0x1] (%p239_p8), %vm334_vm3, %v579_v15 }
  0x16   : > { %s433_s7 = sshll.u32 %s231_s6, 4  ;;  %336 = vst.msk [vmem:[%s693_s4] sm:$0x1] (%p239_p8), %vm334_vm3, %v579_v15 }
  0x17   : > { %s237_s10 = scalar_lea.vmem %s689_s0, %s433_s7 }
  0x18   : > { %v244_v1 = vld [vmem:[%s237_s10 + $0x8] sm:$0xff]  ;;  %v243_v2 = vld [vmem:[%s237_s10] sm:$0xff] }
  0x19   : > { %428 = vmatmul.msk.f32.vlgmr.msra.gmra.mxu3 %vm250_vm1, %v244_v1  ;;  %427 = vmatmul.msk.f32.vlgmr.msra.gmra.mxu0 %vm250_vm1, %v243_v2 }
  0x96   : > { %v278_v3 = vpop.f32.mrf.mxu0 }
  0x97   : > { %v279_v5 = vadd.f32 %v483_v4, %v278_v3 }
  0x99   : > { %v284_v8 = vmax.f32 %v279_v5, 0.0 }
  0x9b   : > { %v310_v11 = vmul.f32 %v284_v8, %v284_v8 }
  0x9c   : > { %v281_v6 = vpop.f32.mrf.mxu3 }
  0x9d   : > { %v282_v7 = vadd.f32 %v483_v4, %v281_v6 }
  0x9f   : > { %v285_v9 = vmax.f32 %v282_v7, 0.0 }
  0xa1   : > { %304 = vmatpush.msra.mxu1 %v285_v9  ;;  %v311_v10 = vmul.f32 %v285_v9, %v285_v9 }
  0xa3   : > { %305 = vmatpush.msra.mxu1 %v284_v8  ;;  %326 = vmatpush.msra.mxu2 %v311_v10 }
  0xa4   : > { %429 = vmatmul.msk.f32.vlgmr.msra.gmra.mxu1 %vm286_vm2, %v578_v12 }
  0xa5   : > { %327 = vmatpush.msra.mxu2 %v310_v11 }
  0xa6   : > { %430 = vmatmul.msk.f32.vlgmr.msra.gmra.mxu2 %vm286_vm2, %v578_v12 }
 0x121   : > { %v307_v13 = vpop.f32.mrf.mxu1 }
 0x125   : > { %333 = sbr.rel (!%p239_p8) target bundleno = 298 (0x12a), region = 44 }
 0x129   : > { %v329_v14 = vpop.f32.mrf.mxu2 }
 0x12a PF: > { %v337_v16 = vld [vmem:[%s692_s3] sm:$0x1]  ;;  %vm339_vm4 = vcmask 516096  }
 0x12b   : > { %v341_v17 = vld [vmem:[%s693_s4] sm:$0x1]  ;;  %v338_v18 = vadd.f32 %v337_v16, %v307_v13 }
 0x12c   : > { %v342_v19 = vadd.f32 %v341_v17, %v329_v14 }
 0x12d   : > { %340 = vst.msk [vmem:[%s692_s3] sm:$0x1] %vm339_vm4, %v338_v18 }
 0x12e   : > { %343 = vst.msk [vmem:[%s693_s4] sm:$0x1] %vm339_vm4, %v342_v19 }
 0x12f PF: > { %s17_s17 = sadd.s32 1, %s574_s17   ;;  %s696_s15 = smov %s570_s16 }
 0x130   : > { %p14_p9 = scmp.ge.s32.totalorder %s17_s17, 4   ;;  %s697_s16 = smov %s699_s19 }
 0x132   :  { %16 = sbr.rel (!%p14_p9) target bundleno = 3 (0x3), region = 79 }
 0x137   :  { %361 = vsyncpa [#allocation3], 1 }
 0x138   :  { %363 = vsyncpa [#allocation3 + $0x1], 1 }
 0x139   :  { %364 = vsyncpa [#allocation5], 1 }

// kernel: tnet_forward.5
= control target key start
LH: loop header
LB: loop body
LE: loop exit
PB: predicated region body
PF: predicated region fallthrough
CT: control target
= control target key end

     0   :  { %s5273_s0 = inlined_call_operand.vmem [shape: f32[2,16,4], index: 0, kind: input, shape index: {}]   ;;  %s5274_s1 = inlined_call_operand.vmem [shape: f32[2,64], index: 1, kind: input, shape index: {}]   ;;  %s5275_s2 = inlined_call_operand.vmem [shape: f32[2,128], index: 2, kind: input, shape index: {}]   ;;  %s5276_s3 = inlined_call_operand.hbm [shape: f32[4,64], index: 3, kind: input, shape index: {}]   ;;  %s5277_s4 = inlined_call_operand.hbm [shape: f32[1,64], index: 4, kind: input, shape index: {}]   ;;  %s5278_s5 = inlined_call_operand.hbm [shape: f32[64,128], index: 5, kind: input, shape index: {}]   ;;  %s5279_s6 = inlined_call_operand.hbm [shape: f32[1,128], index: 6, kind: input, shape index: {}]   ;;  %s5280_s7 = inlined_call_operand.hbm [shape: f32[128,1024], index: 7, kind: input, shape index: {}]   ;;  %s5281_s8 = inlined_call_operand.vmem [shape: f32[3,1024], index: 8, kind: input, shape index: {}]   ;;  %s5282_s9 = inlined_call_operand.hbm [shape: f32[1024,512], index: 9, kind: input, shape index: {}]   ;;  %s5283_s10 = inlined_call_operand.vmem [shape: f32[3,512], index: 10, kind: input, shape index: {}]   ;;  %s5284_s11 = inlined_call_operand.hbm [shape: f32[512,256], index: 11, kind: input, shape index: {}]   ;;  %s5285_s12 = inlined_call_operand.vmem [shape: f32[3,256], index: 12, kind: input, shape index: {}]   ;;  %s5286_s13 = inlined_call_operand.vmem [shape: f32[256,16], index: 13, kind: input, shape index: {}]   ;;  %s5287_s14 = inlined_call_operand.vmem [shape: f32[1,16], index: 14, kind: input, shape index: {}]   ;;  %s5288_s15 = inlined_call_operand.vmem [shape: f32[2,16], index: 15, kind: output, shape index: {}]  }
   0x1   :  { %5290 = sst [smem:[#allocation24_spill]] %s5276_s3 }
   0x2   :  { %5291 = sst [smem:[#allocation25_spill]] %s5277_s4 }
   0x3   :  { %5292 = sst [smem:[#allocation26_spill]] %s5278_s5 }
   0x4   :  { %5293 = sst [smem:[#allocation27_spill]] %s5279_s6 }
   0x5   :  { %5294 = sst [smem:[#allocation28_spill]] %s5282_s9 }
   0x6   :  { %5295 = sst [smem:[#allocation29_spill]] %s5288_s15 }
   0x7   :  { %20 = vsyncpa [#allocation7], 0 }
   0x8   :  { %21 = vsyncpa [#allocation9], 0 }
   0x9   :  { %22 = vsyncpa [#allocation12], 0 }
   0xa   :  { %23 = vsyncpa [#allocation15], 0  ;;  %s4419_s18 = smov 0   ;;  %s4421_s19 = smov 0  }
   0xb   :  { %s4423_s20 = smov 0  }
   0xc LB: > { %5296 = sst [smem:[#allocation21_spill]] %s4316_s20  ;;  %s3882_s24 = sadd.s32 4294967295, %s4316_s20   ;;  %s4316_s20 = sphi %s4423_s20, %s29_s20   ;;  %s4312_s19 = sphi %s4421_s19, %s5334_s19   ;;  %s4308_s18 = sphi %s4419_s18, %s5333_s18  }
   0xd   : > { %s5297_s4 = sld [smem:[#allocation25_spill]]  ;;  %p3883_p0 = scmp.ge.s32.totalorder %s4316_s20, 1 }
   0xe   : > { %p389_p1 = scmp.lt.s32.totalorder %s4316_s20, 3  ;;  %p4440_p2 = scmp.eq.s32.totalorder %s3882_s24, 0 }
   0xf   : > { %s4318_s27 = smov [#allocation8]   ;;  %s5300_s6 = sld [smem:[#allocation27_spill]] }
  0x10   : > { %p4444_p3 = pnand %p3883_p0, %p389_p1  ;;  %s421_s28 = sshll.u32 %s4318_s27, 4  ;;  %s422_s28 = int_to_ptr.vmem [resolvable:$true] %s421_s28 }
  0x11   : > { %s5301_s9 = sld [smem:[#allocation28_spill]]  ;;  %s4319_s27 = smov [#allocation11]  }
  0x12   : > { %p3964_p4 = pneg %p4444_p3  ;;  %s4320_s29 = smov [#allocation14]  }
  0x13   : > { %s419_s23 = sshll.u32 %s5297_s4, 4  ;;  %s447_s4 = sshll.u32 %s4319_s27, 4  ;;  %s420_s23 = int_to_ptr.hbm [resolvable:$true] %s419_s23  ;;  %s448_s4 = int_to_ptr.vmem [resolvable:$true] %s447_s4 }
  0x14   : > { %p4458_p5 = pnand %p4440_p2, %p3964_p4  ;;  %s475_s30 = sshll.u32 %s4320_s29, 4  ;;  %s476_s30 = int_to_ptr.vmem [resolvable:$true] %s475_s30 }
  0x15   : > { %s445_s16 = sshll.u32 %s5300_s6, 4  ;;  %s4321_s17 = smov 512   ;;  %s446_s16 = int_to_ptr.hbm [resolvable:$true] %s445_s16 }
  0x16   : > { %3970 = dma.hbm_to_vmem [thread:$0]  (!%p4458_p5), %s420_s23, 16, %s422_s28, [#allocation9]  }
  0x17   : > { %s473_s22 = sshll.u32 %s5301_s9, 4  ;;  %s4322_s21 = smov 32   ;;  %s474_s22 = int_to_ptr.hbm [resolvable:$true] %s473_s22 }
  0x18   : > { %3976 = dma.hbm_to_vmem [thread:$0]  (!%p4458_p5), %s446_s16, 16, %s448_s4, [#allocation12]  }
  0x19   : > { %3982 = dma.hbm_to_vmem [thread:$0]  (!%p4458_p5), %s474_s22, 65536, %s476_s30, [#allocation15], %s4321_s17, %s4321_s17, %s4322_s21  }
  0x1a   : > { %s41_s6 = sadd.s32 1, %s4312_s19  ;;  %s5303_s3 = sld [smem:[#allocation24_spill]] }
  0x1b   : > { %p43_p6 = scmp.ge.s32.totalorder %s41_s6, 2  ;;  %s5304_s5 = sld [smem:[#allocation26_spill]] }
  0x1c   : > { %s4323_s28 = smov [#allocation6]   ;;  %s4324_s22 = smov [#allocation10]  }
  0x1d   : > { %s5336_s6 = smov (%p43_p6, %s41_s6), 0  ;;  %s409_s16 = sshll.u32 %s4323_s28, 4  ;;  %s410_s16 = int_to_ptr.vmem [resolvable:$true] %s409_s16 }
  0x1e   : > { %s432_s29 = sshll.u32 %s4324_s22, 4  ;;  %s4325_s9 = smov 128   ;;  %s433_s29 = int_to_ptr.vmem [resolvable:$true] %s432_s29 }
  0x1f   : > { %s4326_s20 = smov 8   ;;  %s456_s15 = sshll.u32 %s5280_s7, 4  ;;  %s457_s15 = int_to_ptr.hbm [resolvable:$true] %s456_s15 }
  0x20   : > { %s407_s27 = sshll.u32 %s5303_s3, 4  ;;  %s4327_s21 = smov [#allocation13]   ;;  %s408_s27 = int_to_ptr.hbm [resolvable:$true] %s407_s27 }
  0x21   : > { %s430_s4 = sshll.u32 %s5304_s5, 4  ;;  %s458_s23 = sshll.u32 %s4327_s21, 4  ;;  %s431_s4 = int_to_ptr.hbm [resolvable:$true] %s430_s4  ;;  %s459_s23 = int_to_ptr.vmem [resolvable:$true] %s458_s23 }
  0x22   : > { %3967 = dma.hbm_to_vmem [thread:$0]  (!%p4458_p5), %s408_s27, 64, %s410_s16, [#allocation7]  }
  0x23   : > { %3973 = dma.hbm_to_vmem [thread:$0]  (!%p4458_p5), %s431_s4, 1024, %s433_s29, [#allocation9], %s4325_s9, %s4325_s9, %s4326_s20  }
  0x24   : > { %s490_s27 = sshll.u32 %s5284_s11, 4  ;;  %s4328_s16 = smov 1024   ;;  %s491_s27 = int_to_ptr.hbm [resolvable:$true] %s490_s27 }
  0x25   : > { %s4329_s22 = smov 64   ;;  %s4330_s5 = smov [#allocation16]  }
  0x26   : > { %3979 = dma.hbm_to_vmem [thread:$0]  (!%p4458_p5), %s457_s15, 16384, %s459_s23, [#allocation12], %s4328_s16, %s4328_s16, %s4329_s22  }
  0x27   : > { %s492_s4 = sshll.u32 %s4330_s5, 4  ;;  %s4331_s29 = smov 256   ;;  %s493_s4 = int_to_ptr.vmem [resolvable:$true] %s492_s4 }
  0x28   : > { %s4332_s9 = smov 16   ;;  %530 = sbr.rel (%p4444_p3) target bundleno = 1644 (0x66c), region = 80 }
  0x29   : > { %3985 = dma.hbm_to_vmem [thread:$0]  (!%p4458_p5), %s491_s27, 16384, %s493_s4, [#allocation15], %s4331_s29, %s4331_s29, %s4332_s9  }
  0x2d   : > { %4291 = dma.done.wait (%p4440_p2), [#allocation7], 64  }
  0x2e   : > { %4293 = vsyncadd (%p4440_p2), [#allocation7], 4294967232 }
  0x2f   : > { %4295 = dma.done.wait (%p4440_p2), [#allocation9], 1040  }
  0x30   : > { %4297 = vsyncadd (%p4440_p2), [#allocation9], 4294966256 }
  0x31   : > { %4299 = dma.done.wait (%p4440_p2), [#allocation12], 16400  }
  0x32   : > { %4301 = vsyncadd (%p4440_p2), [#allocation12], 4294950896 }
  0x33   : > { %4303 = dma.done.wait (%p4440_p2), [#allocation15], 81920  }
  0x34   : > { %4305 = vsyncadd (%p4440_p2), [#allocation15], 4294885376  ;;  %p618_p7 = scmp.eq.s32.totalorder %s4308_s18, 0  ;;  %p622_p8 = scmp.eq.s32.totalorder %s4308_s18, 1  ;;  %vm639_vm0 = vcmask 1043456   ;;  %vm632_vm1 = vcmask 31744  }
  0x35   : > { %p609_p9 = scmp.lt.s32.totalorder %s4308_s18, 1  ;;  %v627_v0 = vld [vmem:[#allocation6] sm:$0xf]  ;;  %v682_v3 = vld [vmem:[#allocation10 + $0x30] sm:$0xff]  ;;  %v681_v4 = vld [vmem:[#allocation10 + $0x28] sm:$0xff]  ;;  %vm688_vm2 = vcmask 523264  }
  0x36   : > { %3904 = vmatpush.msk.msra.mxu0 %vm639_vm0, %v627_v0  ;;  %v683_v2 = vld [vmem:[#allocation10 + $0x38] sm:$0xff]  ;;  %v680_v6 = vld [vmem:[#allocation10 + $0x20] sm:$0xff]  ;;  %v678_v8 = vld [vmem:[#allocation10 + $0x10] sm:$0xff]  ;;  %vm1074_vm3 = vcmask 130048  }
  0x37   : > { %s610_s3 = scalar_select %p609_p9, %s4308_s18, 1  ;;  %703 = vmatpush.msra.mxu1 %v683_v2  ;;  %v679_v7 = vld [vmem:[#allocation10 + $0x18] sm:$0xff]  ;;  %v677_v9 = vld [vmem:[#allocation10 + $0x8] sm:$0xff]  ;;  %v676_v10 = vld [vmem:[#allocation10] sm:$0xff] }
  0x38   : > { %v848_v11 = vld [vmem:[#allocation13 + $0x3c0] sm:$0xff]  ;;  %v849_v12 = vld [vmem:[#allocation13 + $0x3c8] sm:$0xff]  ;;  %v850_v13 = vld [vmem:[#allocation13 + $0x3d0] sm:$0xff] }
  0x39   : > { %s3933_s5 = sshll.u32 %s610_s3, 4  ;;  %704 = vmatpush.msra.mxu1 %v682_v3  ;;  %874 = vmatpush.msra.mxu2 %v848_v11  ;;  %v851_v14 = vld [vmem:[#allocation13 + $0x3d8] sm:$0xff]  ;;  %v840_v15 = vld [vmem:[#allocation13 + $0x380] sm:$0xff]  ;;  %v841_v16 = vld [vmem:[#allocation13 + $0x388] sm:$0xff] }
  0x3a   : > { %s616_s20 = scalar_lea.vmem %s5273_s0, %s3933_s5  ;;  %897 = vmatpush.msra.mxu3 %v849_v12  ;;  %920 = vmatpush.msrb.mxu0 %v850_v13  ;;  %v842_v17 = vld [vmem:[#allocation13 + $0x390] sm:$0xff]  ;;  %v843_v18 = vld [vmem:[#allocation13 + $0x398] sm:$0xff]  ;;  %v832_v19 = vld [vmem:[#allocation13 + $0x340] sm:$0xff] }
  0x3b   : > { %v625_v1 = vld [vmem:[%s616_s20] sm:$0xff]  ;;  %705 = vmatpush.msra.mxu1 %v681_v4  ;;  %v626_v5 = vld [vmem:[%s616_s20 + $0x8] sm:$0xff]  ;;  %875 = vmatpush.msra.mxu2 %v840_v15  ;;  %v834_v21 = vld [vmem:[#allocation13 + $0x350] sm:$0xff] }
  0x3c   : > { %3905 = vmatmul.msk.f32.vlgmr.msra.gmra.mxu0 %vm632_vm1, %v625_v1  ;;  %898 = vmatpush.msra.mxu3 %v841_v16  ;;  %v833_v20 = vld [vmem:[#allocation13 + $0x348] sm:$0xff]  ;;  %v835_v22 = vld [vmem:[#allocation13 + $0x358] sm:$0xff]  ;;  %v824_v23 = vld [vmem:[#allocation13 + $0x300] sm:$0xff] }
  0x3d   : > { %706 = vmatpush.msra.mxu1 %v680_v6  ;;  %921 = vmatpush.msrb.mxu0 %v842_v17  ;;  %v825_v24 = vld [vmem:[#allocation13 + $0x308] sm:$0xff]  ;;  %v826_v25 = vld [vmem:[#allocation13 + $0x310] sm:$0xff]  ;;  %v827_v26 = vld [vmem:[#allocation13 + $0x318] sm:$0xff] }
  0x3e   : > { %876 = vmatpush.msra.mxu2 %v832_v19  ;;  %899 = vmatpush.msra.mxu3 %v833_v20  ;;  %v816_v27 = vld [vmem:[#allocation13 + $0x2c0] sm:$0xff]  ;;  %v817_v28 = vld [vmem:[#allocation13 + $0x2c8] sm:$0xff]  ;;  %v818_v29 = vld [vmem:[#allocation13 + $0x2d0] sm:$0xff] }
  0x3f   : > { %707 = vmatpush.msra.mxu1 %v679_v7  ;;  %922 = vmatpush.msrb.mxu0 %v834_v21  ;;  %v819_v30 = vld [vmem:[#allocation13 + $0x2d8] sm:$0xff]  ;;  %v808_v31 = vld [vmem:[#allocation13 + $0x280] sm:$0xff]  ;;  %v809_v32 = vld [vmem:[#allocation13 + $0x288] sm:$0xff] }
  0x40   : > { %877 = vmatpush.msra.mxu2 %v824_v23  ;;  %900 = vmatpush.msra.mxu3 %v825_v24  ;;  %v810_v33 = vld [vmem:[#allocation13 + $0x290] sm:$0xff]  ;;  %v811_v34 = vld [vmem:[#allocation13 + $0x298] sm:$0xff]  ;;  %v800_v35 = vld [vmem:[#allocation13 + $0x240] sm:$0xff] }
  0x41   : > { %708 = vmatpush.msra.mxu1 %v678_v8  ;;  %923 = vmatpush.msrb.mxu0 %v826_v25  ;;  %v801_v36 = vld [vmem:[#allocation13 + $0x248] sm:$0xff]  ;;  %v802_v37 = vld [vmem:[#allocation13 + $0x250] sm:$0xff]  ;;  %v803_v38 = vld [vmem:[#allocation13 + $0x258] sm:$0xff] }
  0x42   : > { %878 = vmatpush.msra.mxu2 %v816_v27  ;;  %901 = vmatpush.msra.mxu3 %v817_v28  ;;  %v4045_v39 = vld [vmem:[#allocation8] ss:$0 sm:$0xff]  ;;  %v792_v40 = vld [vmem:[#allocation13 + $0x200] sm:$0xff]  ;;  %v793_v41 = vld [vmem:[#allocation13 + $0x208] sm:$0xff] }
  0x43   : > { %709 = vmatpush.msra.mxu1 %v677_v9  ;;  %924 = vmatpush.msrb.mxu0 %v818_v29  ;;  %v794_v42 = vld [vmem:[#allocation13 + $0x210] sm:$0xff]  ;;  %v795_v43 = vld [vmem:[#allocation13 + $0x218] sm:$0xff]  ;;  %v784_v44 = vld [vmem:[#allocation13 + $0x1c0] sm:$0xff] }
  0x44   : > { %3906 = vmatmul.msk.f32.gmra.mxu0 %vm632_vm1, %v626_v5  ;;  %879 = vmatpush.msra.mxu2 %v808_v31  ;;  %v785_v45 = vld [vmem:[#allocation13 + $0x1c8] sm:$0xff]  ;;  %v786_v47 = vld [vmem:[#allocation13 + $0x1d0] sm:$0xff]  ;;  %v787_v48 = vld [vmem:[#allocation13 + $0x1d8] sm:$0xff] }
  0x45   : > { %710 = vmatpush.msra.mxu1 %v676_v10  ;;  %902 = vmatpush.msra.mxu3 %v809_v32  ;;  %v4046_v50 = vld [vmem:[%s5274_s1] ss:$0 sm:$0xff]  ;;  %v777_v52 = vld [vmem:[#allocation13 + $0x188] sm:$0xff]  ;;  %v778_v53 = vld [vmem:[#allocation13 + $0x190] sm:$0xff] }
  0x46   : > { %925 = vmatpush.msrb.mxu0 %v810_v33  ;;  %880 = vmatpush.msra.mxu2 %v800_v35  ;;  %v776_v51 = vld [vmem:[#allocation13 + $0x180] sm:$0xff]  ;;  %v779_v54 = vld [vmem:[#allocation13 + $0x198] sm:$0xff]  ;;  %v769_v58 = vld [vmem:[#allocation13 + $0x148] sm:$0xff] }
  0x47   : > { %943 = vmatpush.msrb.mxu1 %v851_v14  ;;  %903 = vmatpush.msra.mxu3 %v801_v36  ;;  %v4047_v56 = vld [vmem:[%s5274_s1 + $0x1] ss:$0 sm:$0xff]  ;;  %v770_v59 = vld [vmem:[#allocation13 + $0x150] sm:$0xff]  ;;  %v771_v60 = vld [vmem:[#allocation13 + $0x158] sm:$0xff] }
  0x48   : > { %926 = vmatpush.msrb.mxu0 %v802_v37  ;;  %881 = vmatpush.msra.mxu2 %v792_v40  ;;  %v768_v57 = vld [vmem:[#allocation13 + $0x140] sm:$0xff]  ;;  %v761_v63 = vld [vmem:[#allocation13 + $0x108] sm:$0xff]  ;;  %v762_v0 = vld [vmem:[#allocation13 + $0x110] sm:$0xff] }
  0x49   : > { %944 = vmatpush.msrb.mxu1 %v843_v18  ;;  %904 = vmatpush.msra.mxu3 %v793_v41  ;;  %v760_v62 = vld [vmem:[#allocation13 + $0x100] sm:$0xff]  ;;  %v763_v2 = vld [vmem:[#allocation13 + $0x118] sm:$0xff]  ;;  %v753_v5 = vld [vmem:[#allocation13 + $0xc8] sm:$0xff] }
  0x4a   : > { %927 = vmatpush.msrb.mxu0 %v794_v42  ;;  %882 = vmatpush.msra.mxu2 %v784_v44  ;;  %v752_v3 = vld [vmem:[#allocation13 + $0xc0] sm:$0xff]  ;;  %v754_v6 = vld [vmem:[#allocation13 + $0xd0] sm:$0xff]  ;;  %v755_v8 = vld [vmem:[#allocation13 + $0xd8] sm:$0xff] }
  0x4b   : > { %945 = vmatpush.msrb.mxu1 %v835_v22  ;;  %905 = vmatpush.msra.mxu3 %v785_v45  ;;  %v744_v9 = vld [vmem:[#allocation13 + $0x80] sm:$0xff]  ;;  %v745_v10 = vld [vmem:[#allocation13 + $0x88] sm:$0xff]  ;;  %v746_v11 = vld [vmem:[#allocation13 + $0x90] sm:$0xff] }
  0x4c   : > { %928 = vmatpush.msrb.mxu0 %v786_v47  ;;  %883 = vmatpush.msra.mxu2 %v776_v51  ;;  %v747_v13 = vld [vmem:[#allocation13 + $0x98] sm:$0xff]  ;;  %v736_v14 = vld [vmem:[#allocation13 + $0x40] sm:$0xff]  ;;  %v737_v15 = vld [vmem:[#allocation13 + $0x48] sm:$0xff] }
  0x4d   : > { %946 = vmatpush.msrb.mxu1 %v827_v26  ;;  %906 = vmatpush.msra.mxu3 %v777_v52  ;;  %v738_v16 = vld [vmem:[#allocation13 + $0x50] sm:$0xff]  ;;  %v739_v18 = vld [vmem:[#allocation13 + $0x58] sm:$0xff]  ;;  %v728_v19 = vld [vmem:[#allocation13] sm:$0xff] }
  0x4e   : > { %929 = vmatpush.msrb.mxu0 %v778_v53  ;;  %884 = vmatpush.msra.mxu2 %v768_v57  ;;  %v729_v20 = vld [vmem:[#allocation13 + $0x8] sm:$0xff]  ;;  %v730_v22 = vld [vmem:[#allocation13 + $0x10] sm:$0xff]  ;;  %v731_v23 = vld [vmem:[#allocation13 + $0x18] sm:$0xff] }
  0x4f   : > { %947 = vmatpush.msrb.mxu1 %v819_v30  ;;  %907 = vmatpush.msra.mxu3 %v769_v58  ;;  %v852_v24 = vld [vmem:[#allocation13 + $0x3e0] sm:$0xff]  ;;  %v853_v25 = vld [vmem:[#allocation13 + $0x3e8] sm:$0xff]  ;;  %v854_v26 = vld [vmem:[#allocation13 + $0x3f0] sm:$0xff] }
  0x50   : > { %930 = vmatpush.msrb.mxu0 %v770_v59  ;;  %885 = vmatpush.msra.mxu2 %v760_v62  ;;  %v855_v27 = vld [vmem:[#allocation13 + $0x3f8] sm:$0xff]  ;;  %v844_v28 = vld [vmem:[#allocation13 + $0x3a0] sm:$0xff]  ;;  %v845_v29 = vld [vmem:[#allocation13 + $0x3a8] sm:$0xff] }
  0x51   : > { %948 = vmatpush.msrb.mxu1 %v811_v34  ;;  %908 = vmatpush.msra.mxu3 %v761_v63  ;;  %v846_v30 = vld [vmem:[#allocation13 + $0x3b0] sm:$0xff]  ;;  %v847_v31 = vld [vmem:[#allocation13 + $0x3b8] sm:$0xff]  ;;  %v836_v32 = vld [vmem:[#allocation13 + $0x360] sm:$0xff] }
  0x52   : > { %931 = vmatpush.msrb.mxu0 %v762_v0  ;;  %886 = vmatpush.msra.mxu2 %v752_v3  ;;  %v837_v33 = vld [vmem:[#allocation13 + $0x368] sm:$0xff]  ;;  %v838_v34 = vld [vmem:[#allocation13 + $0x370] sm:$0xff]  ;;  %v839_v35 = vld [vmem:[#allocation13 + $0x378] sm:$0xff] }
  0x53   : > { %949 = vmatpush.msrb.mxu1 %v803_v38  ;;  %909 = vmatpush.msra.mxu3 %v753_v5  ;;  %v828_v36 = vld [vmem:[#allocation13 + $0x320] sm:$0xff]  ;;  %v829_v37 = vld [vmem:[#allocation13 + $0x328] sm:$0xff]  ;;  %v830_v38 = vld [vmem:[#allocation13 + $0x330] sm:$0xff] }
  0x54   : > { %932 = vmatpush.msrb.mxu0 %v754_v6  ;;  %887 = vmatpush.msra.mxu2 %v744_v9  ;;  %v820_v40 = vld [vmem:[#allocation13 + $0x2e0] sm:$0xff]  ;;  %v821_v41 = vld [vmem:[#allocation13 + $0x2e8] sm:$0xff]  ;;  %v822_v42 = vld [vmem:[#allocation13 + $0x2f0] sm:$0xff] }
  0x55   : > { %950 = vmatpush.msrb.mxu1 %v795_v43  ;;  %910 = vmatpush.msra.mxu3 %v745_v10  ;;  %v823_v43 = vld [vmem:[#allocation13 + $0x2f8] sm:$0xff]  ;;  %v812_v44 = vld [vmem:[#allocation13 + $0x2a0] sm:$0xff]  ;;  %v813_v45 = vld [vmem:[#allocation13 + $0x2a8] sm:$0xff] }
  0x56   : > { %933 = vmatpush.msrb.mxu0 %v746_v11  ;;  %888 = vmatpush.msra.mxu2 %v736_v14  ;;  %v815_v47 = vld [vmem:[#allocation13 + $0x2b8] sm:$0xff]  ;;  %v796_v52 = vld [vmem:[#allocation13 + $0x220] sm:$0xff]  ;;  %v797_v53 = vld [vmem:[#allocation13 + $0x228] sm:$0xff] }
  0x57   : > { %951 = vmatpush.msrb.mxu1 %v787_v48  ;;  %911 = vmatpush.msra.mxu3 %v737_v15  ;;  %v804_v48 = vld [vmem:[#allocation13 + $0x260] sm:$0xff]  ;;  %v807_v51 = vld [vmem:[#allocation13 + $0x278] sm:$0xff]  ;;  %v789_v57 = vld [vmem:[#allocation13 + $0x1e8] sm:$0xff] }
  0x58   : > { %934 = vmatpush.msrb.mxu0 %v738_v16  ;;  %889 = vmatpush.msra.mxu2 %v728_v19  ;;  %v790_v58 = vld [vmem:[#allocation13 + $0x1f0] sm:$0xff]  ;;  %v791_v59 = vld [vmem:[#allocation13 + $0x1f8] sm:$0xff]  ;;  %v772_v0 = vld [vmem:[#allocation13 + $0x160] sm:$0xff] }
  0x59   : > { %952 = vmatpush.msrb.mxu1 %v779_v54  ;;  %912 = vmatpush.msra.mxu3 %v729_v20  ;;  %v798_v54 = vld [vmem:[#allocation13 + $0x230] sm:$0xff]  ;;  %v783_v63 = vld [vmem:[#allocation13 + $0x1b8] sm:$0xff]  ;;  %v765_v5 = vld [vmem:[#allocation13 + $0x128] sm:$0xff] }
  0x5a   : > { %935 = vmatpush.msrb.mxu0 %v730_v22  ;;  %966 = vmatpush.msrb.mxu2 %v852_v24  ;;  %v782_v62 = vld [vmem:[#allocation13 + $0x1b0] sm:$0xff]  ;;  %v775_v3 = vld [vmem:[#allocation13 + $0x178] sm:$0xff]  ;;  %v757_v9 = vld [vmem:[#allocation13 + $0xe8] sm:$0xff] }
  0x5b   : > { %953 = vmatpush.msrb.mxu1 %v771_v60  ;;  %989 = vmatpush.msrb.mxu3 %v853_v25  ;;  %v780_v60 = vld [vmem:[#allocation13 + $0x1a0] sm:$0xff]  ;;  %v766_v6 = vld [vmem:[#allocation13 + $0x130] sm:$0xff]  ;;  %v759_v11 = vld [vmem:[#allocation13 + $0xf8] sm:$0xff] }
  0x5c   : > { %1012 = vmatpush.msra.mxu0 %v854_v26  ;;  %967 = vmatpush.msrb.mxu2 %v844_v28  ;;  %v758_v10 = vld [vmem:[#allocation13 + $0xf0] sm:$0xff]  ;;  %v751_v15 = vld [vmem:[#allocation13 + $0xb8] sm:$0xff]  ;;  %v740_v16 = vld [vmem:[#allocation13 + $0x60] sm:$0xff] }
  0x5d   : > { %954 = vmatpush.msrb.mxu1 %v763_v2  ;;  %990 = vmatpush.msrb.mxu3 %v845_v29  ;;  %v774_v2 = vld [vmem:[#allocation13 + $0x170] sm:$0xff]  ;;  %v743_v19 = vld [vmem:[#allocation13 + $0x78] sm:$0xff]  ;;  %v732_v20 = vld [vmem:[#allocation13 + $0x20] sm:$0xff] }
  0x5e   : > { %1013 = vmatpush.msra.mxu0 %v846_v30  ;;  %968 = vmatpush.msrb.mxu2 %v836_v32  ;;  %v750_v14 = vld [vmem:[#allocation13 + $0xb0] sm:$0xff]  ;;  %v4048_v24 = vld [vmem:[#allocation11] ss:$0 sm:$0xff]  ;;  %v4050_v29 = vld [vmem:[%s5275_s2 + $0x1] ss:$0 sm:$0xff] }
  0x5f   : > { %955 = vmatpush.msrb.mxu1 %v755_v8  ;;  %991 = vmatpush.msrb.mxu3 %v837_v33  ;;  %v756_v8 = vld [vmem:[#allocation13 + $0xe0] sm:$0xff]  ;;  %v734_v22 = vld [vmem:[#allocation13 + $0x30] sm:$0xff] }
  0x60   : > { %1014 = vmatpush.msra.mxu0 %v838_v34  ;;  %969 = vmatpush.msrb.mxu2 %v828_v36 }
  0x61   : > { %956 = vmatpush.msrb.mxu1 %v747_v13  ;;  %992 = vmatpush.msrb.mxu3 %v829_v37  ;;  %v749_v13 = vld [vmem:[#allocation13 + $0xa8] sm:$0xff] }
  0x62   : > { %1015 = vmatpush.msra.mxu0 %v830_v38  ;;  %970 = vmatpush.msrb.mxu2 %v820_v40 }
  0x63   : > { %957 = vmatpush.msrb.mxu1 %v739_v18  ;;  %993 = vmatpush.msrb.mxu3 %v821_v41  ;;  %v742_v18 = vld [vmem:[#allocation13 + $0x70] sm:$0xff] }
  0x64   : > { %1016 = vmatpush.msra.mxu0 %v822_v42  ;;  %971 = vmatpush.msrb.mxu2 %v812_v44 }
  0x65   : > { %958 = vmatpush.msrb.mxu1 %v731_v23  ;;  %994 = vmatpush.msrb.mxu3 %v813_v45  ;;  %v735_v23 = vld [vmem:[#allocation13 + $0x38] sm:$0xff] }
  0x66   : > { %972 = vmatpush.msrb.mxu2 %v804_v48 }
  0x68   : > { %973 = vmatpush.msrb.mxu2 %v796_v52 }
  0xb9   : > { %v660_v46 = vpop.f32.mrf.mxu0 }
  0xba   : > { %v661_v49 = vadd.f32 %v4045_v39, %v660_v46  ;;  %v814_v46 = vld [vmem:[#allocation13 + $0x2b0] sm:$0xff] }
  0xbb   : > { %1017 = vmatpush.msra.mxu0 %v814_v46 }
  0xbc   : > { %v666_v55 = vmax.f32 %v661_v49, 0.0  ;;  %v805_v49 = vld [vmem:[#allocation13 + $0x268] sm:$0xff] }
  0xbd   : > { %995 = vmatpush.msrb.mxu3 %v805_v49 }
  0xbe   : > { %v670_v61 = vmul.f32 %v4046_v50, %v666_v55  ;;  %v799_v55 = vld [vmem:[#allocation13 + $0x238] sm:$0xff] }
  0xbf   : > { %996 = vmatpush.msrb.mxu3 %v797_v53 }
  0xc0   : > { %v674_v1 = vadd.f32 %v4047_v56, %v670_v61  ;;  %v781_v61 = vld [vmem:[#allocation13 + $0x1a8] sm:$0xff] }
  0xc1   : > { %v663_v4 = vpop.f32.mrf.mxu0  ;;  %997 = vmatpush.msrb.mxu3 %v789_v57 }
  0xc2   : > { %v664_v7 = vadd.f32 %v4045_v39, %v663_v4  ;;  %3907 = vmatmul.msk.f32.vlgmr.msra.gmra.mxu1 %vm688_vm2, %v674_v1  ;;  %v831_v39 = vld [vmem:[#allocation13 + $0x338] sm:$0xff]  ;;  %v773_v1 = vld [vmem:[#allocation13 + $0x168] sm:$0xff]  ;;  %v764_v4 = vld [vmem:[#allocation13 + $0x120] sm:$0xff] }
  0xc3   : > { %1035 = vmatpush.msra.mxu1 %v855_v27  ;;  %998 = vmatpush.msrb.mxu3 %v781_v61  ;;  %v4049_v27 = vld [vmem:[%s5275_s2] ss:$0 sm:$0xff] }
  0xc4   : > { %v667_v12 = vmax.f32 %v664_v7, 0.0  ;;  %v767_v7 = vld [vmem:[#allocation13 + $0x138] sm:$0xff] }
  0xc5   : > { %1036 = vmatpush.msra.mxu1 %v847_v31  ;;  %999 = vmatpush.msrb.mxu3 %v773_v1 }
  0xc6   : > { %v671_v17 = vmul.f32 %v4046_v50, %v667_v12  ;;  %v806_v50 = vld [vmem:[#allocation13 + $0x270] sm:$0xff]  ;;  %v748_v12 = vld [vmem:[#allocation13 + $0xa0] sm:$0xff] }
  0xc7   : > { %1037 = vmatpush.msra.mxu1 %v839_v35  ;;  %1018 = vmatpush.msra.mxu0 %v806_v50 }
  0xc8   : > { %v675_v21 = vadd.f32 %v4047_v56, %v671_v17  ;;  %v788_v56 = vld [vmem:[#allocation13 + $0x1e0] sm:$0xff]  ;;  %1000 = vmatpush.msrb.mxu3 %v765_v5  ;;  %v741_v17 = vld [vmem:[#allocation13 + $0x68] sm:$0xff] }
  0xc9   : > { %1038 = vmatpush.msra.mxu1 %v831_v39  ;;  %1019 = vmatpush.msra.mxu0 %v798_v54  ;;  %v4534_v39 = vld [vmem:[%s5281_s8] ss:$4 sm:$0xff] }
  0xca   : > { %3908 = vmatmul.msk.f32.gmra.mxu1 %vm688_vm2, %v675_v21  ;;  %974 = vmatpush.msrb.mxu2 %v788_v56  ;;  %v733_v21 = vld [vmem:[#allocation13 + $0x28] sm:$0xff]  ;;  %v860_v40 = vperm.slane %v4534_v39, 2  ;;  %v859_v48 = vperm.slane %v4534_v39, 1  ;;  %v865_v5 = vperm.slane %v4534_v39, 7 }
  0xcb   : > { %1039 = vmatpush.msra.mxu1 %v823_v43  ;;  %1020 = vmatpush.msra.mxu0 %v790_v58 }
  0xcc   : > { %975 = vmatpush.msrb.mxu2 %v780_v60  ;;  %1001 = vmatpush.msrb.mxu3 %v757_v9 }
  0xcd   : > { %1040 = vmatpush.msra.mxu1 %v815_v47  ;;  %1021 = vmatpush.msra.mxu0 %v782_v62  ;;  %v858_v47 = vperm.slane %v4534_v39, 0 }
  0xce   : > { %976 = vmatpush.msrb.mxu2 %v772_v0  ;;  %1002 = vmatpush.msrb.mxu3 %v749_v13 }
  0xcf   : > { %1041 = vmatpush.msra.mxu1 %v807_v51  ;;  %1022 = vmatpush.msra.mxu0 %v774_v2  ;;  %v861_v51 = vperm.slane %v4534_v39, 3 }
  0xd0   : > { %977 = vmatpush.msrb.mxu2 %v764_v4  ;;  %1003 = vmatpush.msrb.mxu3 %v741_v17  ;;  %v864_v4 = vperm.slane %v4534_v39, 6 }
  0xd1   : > { %1042 = vmatpush.msra.mxu1 %v799_v55  ;;  %1023 = vmatpush.msra.mxu0 %v766_v6 }
  0xd2   : > { %978 = vmatpush.msrb.mxu2 %v756_v8  ;;  %1004 = vmatpush.msrb.mxu3 %v733_v21 }
  0xd3   : > { %1043 = vmatpush.msra.mxu1 %v791_v59  ;;  %1024 = vmatpush.msra.mxu0 %v758_v10 }
  0xd4   : > { %979 = vmatpush.msrb.mxu2 %v748_v12 }
  0xd5   : > { %1044 = vmatpush.msra.mxu1 %v783_v63  ;;  %1025 = vmatpush.msra.mxu0 %v750_v14  ;;  %v4333_v63 = vmov 1.0  }
  0xd6   : > { %980 = vmatpush.msrb.mxu2 %v740_v16  ;;  %v863_v16 = vperm.slane %v4534_v39, 5 }
  0xd7   : > { %1045 = vmatpush.msra.mxu1 %v775_v3  ;;  %1026 = vmatpush.msra.mxu0 %v742_v18 }
  0xd8   : > { %981 = vmatpush.msrb.mxu2 %v732_v20 }
  0xd9   : > { %1046 = vmatpush.msra.mxu1 %v767_v7  ;;  %1027 = vmatpush.msra.mxu0 %v734_v22 }
  0xdb   : > { %1047 = vmatpush.msra.mxu1 %v759_v11 }
  0xdd   : > { %1048 = vmatpush.msra.mxu1 %v751_v15  ;;  %v862_v15 = vperm.slane %v4534_v39, 4 }
  0xdf   : > { %1049 = vmatpush.msra.mxu1 %v743_v19 }
  0xe1   : > { %1050 = vmatpush.msra.mxu1 %v735_v23 }
 0x13f   : > { %v712_v25 = vpop.f32.mrf.mxu1 }
 0x140   : > { %v713_v26 = vadd.f32 %v4048_v24, %v712_v25 }
 0x142   : > { %v718_v28 = vmax.f32 %v713_v26, 0.0 }
 0x144   : > { %v722_v30 = vmul.f32 %v4049_v27, %v718_v28 }
 0x146   : > { %v726_v31 = vadd.f32 %v4050_v29, %v722_v30 }
 0x147   : > { %v715_v32 = vpop.f32.mrf.mxu1 }
 0x148   : > { %v716_v33 = vadd.f32 %v4048_v24, %v715_v32  ;;  %890 = vmatmul.f32.vlgmr.msra.gmra.mxu2 %v726_v31  ;;  %913 = vmatmul.f32.vlgmr.msra.gmra.mxu3 %v726_v31 }
 0x149   : > { %936 = vmatmul.f32.vlgmr.msrb.gmra.mxu0 %v726_v31  ;;  %959 = vmatmul.f32.vlgmr.msrb.gmra.mxu1 %v726_v31 }
 0x14a   : > { %v719_v34 = vmax.f32 %v716_v33, 0.0 }
 0x14c   : > { %v723_v35 = vmul.f32 %v4049_v27, %v719_v34 }
 0x14e   : > { %v727_v36 = vadd.f32 %v4050_v29, %v723_v35 }
 0x150   : > { %893 = vmatmul.f32.gmra.mxu2 %v727_v36  ;;  %916 = vmatmul.f32.gmra.mxu3 %v727_v36 }
 0x151   : > { %939 = vmatmul.f32.gmra.mxu0 %v727_v36  ;;  %962 = vmatmul.f32.gmra.mxu1 %v727_v36 }
 0x158   : > { %982 = vmatmul.f32.vlgmr.msrb.gmra.mxu2 %v726_v31  ;;  %1005 = vmatmul.f32.vlgmr.msrb.gmra.mxu3 %v726_v31 }
 0x159   : > { %1028 = vmatmul.f32.vlgmr.msra.gmra.mxu0 %v726_v31  ;;  %1051 = vmatmul.f32.vlgmr.msra.gmra.mxu1 %v726_v31 }
 0x160   : > { %985 = vmatmul.f32.gmra.mxu2 %v727_v36  ;;  %1008 = vmatmul.f32.gmra.mxu3 %v727_v36 }
 0x161   : > { %1031 = vmatmul.f32.gmra.mxu0 %v727_v36  ;;  %1054 = vmatmul.f32.gmra.mxu1 %v727_v36 }
 0x1c6   : > { %v937_v37 = vpop.f32.mrf.mxu0  ;;  %v960_v38 = vpop.f32.mrf.mxu1 }
 0x1c7   : > { %v938_v45 = vadd.f32 %v937_v37, %v860_v40  ;;  %v961_v0 = vadd.f32 %v960_v38, %v861_v51 }
 0x1c9   : > { %v4541_v50 = vmax.f32 %v938_v45, 0.0  ;;  %v4568_v8 = vmax.f32 %v961_v0, 0.0 }
 0x1cb   : > { %v891_v41 = vpop.f32.mrf.mxu2  ;;  %v914_v42 = vpop.f32.mrf.mxu3  ;;  %v1240_v29 = vmul.f32 %v4541_v50, %v4541_v50  ;;  %v1241_v30 = vmul.f32 %v4568_v8, %v4568_v8 }
 0x1cc   : > { %v892_v54 = vadd.f32 %v891_v41, %v858_v47  ;;  %v915_v55 = vadd.f32 %v914_v42, %v859_v48 }
 0x1ce   : > { %v940_v43 = vpop.f32.mrf.mxu0  ;;  %v963_v44 = vpop.f32.mrf.mxu1  ;;  %v4552_v1 = vmax.f32 %v892_v54, 0.0  ;;  %v4554_v2 = vmax.f32 %v915_v55, 0.0 }
 0x1cf   : > { %v941_v46 = vadd.f32 %v940_v43, %v860_v40  ;;  %v964_v58 = vadd.f32 %v963_v44, %v861_v51 }
 0x1d0   : > { %v1238_v40 = vmul.f32 %v4552_v1, %v4552_v1  ;;  %v1239_v41 = vmul.f32 %v4554_v2, %v4554_v2 }
 0x1d1   : > { %v4539_v49 = vmax.f32 %v941_v46, 0.0  ;;  %v4558_v3 = vmax.f32 %v964_v58, 0.0 }
 0x1d3   : > { %1132 = vmatpush.msrb.mxu0 %v4539_v49  ;;  %v894_v52 = vpop.f32.mrf.mxu2  ;;  %v917_v53 = vpop.f32.mrf.mxu3  ;;  %v1248_v23 = vmul.f32 %v4539_v49, %v4539_v49  ;;  %v1249_v24 = vmul.f32 %v4558_v3, %v4558_v3 }
 0x1d4   : > { %v895_v56 = vadd.f32 %v894_v52, %v858_v47  ;;  %v918_v57 = vadd.f32 %v917_v53, %v859_v48 }
 0x1d5   : > { %1133 = vmatpush.msrb.mxu0 %v4541_v50 }
 0x1d6   : > { %v4546_v59 = vmax.f32 %v895_v56, 0.0  ;;  %v4548_v60 = vmax.f32 %v918_v57, 0.0  ;;  %v1029_v61 = vpop.f32.mrf.mxu0  ;;  %v1052_v62 = vpop.f32.mrf.mxu1  ;;  %3911 = vmatmul.msk.f32.vlgmr.msrb.gmra.mxu0 %vm1074_vm3, %v4333_v63 }
 0x1d7   : > { %v1030_v11 = vadd.f32 %v1029_v61, %v864_v4  ;;  %v1053_v12 = vadd.f32 %v1052_v62, %v865_v5 }
 0x1d8   : > { %1092 = vmatpush.msra.mxu2 %v4546_v59  ;;  %1112 = vmatpush.msra.mxu3 %v4548_v60  ;;  %v1246_v37 = vmul.f32 %v4546_v59, %v4546_v59  ;;  %v1247_v38 = vmul.f32 %v4548_v60, %v4548_v60 }
 0x1d9   : > { %v4578_v19 = vmax.f32 %v1030_v11, 0.0  ;;  %v4580_v20 = vmax.f32 %v1053_v12, 0.0 }
 0x1da   : > { %1093 = vmatpush.msra.mxu2 %v4552_v1  ;;  %1113 = vmatpush.msra.mxu3 %v4554_v2 }
 0x1db   : > { %v983_v6 = vpop.f32.mrf.mxu2  ;;  %v1006_v7 = vpop.f32.mrf.mxu3  ;;  %3909 = vmatmul.msk.f32.vlgmr.msra.gmra.mxu2 %vm1074_vm3, %v4333_v63  ;;  %3910 = vmatmul.msk.f32.vlgmr.msra.gmra.mxu3 %vm1074_vm3, %v4333_v63  ;;  %v1244_v36 = vmul.f32 %v4578_v19, %v4578_v19  ;;  %v1245_v42 = vmul.f32 %v4580_v20, %v4580_v20 }
 0x1dc   : > { %1152 = vmatpush.msrb.mxu2 %v4558_v3  ;;  %v984_v27 = vadd.f32 %v983_v6, %v862_v15  ;;  %v1007_v28 = vadd.f32 %v1006_v7, %v863_v16  ;;  %v4334_v6 = vmov (%p618_p7), 0.0   ;;  %v4335_v7 = vmov (%p618_p7), -inf  }
 0x1dd   : > { %1416 = vst [vmem:[#allocation2] sm:$0xff] (%p618_p7), %v4334_v6 }
 0x1de   : > { %v1032_v9 = vpop.f32.mrf.mxu0  ;;  %v1055_v10 = vpop.f32.mrf.mxu1  ;;  %1153 = vmatpush.msrb.mxu2 %v4568_v8  ;;  %v4604_v34 = vmax.f32 %v984_v27, 0.0  ;;  %v4606_v35 = vmax.f32 %v1007_v28, 0.0  ;;  %1417 = vst [vmem:[#allocation3] sm:$0xff] (%p618_p7), %v4334_v6 }
 0x1df   : > { %v1033_v13 = vadd.f32 %v1032_v9, %v864_v4  ;;  %v1056_v14 = vadd.f32 %v1055_v10, %v865_v5  ;;  %1418 = vst [vmem:[#allocation4] sm:$0xff] (%p618_p7), %v4335_v7  ;;  %v4336_v9 = vmov (%p618_p7), inf  }
 0x1e0   : > { %v1242_v45 = vmul.f32 %v4604_v34, %v4604_v34  ;;  %v1243_v46 = vmul.f32 %v4606_v35, %v4606_v35  ;;  %1419 = vst [vmem:[#allocation4 + $0x8] sm:$0xff] (%p618_p7), %v4335_v7 }
 0x1e1   : > { %v4574_v17 = vmax.f32 %v1033_v13, 0.0  ;;  %v4576_v18 = vmax.f32 %v1056_v14, 0.0  ;;  %1420 = vst [vmem:[#allocation5 + $0x8] sm:$0xff] (%p618_p7), %v4336_v9 }
 0x1e2   : > { %1421 = vst [vmem:[#allocation5] sm:$0xff] (%p618_p7), %v4336_v9 }
 0x1e3   : > { %1212 = vmatpush.msrb.mxu1 %v4574_v17  ;;  %1232 = vmatpush.msra.mxu2 %v4576_v18  ;;  %v986_v21 = vpop.f32.mrf.mxu2  ;;  %v1009_v22 = vpop.f32.mrf.mxu3  ;;  %v1252_v33 = vmul.f32 %v4574_v17, %v4574_v17  ;;  %v1253_v39 = vmul.f32 %v4576_v18, %v4576_v18 }
 0x1e4   : > { %v987_v25 = vadd.f32 %v986_v21, %v862_v15  ;;  %v1010_v26 = vadd.f32 %v1009_v22, %v863_v16  ;;  %3912 = vmatmul.msk.f32.vlgmr.msrb.gmra.mxu2 %vm1074_vm3, %v4333_v63 }
 0x1e5   : > { %1213 = vmatpush.msrb.mxu1 %v4578_v19  ;;  %1233 = vmatpush.msra.mxu2 %v4580_v20 }
 0x1e6   : > { %v4596_v31 = vmax.f32 %v987_v25, 0.0  ;;  %v4598_v32 = vmax.f32 %v1010_v26, 0.0  ;;  %3915 = vmatmul.msk.f32.vlgmr.msrb.gmra.mxu1 %vm1074_vm3, %v4333_v63 }
 0x1e7   : > { %1308 = vmatpush.msra.mxu1 %v1248_v23  ;;  %1328 = vmatpush.msrb.mxu2 %v1249_v24 }
 0x1e8   : > { %1172 = vmatpush.msrb.mxu3 %v4596_v31  ;;  %1192 = vmatpush.msra.mxu0 %v4598_v32  ;;  %v1250_v43 = vmul.f32 %v4596_v31, %v4596_v31  ;;  %v1251_v44 = vmul.f32 %v4598_v32, %v4598_v32 }
 0x1e9   : > { %1309 = vmatpush.msra.mxu1 %v1240_v29  ;;  %1329 = vmatpush.msrb.mxu2 %v1241_v30 }
 0x1ea   : > { %1173 = vmatpush.msrb.mxu3 %v4604_v34  ;;  %1193 = vmatpush.msra.mxu0 %v4606_v35 }
 0x1eb   : > { %1388 = vmatpush.msrb.mxu1 %v1252_v33  ;;  %3913 = vmatmul.msk.f32.vlgmr.msrb.gmra.mxu3 %vm1074_vm3, %v4333_v63 }
 0x1ec   : > { %3916 = vmatmul.msk.f32.vlgmr.msra.gmra.mxu2 %vm1074_vm3, %v4333_v63  ;;  %1268 = vmatpush.msra.mxu3 %v1246_v37 }
 0x1ed   : > { %1389 = vmatpush.msrb.mxu1 %v1244_v36  ;;  %1288 = vmatpush.msrb.mxu0 %v1247_v38 }
 0x1ee   : > { %1408 = vmatpush.msra.mxu2 %v1253_v39  ;;  %1269 = vmatpush.msra.mxu3 %v1238_v40 }
 0x1ef   : > { %1289 = vmatpush.msrb.mxu0 %v1239_v41  ;;  %3919 = vmatmul.msk.f32.vlgmr.msra.gmra.mxu1 %vm1074_vm3, %v4333_v63 }
 0x1f0   : > { %1409 = vmatpush.msra.mxu2 %v1245_v42  ;;  %3914 = vmatmul.msk.f32.vlgmr.msra.gmra.mxu0 %vm1074_vm3, %v4333_v63 }
 0x1f1   : > { %1348 = vmatpush.msrb.mxu3 %v1250_v43  ;;  %1368 = vmatpush.msra.mxu0 %v1251_v44 }
 0x1f3   : > { %1349 = vmatpush.msrb.mxu3 %v1242_v45  ;;  %1369 = vmatpush.msra.mxu0 %v1243_v46 }
 0x1f4   : > { %3920 = vmatmul.msk.f32.vlgmr.msrb.gmra.mxu2 %vm1074_vm3, %v4333_v63  ;;  %3917 = vmatmul.msk.f32.vlgmr.msra.gmra.mxu3 %vm1074_vm3, %v4333_v63 }
 0x1f7   : > { %3923 = vmatmul.msk.f32.vlgmr.msrb.gmra.mxu1 %vm1074_vm3, %v4333_v63 }
 0x1f8   : > { %3918 = vmatmul.msk.f32.vlgmr.msrb.gmra.mxu0 %vm1074_vm3, %v4333_v63 }
 0x1fc   : > { %3924 = vmatmul.msk.f32.vlgmr.msra.gmra.mxu2 %vm1074_vm3, %v4333_v63  ;;  %3921 = vmatmul.msk.f32.vlgmr.msrb.gmra.mxu3 %vm1074_vm3, %v4333_v63 }
 0x200   : > { %3922 = vmatmul.msk.f32.vlgmr.msra.gmra.mxu0 %vm1074_vm3, %v4333_v63 }
 0x253   : > { %v4656_v47 = vpop.f32.mrf.mxu0 }
 0x25e   : > { %v4658_v48 = vpop.f32.mrf.mxu2  ;;  %v4660_v51 = vpop.f32.mrf.mxu3 }
 0x263   : > { %v4662_v52 = vpop.f32.mrf.mxu1 }
 0x267   : > { %v4664_v53 = vpop.f32.mrf.mxu2 }
 0x26c   : > { %v4670_v56 = vpop.f32.mrf.mxu1 }
 0x26d   : > { %v4666_v54 = vpop.f32.mrf.mxu0 }
 0x26e   : > { %v4672_v57 = vpop.f32.mrf.mxu3 }
 0x26f   : > { %v4668_v55 = vpop.f32.mrf.mxu2 }
 0x274   : > { %v4678_v62 = vpop.f32.mrf.mxu1 }
 0x275   : > { %v4674_v58 = vpop.f32.mrf.mxu0 }
 0x277   : > { %v4676_v61 = vpop.f32.mrf.mxu2  ;;  %v4680_v63 = vpop.f32.mrf.mxu3 }
 0x278   : > { %5305 = vst [vmem:[#allocation22_spill] sm:$0xff] %v4680_v63 }
 0x27c   : > { %1415 = sbr.rel (!%p618_p7) target bundleno = 641 (0x281), region = 112 }
 0x27d   : > { %v4682_v0 = vpop.f32.mrf.mxu0 }
 0x27f   : > { %v4684_v4 = vpop.f32.mrf.mxu2  ;;  %v4686_v5 = vpop.f32.mrf.mxu3 }
 0x280   : > { %5306 = vst [vmem:[#allocation23_spill] sm:$0xff] %v4684_v4 }
 0x281 PF: > { %v1480_v10 = vmax.f32 %v4552_v1, %v4546_v59  ;;  %v1487_v11 = vmax.f32 %v4554_v2, %v4548_v60  ;;  %v1494_v12 = vmax.f32 %v4541_v50, %v4539_v49  ;;  %v1501_v13 = vmax.f32 %v4568_v8, %v4558_v3  ;;  %s5331_s20 = sld [smem:[#allocation29_spill]] (%p622_p8) }
 0x282   : > { %v1508_v14 = vmax.f32 %v4604_v34, %v4596_v31  ;;  %v1515_v15 = vmax.f32 %v4606_v35, %v4598_v32  ;;  %v1522_v22 = vmax.f32 %v4578_v19, %v4574_v17  ;;  %v1529_v23 = vmax.f32 %v4580_v20, %v4576_v18 }
 0x283   : > { %v1481_v16 = vrot.slane %v1480_v10, 4  ;;  %v1488_v21 = vrot.slane %v1487_v11, 4  ;;  %v1495_v24 = vrot.slane %v1494_v12, 4  ;;  %v1502_v25 = vrot.slane %v1501_v13, 4 }
 0x284   : > { %v1509_v26 = vrot.slane %v1508_v14, 4  ;;  %v1516_v27 = vrot.slane %v1515_v15, 4  ;;  %v1523_v30 = vrot.slane %v1522_v22, 4  ;;  %v1530_v33 = vrot.slane %v1529_v23, 4 }
 0x285   : > { %v1482_v28 = vmax.f32 %v1480_v10, %v1481_v16  ;;  %v1489_v29 = vmax.f32 %v1487_v11, %v1488_v21  ;;  %vm1442_vm4 = vcmask 1041408   ;;  %v1496_v36 = vmax.f32 %v1494_v12, %v1495_v24 }
 0x286   : > { %v1503_v37 = vmax.f32 %v1501_v13, %v1502_v25  ;;  %v1510_v38 = vmax.f32 %v1508_v14, %v1509_v26  ;;  %v1517_v39 = vmax.f32 %v1515_v15, %v1516_v27  ;;  %vm1448_vm5 = vcmask 1045508  }
 0x287   : > { %v1483_v40 = vrot.slane %v1482_v28, 2  ;;  %v1490_v41 = vrot.slane %v1489_v29, 2  ;;  %v1524_v42 = vmax.f32 %v1522_v22, %v1523_v30  ;;  %v1531_v43 = vmax.f32 %v1529_v23, %v1530_v33 }
 0x288   : > { %v1497_v44 = vrot.slane %v1496_v36, 2  ;;  %v1504_v45 = vrot.slane %v1503_v37, 2  ;;  %v1511_v46 = vrot.slane %v1510_v38, 2  ;;  %v1518_v6 = vrot.slane %v1517_v39, 2 }
 0x289   : > { %v1484_v7 = vmax.f32 %v1482_v28, %v1483_v40  ;;  %v1491_v9 = vmax.f32 %v1489_v29, %v1490_v41  ;;  %v1525_v10 = vrot.slane %v1524_v42, 2  ;;  %v1532_v11 = vrot.slane %v1531_v43, 2 }
 0x28a   : > { %v1498_v16 = vmax.f32 %v1496_v36, %v1497_v44  ;;  %v1505_v21 = vmax.f32 %v1503_v37, %v1504_v45  ;;  %v1512_v63 = vmax.f32 %v1510_v38, %v1511_v46  ;;  %v1519_v12 = vmax.f32 %v1517_v39, %v1518_v6  ;;  %v1596_v46 = vld [vmem:[#allocation4] sm:$0xff] }
 0x28b   : > { %v1485_v13 = vrot.slane %v1484_v7, 1  ;;  %v1492_v14 = vrot.slane %v1491_v9, 1  ;;  %v1526_v15 = vmax.f32 %v1524_v42, %v1525_v10  ;;  %v1533_v24 = vmax.f32 %v1531_v43, %v1532_v11  ;;  %v4712_v11 = vld [vmem:[#allocation4 + $0x8] sm:$0xff] }
 0x28c   : > { %v1499_v25 = vrot.slane %v1498_v16, 1  ;;  %v1506_v26 = vrot.slane %v1505_v21, 1  ;;  %v1513_v22 = vrot.slane %v1512_v63, 1  ;;  %v1520_v23 = vrot.slane %v1519_v12, 1 }
 0x28d   : > { %v1486_v27 = vmax.f32 %v1484_v7, %v1485_v13  ;;  %v1493_v30 = vmax.f32 %v1491_v9, %v1492_v14  ;;  %v1527_v33 = vrot.slane %v1526_v15, 1  ;;  %v1534_v4 = vrot.slane %v1533_v24, 1 }
 0x28e   : > { %v1500_v28 = vmax.f32 %v1498_v16, %v1499_v25  ;;  %v1507_v29 = vmax.f32 %v1505_v21, %v1506_v26  ;;  %v1514_v40 = vmax.f32 %v1512_v63, %v1513_v22  ;;  %v1521_v41 = vmax.f32 %v1519_v12, %v1520_v23 }
 0x28f   : > { %v1606_v36 = vrot.slane %v1493_v30, 6  ;;  %v1528_v37 = vmax.f32 %v1526_v15, %v1527_v33  ;;  %v1535_v38 = vmax.f32 %v1533_v24, %v1534_v4  ;;  %v1536_v39 = vmin.f32 %v4552_v1, %v4546_v59 }
 0x290   : > { %v1607_v42 = vrot.slane %v1500_v28, 4  ;;  %v1608_v43 = vrot.slane %v1507_v29, 2  ;;  %v1609_v44 = vrot.slane %v1521_v41, 6  ;;  %v1543_v45 = vmin.f32 %v4554_v2, %v4548_v60 }
 0x291   : > { %v1612_v6 = vsel %vm1442_vm4, %v1486_v27, %v1606_v36  ;;  %v1610_v7 = vrot.slane %v1528_v37, 4  ;;  %v1611_v9 = vrot.slane %v1535_v38, 2  ;;  %v1537_v10 = vrot.slane %v1536_v39, 4 }
 0x292   : > { %v1613_v63 = vsel %vm1448_vm5, %v1607_v42, %v1608_v43  ;;  %v1615_v4 = vsel %vm1442_vm4, %v1514_v40, %v1609_v44  ;;  %v1544_v16 = vrot.slane %v1543_v45, 4  ;;  %v1550_v59 = vmin.f32 %v4541_v50, %v4539_v49 }
 0x293   : > { %v1614_v1 = vsel %vm639_vm0, %v1612_v6, %v1613_v63  ;;  %v1616_v60 = vsel %vm1448_vm5, %v1610_v7, %v1611_v9  ;;  %v1538_v2 = vmin.f32 %v1536_v39, %v1537_v10  ;;  %v1557_v21 = vmin.f32 %v4568_v8, %v4558_v3 }
 0x294   : > { %v1620_v12 = vmax.f32 %v1596_v46, %v1614_v1  ;;  %v1617_v13 = vsel %vm639_vm0, %v1615_v4, %v1616_v60  ;;  %v1545_v14 = vmin.f32 %v1543_v45, %v1544_v16  ;;  %v1551_v15 = vrot.slane %v1550_v59, 4 }
 0x295   : > { %v1621_v24 = vmax.f32 %v4712_v11, %v1617_v13  ;;  %v1539_v25 = vrot.slane %v1538_v2, 2  ;;  %v1558_v26 = vrot.slane %v1557_v21, 4  ;;  %v1564_v49 = vmin.f32 %v4604_v34, %v4596_v31 }
 0x296   : > { %1624 = vst [vmem:[#allocation1] ss:$4 sm:$0xff] %v1620_v12  ;;  %v1546_v50 = vrot.slane %v1545_v14, 2  ;;  %v1552_v22 = vmin.f32 %v1550_v59, %v1551_v15  ;;  %v1571_v23 = vmin.f32 %v4606_v35, %v4598_v32  ;;  %v1578_v3 = vmin.f32 %v4578_v19, %v4574_v17 }
 0x297   : > { %1626 = vst [vmem:[#allocation1 + $0x20] ss:$4 sm:$0xff] %v1621_v24  ;;  %v1540_v8 = vmin.f32 %v1538_v2, %v1539_v25  ;;  %v1559_v27 = vmin.f32 %v1557_v21, %v1558_v26  ;;  %v1565_v30 = vrot.slane %v1564_v49, 4  ;;  %v1585_v33 = vmin.f32 %v4580_v20, %v4576_v18 }
 0x298   : > { %v1547_v28 = vmin.f32 %v1545_v14, %v1546_v50  ;;  %v1553_v29 = vrot.slane %v1552_v22, 2  ;;  %v1572_v40 = vrot.slane %v1571_v23, 4  ;;  %v1579_v31 = vrot.slane %v1578_v3, 4 }
 0x299   : > { %v1560_v34 = vrot.slane %v1559_v27, 2  ;;  %v1566_v41 = vmin.f32 %v1564_v49, %v1565_v30  ;;  %v1586_v36 = vrot.slane %v1585_v33, 4  ;;  %v1541_v39 = vrot.slane %v1540_v8, 1 }
 0x29a   : > { %v1548_v37 = vrot.slane %v1547_v28, 1  ;;  %v1554_v38 = vmin.f32 %v1552_v22, %v1553_v29  ;;  %v1573_v32 = vmin.f32 %v1571_v23, %v1572_v40  ;;  %v1580_v35 = vmin.f32 %v1578_v3, %v1579_v31  ;;  %v2071_v29 = vld [vmem:[#allocation14 + $0x3e0] sm:$0xff] (%p622_p8) }
 0x29b   : > { %v1561_v17 = vmin.f32 %v1559_v27, %v1560_v34  ;;  %v1567_v19 = vrot.slane %v1566_v41, 2  ;;  %v1587_v7 = vmin.f32 %v1585_v33, %v1586_v36  ;;  %v1592_v59 = vlaneseq  ;;  %v1696_v27 = vld [vmem:[#allocation5 + $0x8] sm:$0xff]  ;;  %2489 = vmatpush.msra.mxu1 (%p622_p8), %v2071_v29  ;;  %v2327_v29 = vld [vmem:[#allocation14 + $0xbe0] sm:$0xff] (%p622_p8) }
 0x29c   : > { %v1555_v42 = vrot.slane %v1554_v38, 1  ;;  %v1574_v43 = vrot.slane %v1573_v32, 2  ;;  %v1581_v44 = vrot.slane %v1580_v35, 2  ;;  %v1549_v20 = vmin.f32 %v1547_v28, %v1548_v37 }
 0x29d   : > { %v4731_v45 = vld.sshfl [vmem:[#allocation1] sm:$0xff pattern:$0x73625140]  ;;  %v1628_v18 = vld.sshfl [vmem:[#allocation1 + $0x8] sm:$0xff pattern:$0x73625140]  ;;  %v1568_v6 = vmin.f32 %v1566_v41, %v1567_v19  ;;  %v1542_v60 = vmin.f32 %v1540_v8, %v1541_v39  ;;  %v1594_v13 = vstv %s4308_s18 }
 0x29e   : > { %v1629_v9 = vld.sshfl [vmem:[#allocation1 + $0x10] sm:$0xff pattern:$0x73625140]  ;;  %v1630_v10 = vld.sshfl [vmem:[#allocation1 + $0x18] sm:$0xff pattern:$0x73625140]  ;;  %v1556_v63 = vmin.f32 %v1554_v38, %v1555_v42  ;;  %v1575_v4 = vmin.f32 %v1573_v32, %v1574_v43  ;;  %v1582_v16 = vmin.f32 %v1580_v35, %v1581_v44 }
 0x29f   : > { %1645 = vst [vmem:[#allocation1] ss:$4 sm:$0xff] %v1596_v46  ;;  %v4733_v1 = vld.sshfl [vmem:[#allocation1 + $0x20] sm:$0xff pattern:$0x73625140]  ;;  %v1562_v2 = vrot.slane %v1561_v17, 1 }
 0x2a0   : > { %v1632_v21 = vld.sshfl [vmem:[#allocation1 + $0x28] sm:$0xff pattern:$0x73625140]  ;;  %v1633_v12 = vld.sshfl [vmem:[#allocation1 + $0x30] sm:$0xff pattern:$0x73625140] }
 0x2a1   : > { %v1634_v14 = vld.sshfl [vmem:[#allocation1 + $0x38] sm:$0xff pattern:$0x73625140]  ;;  %v1563_v15 = vmin.f32 %v1561_v17, %v1562_v2  ;;  %v1706_v24 = vrot.slane %v1549_v20, 6  ;;  %v1707_v25 = vrot.slane %v1556_v63, 4  ;;  %v1569_v26 = vrot.slane %v1568_v6, 1 }
 0x2a2   : > { %1647 = vst [vmem:[#allocation1 + $0x20] ss:$4 sm:$0xff] %v4712_v11  ;;  %v1576_v49 = vrot.slane %v1575_v4, 1  ;;  %v1583_v50 = vrot.slane %v1582_v16, 1  ;;  %v1588_v22 = vrot.slane %v1587_v7, 2  ;;  %v1593_v23 = vshrl.u32 %v1592_v59, 7 }
 0x2a3   : > { %v1708_v3 = vrot.slane %v1563_v15, 2  ;;  %v1712_v46 = vsel %vm1442_vm4, %v1542_v60, %v1706_v24  ;;  %v1431_v8 = vrot.slane %v4660_v51, 7  ;;  %v1432_v11 = vrot.slane %v4656_v47, 6  ;;  %v1697_v24 = vld [vmem:[#allocation5] sm:$0xff] }
 0x2a4   : > { %v1577_v30 = vmin.f32 %v1575_v4, %v1576_v49  ;;  %v1584_v33 = vmin.f32 %v1582_v16, %v1583_v50  ;;  %v1589_v28 = vmin.f32 %v1587_v7, %v1588_v22  ;;  %vm4739_vm6 = vcmp.eq.s32.totalorder %v1593_v23, %v1594_v13 }
 0x2a5   : > { %v1713_v40 = vsel %vm1448_vm5, %v1707_v25, %v1708_v3  ;;  %v1433_v31 = vrot.slane %v4664_v53, 5  ;;  %v1434_v34 = vrot.slane %v4672_v57, 4  ;;  %v1570_v37 = vmin.f32 %v1568_v6, %v1569_v26 }
 0x2a6   : > { %v1648_v41 = vld.sshfl [vmem:[#allocation1] sm:$0xff pattern:$0x73625140]  ;;  %v1649_v36 = vld.sshfl [vmem:[#allocation1 + $0x8] sm:$0xff pattern:$0x73625140]  ;;  %v1714_v51 = vsel %vm639_vm0, %v1712_v46, %v1713_v40 }
 0x2a7   : > { %v1650_v38 = vld.sshfl [vmem:[#allocation1 + $0x10] sm:$0xff pattern:$0x73625140]  ;;  %v1651_v32 = vld.sshfl [vmem:[#allocation1 + $0x18] sm:$0xff pattern:$0x73625140]  ;;  %v1720_v35 = vmin.f32 %v1696_v27, %v1714_v51  ;;  %v1665_v39 = vsel %vm4739_vm6, %v1628_v18, %v1649_v36  ;;  %v1664_v18 = vsel %vm4739_vm6, %v4731_v45, %v1648_v41 }
 0x2a8   : > { %v1590_v17 = vrot.slane %v1589_v28, 1  ;;  %v1709_v19 = vrot.slane %v1577_v30, 6  ;;  %v1710_v42 = vrot.slane %v1584_v33, 4  ;;  %v1666_v43 = vsel %vm4739_vm6, %v1629_v9, %v1650_v38  ;;  %v1422_v36 = vld [vmem:[#allocation2] sm:$0xff] }
 0x2a9   : > { %1724 = vst [vmem:[#allocation1] ss:$4 sm:$0xff] %v1720_v35  ;;  %v1652_v53 = vld.sshfl [vmem:[#allocation1 + $0x20] sm:$0xff pattern:$0x73625140]  ;;  %v1667_v57 = vsel %vm4739_vm6, %v1630_v10, %v1651_v32  ;;  %v1680_v44 = vrot.slane %v1665_v39, 6 }
 0x2aa   : > { %v1591_v20 = vmin.f32 %v1589_v28, %v1590_v17  ;;  %v1653_v6 = vld.sshfl [vmem:[#allocation1 + $0x28] sm:$0xff pattern:$0x73625140]  ;;  %v1654_v7 = vld.sshfl [vmem:[#allocation1 + $0x30] sm:$0xff pattern:$0x73625140]  ;;  %v1715_v63 = vsel %vm1442_vm4, %v1570_v37, %v1709_v19  ;;  %v1668_v4 = vsel %vm4739_vm6, %v4733_v1, %v1652_v53 }
 0x2ab   : > { %v1655_v9 = vld.sshfl [vmem:[#allocation1 + $0x38] sm:$0xff pattern:$0x73625140]  ;;  %v1681_v16 = vrot.slane %v1666_v43, 4  ;;  %v1682_v59 = vrot.slane %v1667_v57, 2  ;;  %v1686_v60 = vsel %vm1442_vm4, %v1664_v18, %v1680_v44  ;;  %v1669_v10 = vsel %vm4739_vm6, %v1632_v21, %v1653_v6  ;;  %v5310_v39 = vld [vmem:[#allocation22_spill] sm:$0xff] }
 0x2ac   : > { %v1711_v2 = vrot.slane %v1591_v20, 2  ;;  %v1670_v13 = vsel %vm4739_vm6, %v1633_v12, %v1654_v7  ;;  %v1671_v15 = vsel %vm4739_vm6, %v1634_v14, %v1655_v9  ;;  %v1683_v45 = vrot.slane %v1669_v10, 6  ;;  %v1454_v19 = vld [vmem:[#allocation3] sm:$0xff] }
 0x2ad   : > { %v1687_v25 = vsel %vm1448_vm5, %v1681_v16, %v1682_v59  ;;  %v1684_v1 = vrot.slane %v1670_v13, 4  ;;  %v1685_v26 = vrot.slane %v1671_v15, 2  ;;  %v1435_v49 = vrot.slane %v4666_v54, 3 }
 0x2ae   : > { %v1716_v50 = vsel %vm1448_vm5, %v1710_v42, %v1711_v2  ;;  %v1688_v22 = vsel %vm639_vm0, %v1686_v60, %v1687_v25  ;;  %v1689_v21 = vsel %vm1442_vm4, %v1668_v4, %v1683_v45  ;;  %v1436_v23 = vrot.slane %v4662_v52, 2 }
 0x2af   : > { %v1717_v12 = vsel %vm639_vm0, %v1715_v63, %v1716_v50  ;;  %1694 = vst [vmem:[#allocation4] sm:$0xff] %v1688_v22  ;;  %v1690_v14 = vsel %vm1448_vm5, %v1684_v1, %v1685_v26  ;;  %v1437_v3 = vrot.slane %v4668_v55, 1  ;;  %vm1438_vm7 = vcmask 1040384  }
 0x2b0   : > { %v1727_v46 = vld.sshfl [vmem:[#allocation1] sm:$0xff pattern:$0x73625140]  ;;  %v1728_v30 = vld.sshfl [vmem:[#allocation1 + $0x8] sm:$0xff pattern:$0x73625140]  ;;  %v1721_v33 = vmin.f32 %v1697_v24, %v1717_v12  ;;  %v1691_v40 = vsel %vm639_vm0, %v1689_v21, %v1690_v14  ;;  %v1439_v41 = vsel %vm1438_vm7, %v4658_v48, %v1431_v8 }
 0x2b1   : > { %v1729_v54 = vld.sshfl [vmem:[#allocation1 + $0x10] sm:$0xff pattern:$0x73625140]  ;;  %v1730_v28 = vld.sshfl [vmem:[#allocation1 + $0x18] sm:$0xff pattern:$0x73625140] }
 0x2b2   : > { %1745 = vst [vmem:[#allocation1] ss:$4 sm:$0xff] %v1696_v27  ;;  %vm1440_vm8 = vcmask 1042434   ;;  %vm1444_vm9 = vcmask 1044484   ;;  %vm1446_vm10 = vcmask 1046534   ;;  %v1463_v52 = vrot.slane %v4674_v58, 7 }
 0x2b3   : > { %1726 = vst [vmem:[#allocation1 + $0x20] ss:$4 sm:$0xff] %v1721_v33  ;;  %v1441_v55 = vsel %vm1440_vm8, %v1432_v11, %v1433_v31  ;;  %v1445_v51 = vsel %vm1444_vm9, %v1434_v34, %v1435_v49  ;;  %v1447_v37 = vsel %vm1446_vm10, %v1436_v23, %v1437_v3  ;;  %v1464_v38 = vrot.slane %v4670_v56, 6  ;;  %v5309_v31 = vld [vmem:[#allocation23_spill] sm:$0xff]  ;;  %v2135_v33 = vld [vmem:[#allocation14 + $0x5e0] sm:$0xff] (%p622_p8) }
 0x2b4   : > { %1695 = vst [vmem:[#allocation4 + $0x8] sm:$0xff] %v1691_v40  ;;  %v1443_v48 = vsel %vm1442_vm4, %v1439_v41, %v1441_v55  ;;  %v1449_v8 = vsel %vm1448_vm5, %v1445_v51, %v1447_v37  ;;  %v1465_v27 = vrot.slane %v4676_v61, 5  ;;  %v1466_v58 = vrot.slane %v4686_v5, 4  ;;  %2509 = vmatpush.msra.mxu2 (%p622_p8), %v2135_v33  ;;  %v2199_v40 = vld [vmem:[#allocation14 + $0x7e0] sm:$0xff] (%p622_p8) }
 0x2b5   : > { %v1450_v32 = vsel %vm639_vm0, %v1443_v48, %v1449_v8  ;;  %v1467_v47 = vrot.slane %v4682_v0, 3  ;;  %v1468_v11 = vrot.slane %v4678_v62, 2  ;;  %v1469_v34 = vrot.slane %v5309_v31, 1  ;;  %v2003_v41 = vld [vmem:[#allocation14 + $0x1c0] sm:$0xff] (%p622_p8)  ;;  %2529 = vmatpush.msra.mxu3 (%p622_p8), %v2199_v40 }
 0x2b6   : > { %v1452_v35 = vadd.f32 %v1450_v32, %v1422_v36  ;;  %v1470_v56 = vsel %vm1438_vm7, %v5310_v39, %v1463_v52  ;;  %v1471_v17 = vsel %vm1440_vm8, %v1464_v38, %v1465_v27  ;;  %v2127_v52 = vld [vmem:[#allocation14 + $0x5a0] sm:$0xff] (%p622_p8) }
 0x2b7   : > { %v1472_v42 = vsel %vm1442_vm4, %v1470_v56, %v1471_v17  ;;  %v1473_v61 = vsel %vm1444_vm9, %v1466_v58, %v1467_v47  ;;  %v1474_v5 = vsel %vm1446_vm10, %v1468_v11, %v1469_v34  ;;  %v2195_v36 = vld [vmem:[#allocation14 + $0x7c0] sm:$0xff] (%p622_p8) }
 0x2b8   : > { %1453 = vst [vmem:[#allocation2] sm:$0xff] %v1452_v35  ;;  %v1475_v0 = vsel %vm1448_vm5, %v1473_v61, %v1474_v5  ;;  %v1999_v55 = vld [vmem:[#allocation14 + $0x1a0] sm:$0xff] (%p622_p8)  ;;  %2530 = vmatpush.msra.mxu3 (%p622_p8), %v2195_v36 }
 0x2b9   : > { %v1476_v62 = vsel %vm639_vm0, %v1472_v42, %v1475_v0  ;;  %v1748_v43 = vld.sshfl [vmem:[#allocation1] sm:$0xff pattern:$0x73625140]  ;;  %v1749_v53 = vld.sshfl [vmem:[#allocation1 + $0x8] sm:$0xff pattern:$0x73625140] }
 0x2ba   : > { %v1731_v57 = vld.sshfl [vmem:[#allocation1 + $0x20] sm:$0xff pattern:$0x73625140]  ;;  %v1732_v44 = vld.sshfl [vmem:[#allocation1 + $0x28] sm:$0xff pattern:$0x73625140]  ;;  %v1478_v20 = vadd.f32 %v1476_v62, %v1454_v19  ;;  %v1765_v6 = vsel %vm4739_vm6, %v1728_v30, %v1749_v53  ;;  %v1764_v59 = vsel %vm4739_vm6, %v1727_v46, %v1748_v43 }
 0x2bb   : > { %v1733_v7 = vld.sshfl [vmem:[#allocation1 + $0x30] sm:$0xff pattern:$0x73625140]  ;;  %v1734_v63 = vld.sshfl [vmem:[#allocation1 + $0x38] sm:$0xff pattern:$0x73625140] }
 0x2bc   : > { %1747 = vst [vmem:[#allocation1 + $0x20] ss:$4 sm:$0xff] %v1697_v24  ;;  %v1750_v18 = vld.sshfl [vmem:[#allocation1 + $0x10] sm:$0xff pattern:$0x73625140]  ;;  %v1780_v4 = vrot.slane %v1765_v6, 6 }
 0x2bd   : > { %1479 = vst [vmem:[#allocation3] sm:$0xff] %v1478_v20  ;;  %v1751_v9 = vld.sshfl [vmem:[#allocation1 + $0x18] sm:$0xff pattern:$0x73625140]  ;;  %v1766_v16 = vsel %vm4739_vm6, %v1729_v54, %v1750_v18  ;;  %v2007_v54 = vld [vmem:[#allocation14 + $0x1e0] sm:$0xff] (%p622_p8) }
 0x2be   : > { %v1767_v60 = vsel %vm4739_vm6, %v1730_v28, %v1751_v9  ;;  %v1781_v10 = vrot.slane %v1766_v16, 4  ;;  %v1786_v13 = vsel %vm1442_vm4, %v1764_v59, %v1780_v4  ;;  %v2131_v28 = vld [vmem:[#allocation14 + $0x5c0] sm:$0xff] (%p622_p8)  ;;  %2469 = vmatpush.msra.mxu0 (%p622_p8), %v2007_v54 }
 0x2bf   : > { %v1782_v2 = vrot.slane %v1767_v60, 2  ;;  %2510 = vmatpush.msra.mxu2 (%p622_p8), %v2131_v28  ;;  %v2067_v51 = vld [vmem:[#allocation14 + $0x3c0] sm:$0xff] (%p622_p8) }
 0x2c0   : > { %2470 = vmatpush.msra.mxu0 (%p622_p8), %v2003_v41  ;;  %v2191_v37 = vld [vmem:[#allocation14 + $0x7a0] sm:$0xff] (%p622_p8)  ;;  %2490 = vmatpush.msra.mxu1 (%p622_p8), %v2067_v51 }
 0x2c1   : > { %v1787_v15 = vsel %vm1448_vm5, %v1781_v10, %v1782_v2  ;;  %v2123_v38 = vld [vmem:[#allocation14 + $0x580] sm:$0xff] (%p622_p8)  ;;  %2511 = vmatpush.msra.mxu2 (%p622_p8), %v2127_v52  ;;  %2531 = vmatpush.msra.mxu3 (%p622_p8), %v2191_v37 }
 0x2c2   : > { %v1788_v45 = vsel %vm639_vm0, %v1786_v13, %v1787_v15  ;;  %v1995_v48 = vld [vmem:[#allocation14 + $0x180] sm:$0xff] (%p622_p8)  ;;  %2471 = vmatpush.msra.mxu0 (%p622_p8), %v1999_v55 }
 0x2c3   : > { %1794 = vst [vmem:[#allocation5 + $0x8] sm:$0xff] %v1788_v45  ;;  %v1752_v24 = vld.sshfl [vmem:[#allocation1 + $0x20] sm:$0xff pattern:$0x73625140]  ;;  %2512 = vmatpush.msra.mxu2 (%p622_p8), %v2123_v38 }
 0x2c4   : > { %v1753_v25 = vld.sshfl [vmem:[#allocation1 + $0x28] sm:$0xff pattern:$0x73625140]  ;;  %v1754_v1 = vld.sshfl [vmem:[#allocation1 + $0x30] sm:$0xff pattern:$0x73625140]  ;;  %v1768_v12 = vsel %vm4739_vm6, %v1731_v57, %v1752_v24  ;;  %2472 = vmatpush.msra.mxu0 (%p622_p8), %v1995_v48 }
 0x2c5   : > { %v1755_v26 = vld.sshfl [vmem:[#allocation1 + $0x38] sm:$0xff pattern:$0x73625140]  ;;  %v1769_v49 = vsel %vm4739_vm6, %v1732_v44, %v1753_v25  ;;  %v1770_v50 = vsel %vm4739_vm6, %v1733_v7, %v1754_v1  ;;  %v2063_v8 = vld [vmem:[#allocation14 + $0x3a0] sm:$0xff] (%p622_p8) }
 0x2c6   : > { %v1771_v22 = vsel %vm4739_vm6, %v1734_v63, %v1755_v26  ;;  %v1783_v21 = vrot.slane %v1769_v49, 6  ;;  %v1784_v23 = vrot.slane %v1770_v50, 4  ;;  %v2187_v27 = vld [vmem:[#allocation14 + $0x780] sm:$0xff] (%p622_p8)  ;;  %2491 = vmatpush.msra.mxu1 (%p622_p8), %v2063_v8 }
 0x2c7   : > { %v1785_v14 = vrot.slane %v1771_v22, 2  ;;  %1797 = sbr.rel (!%p622_p8) target bundleno = 1644 (0x66c), region = 116  ;;  %v2059_v58 = vld [vmem:[#allocation14 + $0x380] sm:$0xff] (%p622_p8)  ;;  %2532 = vmatpush.msra.mxu3 (%p622_p8), %v2187_v27 }
 0x2c8   : > { %v1789_v3 = vsel %vm1442_vm4, %v1768_v12, %v1783_v21  ;;  %v2119_v32 = vld [vmem:[#allocation14 + $0x560] sm:$0xff] (%p622_p8)  ;;  %2492 = vmatpush.msra.mxu1 (%p622_p8), %v2059_v58 }
 0x2c9   : > { %v1790_v46 = vsel %vm1448_vm5, %v1784_v23, %v1785_v14  ;;  %v1991_v47 = vld [vmem:[#allocation14 + $0x160] sm:$0xff] (%p622_p8)  ;;  %2513 = vmatpush.msra.mxu2 (%p622_p8), %v2119_v32  ;;  %v1798_v32 = vld [vmem:[#allocation2] sm:$0xff] (%p622_p8) }
 0x2ca   : > { %v1791_v30 = vsel %vm639_vm0, %v1789_v3, %v1790_v46  ;;  %v2183_v11 = vld [vmem:[#allocation14 + $0x760] sm:$0xff] (%p622_p8)  ;;  %2473 = vmatpush.msra.mxu0 (%p622_p8), %v1991_v47  ;;  %v1800_v47 = vld [vmem:[#allocation3] sm:$0xff] (%p622_p8) }
 0x2cb   : > { %1795 = vst [vmem:[#allocation5] sm:$0xff] %v1791_v30  ;;  %v2055_v31 = vld [vmem:[#allocation14 + $0x360] sm:$0xff] (%p622_p8)  ;;  %2533 = vmatpush.msra.mxu3 (%p622_p8), %v2183_v11 }
 0x2cc   : > { %v2115_v34 = vld [vmem:[#allocation14 + $0x540] sm:$0xff]  ;;  %2493 = vmatpush.msra.mxu1 %v2055_v31 }
 0x2cd   : > { %v1987_v35 = vld [vmem:[#allocation14 + $0x140] sm:$0xff]  ;;  %2514 = vmatpush.msra.mxu2 %v2115_v34  ;;  %v4827_v34 = vmul.f32 0.03125, %v1798_v32 }
 0x2ce   : > { %v2179_v39 = vld [vmem:[#allocation14 + $0x740] sm:$0xff]  ;;  %2474 = vmatpush.msra.mxu0 %v1987_v35  ;;  %v1801_v35 = vmul.f32 0.03125, %v1800_v47 }
 0x2cf   : > { %v2051_v56 = vld [vmem:[#allocation14 + $0x340] sm:$0xff]  ;;  %2534 = vmatpush.msra.mxu3 %v2179_v39 }
 0x2d0   : > { %v2111_v17 = vld [vmem:[#allocation14 + $0x520] sm:$0xff]  ;;  %2494 = vmatpush.msra.mxu1 %v2051_v56 }
 0x2d1   : > { %v1983_v19 = vld [vmem:[#allocation14 + $0x120] sm:$0xff]  ;;  %2515 = vmatpush.msra.mxu2 %v2111_v17 }
 0x2d2   : > { %v2175_v42 = vld [vmem:[#allocation14 + $0x720] sm:$0xff]  ;;  %2475 = vmatpush.msra.mxu0 %v1983_v19 }
 0x2d3   : > { %v2047_v61 = vld [vmem:[#allocation14 + $0x320] sm:$0xff]  ;;  %2535 = vmatpush.msra.mxu3 %v2175_v42  ;;  %v1802_v42 = vmul.f32 %v4827_v34, %v4827_v34 }
 0x2d4   : > { %v2107_v5 = vld [vmem:[#allocation14 + $0x500] sm:$0xff]  ;;  %2495 = vmatpush.msra.mxu1 %v2047_v61 }
 0x2d5   : > { %v1979_v0 = vld [vmem:[#allocation14 + $0x100] sm:$0xff]  ;;  %2516 = vmatpush.msra.mxu2 %v2107_v5 }
 0x2d6   : > { %v2171_v62 = vld [vmem:[#allocation14 + $0x700] sm:$0xff]  ;;  %2476 = vmatpush.msra.mxu0 %v1979_v0 }
 0x2d7   : > { %v2043_v43 = vld [vmem:[#allocation14 + $0x300] sm:$0xff]  ;;  %2536 = vmatpush.msra.mxu3 %v2171_v62 }
 0x2d8   : > { %v2103_v53 = vld [vmem:[#allocation14 + $0x4e0] sm:$0xff]  ;;  %2496 = vmatpush.msra.mxu1 %v2043_v43  ;;  %v1803_v43 = vsub.f32 %v1801_v35, %v1802_v42 }
 0x2d9   : > { %v1975_v57 = vld [vmem:[#allocation14 + $0xe0] sm:$0xff]  ;;  %2517 = vmatpush.msra.mxu2 %v2103_v53 }
 0x2da   : > { %v2167_v44 = vld [vmem:[#allocation14 + $0x6e0] sm:$0xff]  ;;  %2477 = vmatpush.msra.mxu0 %v1975_v57 }
 0x2db   : > { %v2039_v20 = vld [vmem:[#allocation14 + $0x2e0] sm:$0xff]  ;;  %2537 = vmatpush.msra.mxu3 %v2167_v44 }
 0x2dc   : > { %v2099_v6 = vld [vmem:[#allocation14 + $0x4c0] sm:$0xff]  ;;  %2497 = vmatpush.msra.mxu1 %v2039_v20 }
 0x2dd   : > { %v1971_v7 = vld [vmem:[#allocation14 + $0xc0] sm:$0xff]  ;;  %2518 = vmatpush.msra.mxu2 %v2099_v6  ;;  %v1804_v6 = vmax.f32 %v1803_v43, 0.0 }
 0x2de   : > { %v2163_v63 = vld [vmem:[#allocation14 + $0x6c0] sm:$0xff]  ;;  %2478 = vmatpush.msra.mxu0 %v1971_v7 }
 0x2df   : > { %v2035_v18 = vld [vmem:[#allocation14 + $0x2c0] sm:$0xff]  ;;  %2538 = vmatpush.msra.mxu3 %v2163_v63 }
 0x2e0   : > { %v2095_v4 = vld [vmem:[#allocation14 + $0x4a0] sm:$0xff]  ;;  %2498 = vmatpush.msra.mxu1 %v2035_v18 }
 0x2e1   : > { %v1967_v9 = vld [vmem:[#allocation14 + $0xa0] sm:$0xff]  ;;  %2519 = vmatpush.msra.mxu2 %v2095_v4 }
 0x2e2   : > { %v2159_v16 = vld [vmem:[#allocation14 + $0x6a0] sm:$0xff]  ;;  %2479 = vmatpush.msra.mxu0 %v1967_v9  ;;  %v1807_v9 = vadd.f32 1e-05, %v1804_v6 }
 0x2e3   : > { %v2031_v59 = vld [vmem:[#allocation14 + $0x2a0] sm:$0xff]  ;;  %2539 = vmatpush.msra.mxu3 %v2159_v16 }
 0x2e4   : > { %v2091_v60 = vld [vmem:[#allocation14 + $0x480] sm:$0xff]  ;;  %2499 = vmatpush.msra.mxu1 %v2031_v59  ;;  %4052 = vrsqrt.f32 %v1807_v9  ;;  %vm1814_vm11 = vweird.f32 %v1807_v9 }
 0x2e5   : > { %v1963_v10 = vld [vmem:[#allocation14 + $0x80] sm:$0xff]  ;;  %2520 = vmatpush.msra.mxu2 %v2091_v60 }
 0x2e6   : > { %v2155_v2 = vld [vmem:[#allocation14 + $0x680] sm:$0xff]  ;;  %2480 = vmatpush.msra.mxu0 %v1963_v10 }
 0x2e7   : > { %v2027_v13 = vld [vmem:[#allocation14 + $0x280] sm:$0xff]  ;;  %2540 = vmatpush.msra.mxu3 %v2155_v2 }
 0x2e8   : > { %v2087_v15 = vld [vmem:[#allocation14 + $0x460] sm:$0xff]  ;;  %2500 = vmatpush.msra.mxu1 %v2027_v13 }
 0x2e9   : > { %v1959_v45 = vld [vmem:[#allocation14 + $0x60] sm:$0xff]  ;;  %2521 = vmatpush.msra.mxu2 %v2087_v15 }
 0x2ea   : > { %v2151_v24 = vld [vmem:[#allocation14 + $0x660] sm:$0xff]  ;;  %2481 = vmatpush.msra.mxu0 %v1959_v45 }
 0x2eb   : > { %v2023_v25 = vld [vmem:[#allocation14 + $0x260] sm:$0xff]  ;;  %2541 = vmatpush.msra.mxu3 %v2151_v24 }
 0x2ec   : > { %v2083_v1 = vld [vmem:[#allocation14 + $0x440] sm:$0xff]  ;;  %2501 = vmatpush.msra.mxu1 %v2023_v25 }
 0x2ed   : > { %v1955_v26 = vld [vmem:[#allocation14 + $0x40] sm:$0xff]  ;;  %2522 = vmatpush.msra.mxu2 %v2083_v1 }
 0x2ee   : > { %v2147_v49 = vld [vmem:[#allocation14 + $0x640] sm:$0xff]  ;;  %2482 = vmatpush.msra.mxu0 %v1955_v26 }
 0x2ef   : > { %v2019_v50 = vld [vmem:[#allocation14 + $0x240] sm:$0xff]  ;;  %2542 = vmatpush.msra.mxu3 %v2147_v49 }
 0x2f0   : > { %v2079_v22 = vld [vmem:[#allocation14 + $0x420] sm:$0xff]  ;;  %2502 = vmatpush.msra.mxu1 %v2019_v50 }
 0x2f1   : > { %v1951_v21 = vld [vmem:[#allocation14 + $0x20] sm:$0xff]  ;;  %2523 = vmatpush.msra.mxu2 %v2079_v22  ;;  %v4053_v22 = vpop.eup %4052 }
 0x2f2   : > { %v2143_v23 = vld [vmem:[#allocation14 + $0x620] sm:$0xff]  ;;  %2483 = vmatpush.msra.mxu0 %v1951_v21  ;;  %v1809_v21 = vmul.f32 %v4053_v22, %v1807_v9  ;;  %vm1815_vm12 = vweird.f32 %v4053_v22 }
 0x2f3   : > { %v2015_v12 = vld [vmem:[#allocation14 + $0x220] sm:$0xff]  ;;  %2543 = vmatpush.msra.mxu3 %v2143_v23  ;;  %vm1816_vm13 = vmor %vm1814_vm11, %vm1815_vm12 }
 0x2f4   : > { %v2075_v14 = vld [vmem:[#allocation14 + $0x400] sm:$0xff]  ;;  %2503 = vmatpush.msra.mxu1 %v2015_v12  ;;  %v1810_v23 = vmul.f32 %v4053_v22, %v1809_v21 }
 0x2f5   : > { %v1947_v3 = vld [vmem:[#allocation14] sm:$0xff]  ;;  %2524 = vmatpush.msra.mxu2 %v2075_v14 }
 0x2f6   : > { %v2391_v46 = vld [vmem:[#allocation14 + $0xde0] sm:$0xff]  ;;  %2484 = vmatpush.msra.mxu0 %v1947_v3  ;;  %v1811_v12 = vmul.f32 0.5, %v1810_v23 }
 0x2f7   : > { %v2139_v30 = vld [vmem:[#allocation14 + $0x600] sm:$0xff]  ;;  %2589 = vmatpush.msrb.mxu2 %v2391_v46 }
 0x2f8   : > { %v2263_v33 = vld [vmem:[#allocation14 + $0x9e0] sm:$0xff]  ;;  %2544 = vmatpush.msra.mxu3 %v2139_v30  ;;  %v1812_v14 = vsub.f32 1.5, %v1811_v12  ;;  %v2060_v12 = vld [vmem:[#allocation14 + $0x388] sm:$0xff] }
 0x2f9   : > { %v2455_v54 = vld [vmem:[#allocation14 + $0xfe0] sm:$0xff]  ;;  %2549 = vmatpush.msrb.mxu0 %v2263_v33 }
 0x2fa   : > { %v2387_v28 = vld [vmem:[#allocation14 + $0xdc0] sm:$0xff]  ;;  %2609 = vmatpush.msrb.mxu3 %v2455_v54  ;;  %v1813_v46 = vmul.f32 %v4053_v22, %v1812_v14 }
 0x2fb   : > { %v2011_v40 = vld [vmem:[#allocation14 + $0x200] sm:$0xff]  ;;  %2590 = vmatpush.msrb.mxu2 %v2387_v28 }
 0x2fc   : > { %v2259_v41 = vld [vmem:[#allocation14 + $0x9c0] sm:$0xff]  ;;  %2504 = vmatpush.msra.mxu1 %v2011_v40  ;;  %v1817_v28 = vsel %vm1816_vm13, %v4053_v22, %v1813_v46  ;;  %v1852_v22 = vld [vmem:[#allocation5] sm:$0xff] }
 0x2fd   : > { %v2383_v52 = vld [vmem:[#allocation14 + $0xda0] sm:$0xff]  ;;  %2550 = vmatpush.msrb.mxu0 %v2259_v41 }
 0x2fe   : > { %v2451_v36 = vld [vmem:[#allocation14 + $0xfc0] sm:$0xff]  ;;  %2569 = vmatpush.msrb.mxu1 %v2327_v29  ;;  %2591 = vmatpush.msrb.mxu2 %v2383_v52 }
 0x2ff   : > { %v2255_v55 = vld [vmem:[#allocation14 + $0x9a0] sm:$0xff]  ;;  %2610 = vmatpush.msrb.mxu3 %v2451_v36 }
 0x300   : > { %v2323_v51 = vld [vmem:[#allocation14 + $0xbc0] sm:$0xff]  ;;  %2551 = vmatpush.msrb.mxu0 %v2255_v55 }
 0x301   : > { %v2379_v37 = vld [vmem:[#allocation14 + $0xd80] sm:$0xff]  ;;  %2570 = vmatpush.msrb.mxu1 %v2323_v51 }
 0x302   : > { %v2447_v38 = vld [vmem:[#allocation14 + $0xfa0] sm:$0xff]  ;;  %2592 = vmatpush.msrb.mxu2 %v2379_v37 }
 0x303   : > { %v2251_v48 = vld [vmem:[#allocation14 + $0x980] sm:$0xff]  ;;  %2611 = vmatpush.msrb.mxu3 %v2447_v38 }
 0x304   : > { %v2319_v8 = vld [vmem:[#allocation14 + $0xba0] sm:$0xff]  ;;  %2552 = vmatpush.msrb.mxu0 %v2251_v48 }
 0x305   : > { %v2375_v27 = vld [vmem:[#allocation14 + $0xd60] sm:$0xff]  ;;  %2571 = vmatpush.msrb.mxu1 %v2319_v8 }
 0x306   : > { %v2443_v58 = vld [vmem:[#allocation14 + $0xf80] sm:$0xff]  ;;  %2593 = vmatpush.msrb.mxu2 %v2375_v27 }
 0x307   : > { %v2247_v11 = vld [vmem:[#allocation14 + $0x960] sm:$0xff]  ;;  %2612 = vmatpush.msrb.mxu3 %v2443_v58 }
 0x308   : > { %v2315_v31 = vld [vmem:[#allocation14 + $0xb80] sm:$0xff]  ;;  %2553 = vmatpush.msrb.mxu0 %v2247_v11 }
 0x309   : > { %v2371_v39 = vld [vmem:[#allocation14 + $0xd40] sm:$0xff]  ;;  %2572 = vmatpush.msrb.mxu1 %v2315_v31 }
 0x30a   : > { %v2439_v56 = vld [vmem:[#allocation14 + $0xf60] sm:$0xff]  ;;  %2594 = vmatpush.msrb.mxu2 %v2371_v39 }
 0x30b   : > { %v2243_v17 = vld [vmem:[#allocation14 + $0x940] sm:$0xff]  ;;  %2613 = vmatpush.msrb.mxu3 %v2439_v56 }
 0x30c   : > { %v2311_v19 = vld [vmem:[#allocation14 + $0xb60] sm:$0xff]  ;;  %2554 = vmatpush.msrb.mxu0 %v2243_v17 }
 0x30d   : > { %v2367_v61 = vld [vmem:[#allocation14 + $0xd20] sm:$0xff]  ;;  %2573 = vmatpush.msrb.mxu1 %v2311_v19  ;;  %v1824_v19 = vld [vmem:[#allocation4] sm:$0xff] }
 0x30e   : > { %v2435_v5 = vld [vmem:[#allocation14 + $0xf40] sm:$0xff]  ;;  %2595 = vmatpush.msrb.mxu2 %v2367_v61 }
 0x30f   : > { %v2239_v0 = vld [vmem:[#allocation14 + $0x920] sm:$0xff]  ;;  %2614 = vmatpush.msrb.mxu3 %v2435_v5 }
 0x310   : > { %v2307_v62 = vld [vmem:[#allocation14 + $0xb40] sm:$0xff]  ;;  %2555 = vmatpush.msrb.mxu0 %v2239_v0 }
 0x311   : > { %v2363_v53 = vld [vmem:[#allocation14 + $0xd00] sm:$0xff]  ;;  %2574 = vmatpush.msrb.mxu1 %v2307_v62 }
 0x312   : > { %v2431_v57 = vld [vmem:[#allocation14 + $0xf20] sm:$0xff]  ;;  %2596 = vmatpush.msrb.mxu2 %v2363_v53 }
 0x313   : > { %v2235_v44 = vld [vmem:[#allocation14 + $0x900] sm:$0xff]  ;;  %2615 = vmatpush.msrb.mxu3 %v2431_v57 }
 0x314   : > { %v2303_v20 = vld [vmem:[#allocation14 + $0xb20] sm:$0xff]  ;;  %2556 = vmatpush.msrb.mxu0 %v2235_v44 }
 0x315   : > { %v2359_v7 = vld [vmem:[#allocation14 + $0xce0] sm:$0xff]  ;;  %2575 = vmatpush.msrb.mxu1 %v2303_v20 }
 0x316   : > { %v2427_v63 = vld [vmem:[#allocation14 + $0xf00] sm:$0xff]  ;;  %2597 = vmatpush.msrb.mxu2 %v2359_v7  ;;  %v1851_v7 = vld [vmem:[#allocation5 + $0x8] sm:$0xff] }
 0x317   : > { %v2231_v18 = vld [vmem:[#allocation14 + $0x8e0] sm:$0xff]  ;;  %2616 = vmatpush.msrb.mxu3 %v2427_v63 }
 0x318   : > { %v2299_v4 = vld [vmem:[#allocation14 + $0xb00] sm:$0xff]  ;;  %2557 = vmatpush.msrb.mxu0 %v2231_v18 }
 0x319   : > { %v2355_v16 = vld [vmem:[#allocation14 + $0xcc0] sm:$0xff]  ;;  %2576 = vmatpush.msrb.mxu1 %v2299_v4 }
 0x31a   : > { %v2423_v59 = vld [vmem:[#allocation14 + $0xee0] sm:$0xff]  ;;  %2598 = vmatpush.msrb.mxu2 %v2355_v16 }
 0x31b   : > { %v2227_v60 = vld [vmem:[#allocation14 + $0x8c0] sm:$0xff]  ;;  %2617 = vmatpush.msrb.mxu3 %v2423_v59 }
 0x31c   : > { %v2295_v10 = vld [vmem:[#allocation14 + $0xae0] sm:$0xff]  ;;  %2558 = vmatpush.msrb.mxu0 %v2227_v60 }
 0x31d   : > { %v2351_v2 = vld [vmem:[#allocation14 + $0xca0] sm:$0xff]  ;;  %2577 = vmatpush.msrb.mxu1 %v2295_v10  ;;  %v4337_v10 = vmov 0  }
 0x31e   : > { %v2419_v13 = vld [vmem:[#allocation14 + $0xec0] sm:$0xff]  ;;  %2599 = vmatpush.msrb.mxu2 %v2351_v2 }
 0x31f   : > { %v2223_v15 = vld [vmem:[#allocation14 + $0x8a0] sm:$0xff]  ;;  %2618 = vmatpush.msrb.mxu3 %v2419_v13 }
 0x320   : > { %v2291_v45 = vld [vmem:[#allocation14 + $0xac0] sm:$0xff]  ;;  %2559 = vmatpush.msrb.mxu0 %v2223_v15 }
 0x321   : > { %v2347_v24 = vld [vmem:[#allocation14 + $0xc80] sm:$0xff]  ;;  %2578 = vmatpush.msrb.mxu1 %v2291_v45 }
 0x322   : > { %v2415_v25 = vld [vmem:[#allocation14 + $0xea0] sm:$0xff]  ;;  %2600 = vmatpush.msrb.mxu2 %v2347_v24 }
 0x323   : > { %v2219_v1 = vld [vmem:[#allocation14 + $0x880] sm:$0xff]  ;;  %2619 = vmatpush.msrb.mxu3 %v2415_v25 }
 0x324   : > { %v2287_v26 = vld [vmem:[#allocation14 + $0xaa0] sm:$0xff]  ;;  %2560 = vmatpush.msrb.mxu0 %v2219_v1 }
 0x325   : > { %v2343_v49 = vld [vmem:[#allocation14 + $0xc60] sm:$0xff]  ;;  %2579 = vmatpush.msrb.mxu1 %v2287_v26 }
 0x326   : > { %v2411_v50 = vld [vmem:[#allocation14 + $0xe80] sm:$0xff]  ;;  %2601 = vmatpush.msrb.mxu2 %v2343_v49 }
 0x327   : > { %2620 = vmatpush.msrb.mxu3 %v2411_v50  ;;  %v3925_v3 = vld [vmem:[%s5281_s8 + $0x1] ss:$4 sm:$0xff]  ;;  %v3926_v59 = vld [vmem:[%s5281_s8 + $0x2] ss:$4 sm:$0xff] }
 0x328   : > { %v2215_v30 = vld [vmem:[#allocation14 + $0x860] sm:$0xff]  ;;  %v1818_v41 = vmul.f32 %v3925_v3, %v1817_v28  ;;  %v2184_v3 = vld [vmem:[#allocation14 + $0x768] sm:$0xff] }
 0x329   : > { %v2283_v33 = vld [vmem:[#allocation14 + $0xa80] sm:$0xff]  ;;  %2561 = vmatpush.msrb.mxu0 %v2215_v30  ;;  %v2056_v30 = vld [vmem:[#allocation14 + $0x368] sm:$0xff] }
 0x32a   : > { %v2339_v54 = vld [vmem:[#allocation14 + $0xc40] sm:$0xff]  ;;  %2580 = vmatpush.msrb.mxu1 %v2283_v33  ;;  %v1827_v38 = vperm.slane %v1818_v41, 0  ;;  %v1828_v48 = vperm.slane %v1818_v41, 1  ;;  %v1829_v58 = vperm.slane %v1818_v41, 2  ;;  %v1830_v32 = vperm.slane %v1818_v41, 3 }
 0x32b   : > { %v2407_v40 = vld [vmem:[#allocation14 + $0xe60] sm:$0xff]  ;;  %2602 = vmatpush.msrb.mxu2 %v2339_v54  ;;  %v1831_v62 = vperm.slane %v1818_v41, 4  ;;  %v1832_v43 = vperm.slane %v1818_v41, 5  ;;  %v1833_v53 = vperm.slane %v1818_v41, 6  ;;  %v1834_v57 = vperm.slane %v1818_v41, 7 }
 0x32c   : > { %2621 = vmatpush.msrb.mxu3 %v2407_v40  ;;  %v2211_v29 = vld [vmem:[#allocation14 + $0x840] sm:$0xff]  ;;  %v1835_v35 = vrot.slane %v1828_v48, 6  ;;  %v1836_v39 = vrot.slane %v1829_v58, 4  ;;  %v1837_v56 = vrot.slane %v1830_v32, 2  ;;  %vm1823_vm14 = vcmp.ge.f32.partialorder %v1818_v41, 0.0 }
 0x32d   : > { %v2279_v52 = vld [vmem:[#allocation14 + $0xa60] sm:$0xff]  ;;  %2562 = vmatpush.msrb.mxu0 %v2211_v29  ;;  %v1838_v44 = vrot.slane %v1832_v43, 6  ;;  %v1839_v20 = vrot.slane %v1833_v53, 4  ;;  %v1840_v6 = vrot.slane %v1834_v57, 2  ;;  %v1821_v60 = vmul.f32 %v1818_v41, %v4827_v34  ;;  %v2128_v43 = vld [vmem:[#allocation14 + $0x5a8] sm:$0xff] }
 0x32e   : > { %v2335_v36 = vld [vmem:[#allocation14 + $0xc20] sm:$0xff]  ;;  %2581 = vmatpush.msrb.mxu1 %v2279_v52  ;;  %v1841_v42 = vsel %vm1442_vm4, %v1827_v38, %v1835_v35  ;;  %v1842_v61 = vsel %vm1448_vm5, %v1836_v39, %v1837_v56  ;;  %v4844_v2 = vsel %vm1823_vm14, 1, %v4337_v10  ;;  %v2200_v35 = vld [vmem:[#allocation14 + $0x7e8] sm:$0xff] }
 0x32f   : > { %v2403_v55 = vld [vmem:[#allocation14 + $0xe40] sm:$0xff]  ;;  %2603 = vmatpush.msrb.mxu2 %v2335_v36  ;;  %v1843_v5 = vsel %vm639_vm0, %v1841_v42, %v1842_v61  ;;  %v1844_v63 = vsel %vm1442_vm4, %v1831_v62, %v1838_v44  ;;  %v1845_v4 = vsel %vm1448_vm5, %v1839_v20, %v1840_v6  ;;  %v4846_v1 = vsub.f32 %v3926_v59, %v1821_v60  ;;  %v2072_v39 = vld [vmem:[#allocation14 + $0x3e8] sm:$0xff] }
 0x330   : > { %v2207_v51 = vld [vmem:[#allocation14 + $0x820] sm:$0xff]  ;;  %2622 = vmatpush.msrb.mxu3 %v2403_v55  ;;  %v1849_v0 = vmul.f32 %v1843_v5, %v1824_v19  ;;  %v1846_v9 = vsel %vm639_vm0, %v1844_v63, %v1845_v4  ;;  %v1853_v16 = vmul.f32 %v1851_v7, %v1843_v5  ;;  %v1858_v26 = vperm.slane %v4844_v2, 2  ;;  %v2136_v55 = vld [vmem:[#allocation14 + $0x5e8] sm:$0xff] }
 0x331   : > { %v2275_v37 = vld [vmem:[#allocation14 + $0xa40] sm:$0xff]  ;;  %2563 = vmatpush.msrb.mxu0 %v2207_v51  ;;  %v1856_v49 = vperm.slane %v4844_v2, 0  ;;  %v1859_v50 = vperm.slane %v4844_v2, 3  ;;  %v1857_v34 = vperm.slane %v4844_v2, 1  ;;  %v1925_v23 = vperm.slane %v4846_v1, 2  ;;  %v2008_v51 = vld [vmem:[#allocation14 + $0x1e8] sm:$0xff] }
 0x332   : > { %v2331_v8 = vld [vmem:[#allocation14 + $0xc00] sm:$0xff]  ;;  %2582 = vmatpush.msrb.mxu1 %v2275_v37  ;;  %1874 = vst [vmem:[#allocation1] ss:$4 sm:$0xff] %v1849_v0  ;;  %vm4852_vm15 = vcmp.eq.s32.totalorder %v1858_v26, 1  ;;  %v1923_v14 = vperm.slane %v4846_v1, 0  ;;  %v1926_v46 = vperm.slane %v4846_v1, 3  ;;  %v1854_v40 = vmul.f32 %v1852_v22, %v1846_v9 }
 0x333   : > { %v2399_v27 = vld [vmem:[#allocation14 + $0xe20] sm:$0xff]  ;;  %2604 = vmatpush.msrb.mxu2 %v2331_v8  ;;  %vm4857_vm0 = vcmp.eq.s32.totalorder %v1856_v49, 1  ;;  %vm4862_vm1 = vcmp.eq.s32.totalorder %v1859_v50, 1  ;;  %vm4867_vm2 = vcmp.eq.s32.totalorder %v1857_v34, 1  ;;  %v1924_v33 = vperm.slane %v4846_v1, 1  ;;  %v2132_v56 = vld [vmem:[#allocation14 + $0x5c8] sm:$0xff] }
 0x334   : > { %v2203_v47 = vld [vmem:[#allocation14 + $0x800] sm:$0xff]  ;;  %2623 = vmatpush.msrb.mxu3 %v2399_v27  ;;  %v2004_v19 = vld [vmem:[#allocation14 + $0x1c8] sm:$0xff]  ;;  %v1860_v42 = vperm.slane %v4844_v2, 4  ;;  %v1863_v5 = vperm.slane %v4844_v2, 7  ;;  %v1861_v62 = vperm.slane %v4844_v2, 5  ;;  %v1929_v57 = vperm.slane %v4846_v1, 6 }
 0x335   : > { %v2271_v11 = vld [vmem:[#allocation14 + $0xa20] sm:$0xff]  ;;  %2564 = vmatpush.msrb.mxu0 %v2203_v47  ;;  %v2196_v61 = vld [vmem:[#allocation14 + $0x7c8] sm:$0xff]  ;;  %v1927_v63 = vperm.slane %v4846_v1, 4  ;;  %v1928_v60 = vperm.slane %v4846_v1, 5 }
 0x336   : > { %v2395_v31 = vld [vmem:[#allocation14 + $0xe00] sm:$0xff]  ;;  %2583 = vmatpush.msrb.mxu1 %v2271_v11  ;;  %v2068_v0 = vld [vmem:[#allocation14 + $0x3c8] sm:$0xff]  ;;  %vm4903_vm5 = vcmp.eq.s32.totalorder %v1860_v42, 1  ;;  %vm4909_vm6 = vcmp.eq.s32.totalorder %v1863_v5, 1  ;;  %vm4913_vm9 = vcmp.eq.s32.totalorder %v1861_v62, 1 }
 0x337   : > { %v2267_v17 = vld [vmem:[#allocation14 + $0xa00] sm:$0xff]  ;;  %2624 = vmatpush.msrb.mxu3 %v2395_v31  ;;  %v2000_v53 = vld [vmem:[#allocation14 + $0x1a8] sm:$0xff] }
 0x338   : > { %2584 = vmatpush.msrb.mxu1 %v2267_v17  ;;  %v1825_v18 = vld [vmem:[#allocation4 + $0x8] sm:$0xff]  ;;  %v1862_v17 = vperm.slane %v4844_v2, 6  ;;  %v2192_v44 = vld [vmem:[#allocation14 + $0x7a8] sm:$0xff] }
 0x339   : > { %v1850_v13 = vmul.f32 %v1846_v9, %v1825_v18  ;;  %v1877_v15 = vld.sshfl [vmem:[#allocation1] sm:$0xff pattern:$0x73625140]  ;;  %v1878_v45 = vld.sshfl [vmem:[#allocation1 + $0x8] sm:$0xff pattern:$0x73625140] }
 0x33a   : > { %v1879_v24 = vld.sshfl [vmem:[#allocation1 + $0x10] sm:$0xff pattern:$0x73625140]  ;;  %v1880_v25 = vld.sshfl [vmem:[#allocation1 + $0x18] sm:$0xff pattern:$0x73625140] }
 0x33b   : > { %1895 = vst [vmem:[#allocation1] ss:$4 sm:$0xff] %v1853_v16  ;;  %v2064_v20 = vld [vmem:[#allocation14 + $0x3a8] sm:$0xff]  ;;  %vm4899_vm3 = vcmp.eq.s32.totalorder %v1862_v17, 1  ;;  %v1930_v18 = vperm.slane %v4846_v1, 7 }
 0x33c   : > { %1876 = vst [vmem:[#allocation1 + $0x20] ss:$4 sm:$0xff] %v1850_v13  ;;  %v2124_v4 = vld [vmem:[#allocation14 + $0x588] sm:$0xff] }
 0x33d   : > { %v1996_v9 = vld [vmem:[#allocation14 + $0x188] sm:$0xff] }
 0x33e   : > { %v2120_v10 = vld [vmem:[#allocation14 + $0x568] sm:$0xff] }
 0x33f   : > { %v2188_v2 = vld [vmem:[#allocation14 + $0x788] sm:$0xff] }
 0x340   : > { %v1992_v13 = vld [vmem:[#allocation14 + $0x168] sm:$0xff] }
 0x341   : > { %v2036_v17 = vld [vmem:[#allocation14 + $0x2c8] sm:$0xff] }
 0x342   : > { %v1900_v54 = vld.sshfl [vmem:[#allocation1 + $0x10] sm:$0xff pattern:$0x73625140]  ;;  %v1898_v28 = vld.sshfl [vmem:[#allocation1] sm:$0xff pattern:$0x73625140] }
 0x343   : > { %v1916_v41 = vsel %vm4852_vm15, %v1879_v24, %v1900_v54  ;;  %v1914_v29 = vsel %vm4857_vm0, %v1877_v15, %v1898_v28  ;;  %v1901_v52 = vld.sshfl [vmem:[#allocation1 + $0x18] sm:$0xff pattern:$0x73625140]  ;;  %v1899_v36 = vld.sshfl [vmem:[#allocation1 + $0x8] sm:$0xff pattern:$0x73625140] }
 0x344   : > { %v4876_v37 = vadd.f32 %v1925_v23, %v1916_v41  ;;  %v4878_v38 = vadd.f32 %v1923_v14, %v1914_v29  ;;  %v1917_v48 = vsel %vm4862_vm1, %v1880_v25, %v1901_v52  ;;  %v1915_v8 = vsel %vm4867_vm2, %v1878_v45, %v1899_v36  ;;  %v1881_v27 = vld.sshfl [vmem:[#allocation1 + $0x20] sm:$0xff pattern:$0x73625140]  ;;  %v4884_v58 = vld.sshfl [vmem:[#allocation1 + $0x28] sm:$0xff pattern:$0x73625140] }
 0x345   : > { %v4886_v32 = vadd.f32 %v1926_v46, %v1917_v48  ;;  %v4888_v47 = vadd.f32 %v1924_v33, %v1915_v8  ;;  %v1883_v11 = vld.sshfl [vmem:[#allocation1 + $0x30] sm:$0xff pattern:$0x73625140]  ;;  %v1884_v31 = vld.sshfl [vmem:[#allocation1 + $0x38] sm:$0xff pattern:$0x73625140] }
 0x346   : > { %2525 = vmatmul.f32.vlgmr.msra.gmra.mxu2 %v4876_v37  ;;  %2485 = vmatmul.f32.vlgmr.msra.gmra.mxu0 %v4878_v38  ;;  %1897 = vst [vmem:[#allocation1 + $0x20] ss:$4 sm:$0xff] %v1854_v40  ;;  %v2116_v14 = vld [vmem:[#allocation14 + $0x548] sm:$0xff] }
 0x347   : > { %2545 = vmatmul.f32.vlgmr.msra.gmra.mxu3 %v4886_v32  ;;  %2505 = vmatmul.f32.vlgmr.msra.gmra.mxu1 %v4888_v47  ;;  %v1988_v46 = vld [vmem:[#allocation14 + $0x148] sm:$0xff] }
 0x348   : > { %2669 = vmatpush.msra.mxu2 %v2136_v55  ;;  %2629 = vmatpush.msra.mxu0 %v2008_v51  ;;  %v2112_v33 = vld [vmem:[#allocation14 + $0x528] sm:$0xff] }
 0x349   : > { %2689 = vmatpush.msra.mxu3 %v2200_v35  ;;  %2649 = vmatpush.msra.mxu1 %v2072_v39  ;;  %v2180_v54 = vld [vmem:[#allocation14 + $0x748] sm:$0xff] }
 0x34a   : > { %2670 = vmatpush.msra.mxu2 %v2132_v56  ;;  %2630 = vmatpush.msra.mxu0 %v2004_v19  ;;  %v1984_v28 = vld [vmem:[#allocation14 + $0x128] sm:$0xff] }
 0x34b   : > { %2690 = vmatpush.msra.mxu3 %v2196_v61  ;;  %2650 = vmatpush.msra.mxu1 %v2068_v0  ;;  %v2052_v40 = vld [vmem:[#allocation14 + $0x348] sm:$0xff] }
 0x34c   : > { %2671 = vmatpush.msra.mxu2 %v2128_v43  ;;  %2631 = vmatpush.msra.mxu0 %v2000_v53  ;;  %v2108_v41 = vld [vmem:[#allocation14 + $0x508] sm:$0xff] }
 0x34d   : > { %v1904_v15 = vld.sshfl [vmem:[#allocation1 + $0x30] sm:$0xff pattern:$0x73625140]  ;;  %v1902_v45 = vld.sshfl [vmem:[#allocation1 + $0x20] sm:$0xff pattern:$0x73625140]  ;;  %2691 = vmatpush.msra.mxu3 %v2192_v44  ;;  %2651 = vmatpush.msra.mxu1 %v2064_v20 }
 0x34e   : > { %v1920_v24 = vsel %vm4899_vm3, %v1883_v11, %v1904_v15  ;;  %v1918_v25 = vsel %vm4903_vm5, %v1881_v27, %v1902_v45  ;;  %v1905_v26 = vld.sshfl [vmem:[#allocation1 + $0x38] sm:$0xff pattern:$0x73625140]  ;;  %2672 = vmatpush.msra.mxu2 %v2124_v4  ;;  %v1903_v49 = vld.sshfl [vmem:[#allocation1 + $0x28] sm:$0xff pattern:$0x73625140]  ;;  %2632 = vmatpush.msra.mxu0 %v1996_v9 }
 0x34f   : > { %v4922_v50 = vadd.f32 %v1929_v57, %v1920_v24  ;;  %v4924_v1 = vadd.f32 %v1927_v63, %v1918_v25  ;;  %v1921_v34 = vsel %vm4909_vm6, %v1884_v31, %v1905_v26  ;;  %v1919_v22 = vsel %vm4913_vm9, %v4884_v58, %v1903_v49  ;;  %2692 = vmatpush.msra.mxu3 %v2188_v2  ;;  %v2176_v29 = vld [vmem:[#allocation14 + $0x728] sm:$0xff] }
 0x350   : > { %v4931_v21 = vadd.f32 %v1930_v18, %v1921_v34  ;;  %v4933_v23 = vadd.f32 %v1928_v60, %v1919_v22  ;;  %2673 = vmatpush.msra.mxu2 %v2120_v10  ;;  %2633 = vmatpush.msra.mxu0 %v1992_v13  ;;  %v1980_v52 = vld [vmem:[#allocation14 + $0x108] sm:$0xff] }
 0x351   : > { %2605 = vmatmul.f32.vlgmr.msrb.gmra.mxu2 %v4922_v50  ;;  %2565 = vmatmul.f32.vlgmr.msrb.gmra.mxu0 %v4924_v1  ;;  %v2048_v36 = vld [vmem:[#allocation14 + $0x328] sm:$0xff] }
 0x352   : > { %2625 = vmatmul.f32.vlgmr.msrb.gmra.mxu3 %v4931_v21  ;;  %2585 = vmatmul.f32.vlgmr.msrb.gmra.mxu1 %v4933_v23  ;;  %v2104_v55 = vld [vmem:[#allocation14 + $0x4e8] sm:$0xff] }
 0x353   : > { %2652 = vmatpush.msra.mxu1 %v2060_v12  ;;  %2674 = vmatpush.msra.mxu2 %v2116_v14  ;;  %v2172_v51 = vld [vmem:[#allocation14 + $0x708] sm:$0xff] }
 0x354   : > { %2693 = vmatpush.msra.mxu3 %v2184_v3  ;;  %2634 = vmatpush.msra.mxu0 %v1988_v46  ;;  %v1976_v48 = vld [vmem:[#allocation14 + $0xe8] sm:$0xff] }
 0x355   : > { %2653 = vmatpush.msra.mxu1 %v2056_v30  ;;  %2675 = vmatpush.msra.mxu2 %v2112_v33  ;;  %v2044_v8 = vld [vmem:[#allocation14 + $0x308] sm:$0xff] }
 0x356   : > { %2694 = vmatpush.msra.mxu3 %v2180_v54  ;;  %2635 = vmatpush.msra.mxu0 %v1984_v28  ;;  %v2100_v27 = vld [vmem:[#allocation14 + $0x4c8] sm:$0xff] }
 0x357   : > { %2654 = vmatpush.msra.mxu1 %v2052_v40  ;;  %2676 = vmatpush.msra.mxu2 %v2108_v41  ;;  %v2168_v58 = vld [vmem:[#allocation14 + $0x6e8] sm:$0xff] }
 0x358   : > { %2695 = vmatpush.msra.mxu3 %v2176_v29  ;;  %2636 = vmatpush.msra.mxu0 %v1980_v52  ;;  %v1972_v11 = vld [vmem:[#allocation14 + $0xc8] sm:$0xff] }
 0x359   : > { %2655 = vmatpush.msra.mxu1 %v2048_v36  ;;  %2677 = vmatpush.msra.mxu2 %v2104_v55  ;;  %v2040_v31 = vld [vmem:[#allocation14 + $0x2e8] sm:$0xff] }
 0x35a   : > { %2696 = vmatpush.msra.mxu3 %v2172_v51  ;;  %2637 = vmatpush.msra.mxu0 %v1976_v48  ;;  %v2096_v35 = vld [vmem:[#allocation14 + $0x4a8] sm:$0xff] }
 0x35b   : > { %2656 = vmatpush.msra.mxu1 %v2044_v8  ;;  %2678 = vmatpush.msra.mxu2 %v2100_v27  ;;  %v2164_v39 = vld [vmem:[#allocation14 + $0x6c8] sm:$0xff] }
 0x35c   : > { %v1968_v56 = vld [vmem:[#allocation14 + $0xa8] sm:$0xff]  ;;  %2697 = vmatpush.msra.mxu3 %v2168_v58  ;;  %2638 = vmatpush.msra.mxu0 %v1972_v11 }
 0x35d   : > { %v2092_v19 = vld [vmem:[#allocation14 + $0x488] sm:$0xff]  ;;  %2657 = vmatpush.msra.mxu1 %v2040_v31  ;;  %2679 = vmatpush.msra.mxu2 %v2096_v35 }
 0x35e   : > { %v2160_v42 = vld [vmem:[#allocation14 + $0x6a8] sm:$0xff]  ;;  %2698 = vmatpush.msra.mxu3 %v2164_v39  ;;  %2639 = vmatpush.msra.mxu0 %v1968_v56 }
 0x35f   : > { %v1964_v61 = vld [vmem:[#allocation14 + $0x88] sm:$0xff]  ;;  %2658 = vmatpush.msra.mxu1 %v2036_v17  ;;  %2680 = vmatpush.msra.mxu2 %v2092_v19 }
 0x360   : > { %v2032_v5 = vld [vmem:[#allocation14 + $0x2a8] sm:$0xff]  ;;  %2699 = vmatpush.msra.mxu3 %v2160_v42  ;;  %2640 = vmatpush.msra.mxu0 %v1964_v61 }
 0x361   : > { %v2088_v0 = vld [vmem:[#allocation14 + $0x468] sm:$0xff]  ;;  %2659 = vmatpush.msra.mxu1 %v2032_v5 }
 0x362   : > { %v2156_v62 = vld [vmem:[#allocation14 + $0x688] sm:$0xff]  ;;  %2681 = vmatpush.msra.mxu2 %v2088_v0 }
 0x363   : > { %v1960_v43 = vld [vmem:[#allocation14 + $0x68] sm:$0xff]  ;;  %2700 = vmatpush.msra.mxu3 %v2156_v62 }
 0x364   : > { %v2028_v53 = vld [vmem:[#allocation14 + $0x288] sm:$0xff]  ;;  %2641 = vmatpush.msra.mxu0 %v1960_v43 }
 0x365   : > { %v2084_v57 = vld [vmem:[#allocation14 + $0x448] sm:$0xff]  ;;  %2660 = vmatpush.msra.mxu1 %v2028_v53 }
 0x366   : > { %v2152_v44 = vld [vmem:[#allocation14 + $0x668] sm:$0xff]  ;;  %2682 = vmatpush.msra.mxu2 %v2084_v57 }
 0x367   : > { %v1956_v20 = vld [vmem:[#allocation14 + $0x48] sm:$0xff]  ;;  %2701 = vmatpush.msra.mxu3 %v2152_v44 }
 0x368   : > { %v2024_v6 = vld [vmem:[#allocation14 + $0x268] sm:$0xff]  ;;  %2642 = vmatpush.msra.mxu0 %v1956_v20 }
 0x369   : > { %v2080_v7 = vld [vmem:[#allocation14 + $0x428] sm:$0xff]  ;;  %2661 = vmatpush.msra.mxu1 %v2024_v6 }
 0x36a   : > { %v2148_v63 = vld [vmem:[#allocation14 + $0x648] sm:$0xff]  ;;  %2683 = vmatpush.msra.mxu2 %v2080_v7 }
 0x36b   : > { %v1952_v18 = vld [vmem:[#allocation14 + $0x28] sm:$0xff]  ;;  %2702 = vmatpush.msra.mxu3 %v2148_v63 }
 0x36c   : > { %v2020_v4 = vld [vmem:[#allocation14 + $0x248] sm:$0xff]  ;;  %2643 = vmatpush.msra.mxu0 %v1952_v18 }
 0x36d   : > { %v2076_v9 = vld [vmem:[#allocation14 + $0x408] sm:$0xff]  ;;  %2662 = vmatpush.msra.mxu1 %v2020_v4 }
 0x36e   : > { %v2144_v16 = vld [vmem:[#allocation14 + $0x628] sm:$0xff]  ;;  %2684 = vmatpush.msra.mxu2 %v2076_v9 }
 0x36f   : > { %v2392_v59 = vld [vmem:[#allocation14 + $0xde8] sm:$0xff]  ;;  %2703 = vmatpush.msra.mxu3 %v2144_v16  ;;  %2685 = vmatmul.f32.vlgmr.msra.gmra.mxu2 %v4876_v37 }
 0x370   : > { %v1948_v60 = vld [vmem:[#allocation14 + $0x8] sm:$0xff]  ;;  %2749 = vmatpush.msrb.mxu2 %v2392_v59 }
 0x371   : > { %v2016_v10 = vld [vmem:[#allocation14 + $0x228] sm:$0xff]  ;;  %2644 = vmatpush.msra.mxu0 %v1948_v60 }
 0x372   : > { %v2140_v2 = vld [vmem:[#allocation14 + $0x608] sm:$0xff]  ;;  %2663 = vmatpush.msra.mxu1 %v2016_v10  ;;  %2645 = vmatmul.f32.vlgmr.msra.gmra.mxu0 %v4878_v38 }
 0x373   : > { %v2264_v13 = vld [vmem:[#allocation14 + $0x9e8] sm:$0xff]  ;;  %2704 = vmatpush.msra.mxu3 %v2140_v2 }
 0x374   : > { %v2388_v15 = vld [vmem:[#allocation14 + $0xdc8] sm:$0xff]  ;;  %2709 = vmatpush.msrb.mxu0 %v2264_v13  ;;  %2705 = vmatmul.f32.vlgmr.msra.gmra.mxu3 %v4886_v32 }
 0x375   : > { %v2456_v45 = vld [vmem:[#allocation14 + $0xfe8] sm:$0xff]  ;;  %2750 = vmatpush.msrb.mxu2 %v2388_v15 }
 0x376   : > { %v2012_v24 = vld [vmem:[#allocation14 + $0x208] sm:$0xff]  ;;  %2769 = vmatpush.msrb.mxu3 %v2456_v45 }
 0x377   : > { %v2260_v25 = vld [vmem:[#allocation14 + $0x9c8] sm:$0xff]  ;;  %2664 = vmatpush.msra.mxu1 %v2012_v24 }
 0x378   : > { %v2328_v26 = vld [vmem:[#allocation14 + $0xbe8] sm:$0xff]  ;;  %2710 = vmatpush.msrb.mxu0 %v2260_v25  ;;  %2665 = vmatmul.f32.vlgmr.msra.gmra.mxu1 %v4888_v47  ;;  %v2137_v25 = vld [vmem:[#allocation14 + $0x5f0] sm:$0xff] }
 0x379   : > { %v2384_v49 = vld [vmem:[#allocation14 + $0xda8] sm:$0xff]  ;;  %2729 = vmatpush.msrb.mxu1 %v2328_v26 }
 0x37a   : > { %v2452_v34 = vld [vmem:[#allocation14 + $0xfc8] sm:$0xff]  ;;  %2751 = vmatpush.msrb.mxu2 %v2384_v49 }
 0x37b   : > { %v2256_v22 = vld [vmem:[#allocation14 + $0x9a8] sm:$0xff]  ;;  %2770 = vmatpush.msrb.mxu3 %v2452_v34 }
 0x37c   : > { %v2324_v12 = vld [vmem:[#allocation14 + $0xbc8] sm:$0xff]  ;;  %2711 = vmatpush.msrb.mxu0 %v2256_v22  ;;  %v2009_v22 = vld [vmem:[#allocation14 + $0x1f0] sm:$0xff] }
 0x37d   : > { %v2380_v14 = vld [vmem:[#allocation14 + $0xd88] sm:$0xff]  ;;  %2730 = vmatpush.msrb.mxu1 %v2324_v12  ;;  %v2133_v12 = vld [vmem:[#allocation14 + $0x5d0] sm:$0xff] }
 0x37e   : > { %v2448_v3 = vld [vmem:[#allocation14 + $0xfa8] sm:$0xff]  ;;  %2752 = vmatpush.msrb.mxu2 %v2380_v14  ;;  %v2201_v14 = vld [vmem:[#allocation14 + $0x7f0] sm:$0xff] }
 0x37f   : > { %v2252_v46 = vld [vmem:[#allocation14 + $0x988] sm:$0xff]  ;;  %2771 = vmatpush.msrb.mxu3 %v2448_v3 }
 0x380   : > { %v2320_v30 = vld [vmem:[#allocation14 + $0xba8] sm:$0xff]  ;;  %2712 = vmatpush.msrb.mxu0 %v2252_v46  ;;  %v2005_v46 = vld [vmem:[#allocation14 + $0x1d0] sm:$0xff] }
 0x381   : > { %v2376_v33 = vld [vmem:[#allocation14 + $0xd68] sm:$0xff]  ;;  %2731 = vmatpush.msrb.mxu1 %v2320_v30  ;;  %v2073_v30 = vld [vmem:[#allocation14 + $0x3f0] sm:$0xff] }
 0x382   : > { %v2444_v54 = vld [vmem:[#allocation14 + $0xf88] sm:$0xff]  ;;  %2753 = vmatpush.msrb.mxu2 %v2376_v33  ;;  %v2129_v33 = vld [vmem:[#allocation14 + $0x5b0] sm:$0xff] }
 0x383   : > { %v2248_v28 = vld [vmem:[#allocation14 + $0x968] sm:$0xff]  ;;  %2772 = vmatpush.msrb.mxu3 %v2444_v54  ;;  %v2197_v54 = vld [vmem:[#allocation14 + $0x7d0] sm:$0xff] }
 0x384   : > { %v2316_v40 = vld [vmem:[#allocation14 + $0xb88] sm:$0xff]  ;;  %2713 = vmatpush.msrb.mxu0 %v2248_v28  ;;  %v2001_v28 = vld [vmem:[#allocation14 + $0x1b0] sm:$0xff] }
 0x385   : > { %v2372_v41 = vld [vmem:[#allocation14 + $0xd48] sm:$0xff]  ;;  %2732 = vmatpush.msrb.mxu1 %v2316_v40  ;;  %v2069_v40 = vld [vmem:[#allocation14 + $0x3d0] sm:$0xff] }
 0x386   : > { %v2440_v29 = vld [vmem:[#allocation14 + $0xf68] sm:$0xff]  ;;  %2754 = vmatpush.msrb.mxu2 %v2372_v41  ;;  %v2125_v41 = vld [vmem:[#allocation14 + $0x590] sm:$0xff] }
 0x387   : > { %v2244_v52 = vld [vmem:[#allocation14 + $0x948] sm:$0xff]  ;;  %2773 = vmatpush.msrb.mxu3 %v2440_v29  ;;  %v2193_v29 = vld [vmem:[#allocation14 + $0x7b0] sm:$0xff] }
 0x388   : > { %v2312_v36 = vld [vmem:[#allocation14 + $0xb68] sm:$0xff]  ;;  %2714 = vmatpush.msrb.mxu0 %v2244_v52  ;;  %v1997_v52 = vld [vmem:[#allocation14 + $0x190] sm:$0xff] }
 0x389   : > { %v2368_v55 = vld [vmem:[#allocation14 + $0xd28] sm:$0xff]  ;;  %2733 = vmatpush.msrb.mxu1 %v2312_v36  ;;  %v2065_v36 = vld [vmem:[#allocation14 + $0x3b0] sm:$0xff] }
 0x38a   : > { %v2436_v51 = vld [vmem:[#allocation14 + $0xf48] sm:$0xff]  ;;  %2755 = vmatpush.msrb.mxu2 %v2368_v55  ;;  %v2121_v55 = vld [vmem:[#allocation14 + $0x570] sm:$0xff] }
 0x38b   : > { %v2240_v48 = vld [vmem:[#allocation14 + $0x928] sm:$0xff]  ;;  %2774 = vmatpush.msrb.mxu3 %v2436_v51  ;;  %v2189_v51 = vld [vmem:[#allocation14 + $0x790] sm:$0xff] }
 0x38c   : > { %v2308_v8 = vld [vmem:[#allocation14 + $0xb48] sm:$0xff]  ;;  %2715 = vmatpush.msrb.mxu0 %v2240_v48  ;;  %v1993_v48 = vld [vmem:[#allocation14 + $0x170] sm:$0xff] }
 0x38d   : > { %v2364_v27 = vld [vmem:[#allocation14 + $0xd08] sm:$0xff]  ;;  %2734 = vmatpush.msrb.mxu1 %v2308_v8  ;;  %v2061_v8 = vld [vmem:[#allocation14 + $0x390] sm:$0xff] }
 0x38e   : > { %v2432_v58 = vld [vmem:[#allocation14 + $0xf28] sm:$0xff]  ;;  %2756 = vmatpush.msrb.mxu2 %v2364_v27  ;;  %v2117_v27 = vld [vmem:[#allocation14 + $0x550] sm:$0xff] }
 0x38f   : > { %v2236_v11 = vld [vmem:[#allocation14 + $0x908] sm:$0xff]  ;;  %2775 = vmatpush.msrb.mxu3 %v2432_v58  ;;  %v2185_v58 = vld [vmem:[#allocation14 + $0x770] sm:$0xff] }
 0x390   : > { %v2304_v31 = vld [vmem:[#allocation14 + $0xb28] sm:$0xff]  ;;  %2716 = vmatpush.msrb.mxu0 %v2236_v11  ;;  %v1989_v11 = vld [vmem:[#allocation14 + $0x150] sm:$0xff] }
 0x391   : > { %v2360_v35 = vld [vmem:[#allocation14 + $0xce8] sm:$0xff]  ;;  %2735 = vmatpush.msrb.mxu1 %v2304_v31  ;;  %v2057_v31 = vld [vmem:[#allocation14 + $0x370] sm:$0xff] }
 0x392   : > { %v2428_v39 = vld [vmem:[#allocation14 + $0xf08] sm:$0xff]  ;;  %2757 = vmatpush.msrb.mxu2 %v2360_v35  ;;  %v2113_v35 = vld [vmem:[#allocation14 + $0x530] sm:$0xff] }
 0x393   : > { %v2232_v56 = vld [vmem:[#allocation14 + $0x8e8] sm:$0xff]  ;;  %2776 = vmatpush.msrb.mxu3 %v2428_v39  ;;  %v2181_v39 = vld [vmem:[#allocation14 + $0x750] sm:$0xff] }
 0x394   : > { %v2300_v17 = vld [vmem:[#allocation14 + $0xb08] sm:$0xff]  ;;  %2717 = vmatpush.msrb.mxu0 %v2232_v56  ;;  %v1985_v56 = vld [vmem:[#allocation14 + $0x130] sm:$0xff] }
 0x395   : > { %v2356_v19 = vld [vmem:[#allocation14 + $0xcc8] sm:$0xff]  ;;  %2736 = vmatpush.msrb.mxu1 %v2300_v17  ;;  %v2053_v17 = vld [vmem:[#allocation14 + $0x350] sm:$0xff] }
 0x396   : > { %v2424_v42 = vld [vmem:[#allocation14 + $0xee8] sm:$0xff]  ;;  %2758 = vmatpush.msrb.mxu2 %v2356_v19  ;;  %v2109_v19 = vld [vmem:[#allocation14 + $0x510] sm:$0xff] }
 0x397   : > { %v2228_v61 = vld [vmem:[#allocation14 + $0x8c8] sm:$0xff]  ;;  %2777 = vmatpush.msrb.mxu3 %v2424_v42  ;;  %v2177_v42 = vld [vmem:[#allocation14 + $0x730] sm:$0xff] }
 0x398   : > { %v2296_v5 = vld [vmem:[#allocation14 + $0xae8] sm:$0xff]  ;;  %2718 = vmatpush.msrb.mxu0 %v2228_v61  ;;  %v1981_v61 = vld [vmem:[#allocation14 + $0x110] sm:$0xff] }
 0x399   : > { %v2352_v0 = vld [vmem:[#allocation14 + $0xca8] sm:$0xff]  ;;  %2737 = vmatpush.msrb.mxu1 %v2296_v5  ;;  %v2049_v5 = vld [vmem:[#allocation14 + $0x330] sm:$0xff] }
 0x39a   : > { %v2420_v62 = vld [vmem:[#allocation14 + $0xec8] sm:$0xff]  ;;  %2759 = vmatpush.msrb.mxu2 %v2352_v0  ;;  %v2105_v0 = vld [vmem:[#allocation14 + $0x4f0] sm:$0xff] }
 0x39b   : > { %v2224_v43 = vld [vmem:[#allocation14 + $0x8a8] sm:$0xff]  ;;  %2778 = vmatpush.msrb.mxu3 %v2420_v62  ;;  %v2173_v62 = vld [vmem:[#allocation14 + $0x710] sm:$0xff] }
 0x39c   : > { %v2292_v53 = vld [vmem:[#allocation14 + $0xac8] sm:$0xff]  ;;  %2719 = vmatpush.msrb.mxu0 %v2224_v43  ;;  %v1977_v43 = vld [vmem:[#allocation14 + $0xf0] sm:$0xff] }
 0x39d   : > { %v2348_v57 = vld [vmem:[#allocation14 + $0xc88] sm:$0xff]  ;;  %2738 = vmatpush.msrb.mxu1 %v2292_v53  ;;  %v2045_v53 = vld [vmem:[#allocation14 + $0x310] sm:$0xff] }
 0x39e   : > { %v2416_v44 = vld [vmem:[#allocation14 + $0xea8] sm:$0xff]  ;;  %2760 = vmatpush.msrb.mxu2 %v2348_v57  ;;  %v2101_v57 = vld [vmem:[#allocation14 + $0x4d0] sm:$0xff] }
 0x39f   : > { %v2220_v20 = vld [vmem:[#allocation14 + $0x888] sm:$0xff]  ;;  %2779 = vmatpush.msrb.mxu3 %v2416_v44  ;;  %v2169_v44 = vld [vmem:[#allocation14 + $0x6f0] sm:$0xff] }
 0x3a0   : > { %v2288_v6 = vld [vmem:[#allocation14 + $0xaa8] sm:$0xff]  ;;  %2720 = vmatpush.msrb.mxu0 %v2220_v20  ;;  %v1973_v20 = vld [vmem:[#allocation14 + $0xd0] sm:$0xff] }
 0x3a1   : > { %v2344_v7 = vld [vmem:[#allocation14 + $0xc68] sm:$0xff]  ;;  %2739 = vmatpush.msrb.mxu1 %v2288_v6  ;;  %v2041_v6 = vld [vmem:[#allocation14 + $0x2f0] sm:$0xff] }
 0x3a2   : > { %v2412_v63 = vld [vmem:[#allocation14 + $0xe88] sm:$0xff]  ;;  %2761 = vmatpush.msrb.mxu2 %v2344_v7  ;;  %v2097_v7 = vld [vmem:[#allocation14 + $0x4b0] sm:$0xff] }
 0x3a3   : > { %v2216_v18 = vld [vmem:[#allocation14 + $0x868] sm:$0xff]  ;;  %2780 = vmatpush.msrb.mxu3 %v2412_v63  ;;  %v2165_v63 = vld [vmem:[#allocation14 + $0x6d0] sm:$0xff] }
 0x3a4   : > { %v2284_v4 = vld [vmem:[#allocation14 + $0xa88] sm:$0xff]  ;;  %2721 = vmatpush.msrb.mxu0 %v2216_v18  ;;  %v1969_v18 = vld [vmem:[#allocation14 + $0xb0] sm:$0xff] }
 0x3a5   : > { %v2340_v9 = vld [vmem:[#allocation14 + $0xc48] sm:$0xff]  ;;  %2740 = vmatpush.msrb.mxu1 %v2284_v4  ;;  %v2037_v4 = vld [vmem:[#allocation14 + $0x2d0] sm:$0xff] }
 0x3a6   : > { %v2408_v16 = vld [vmem:[#allocation14 + $0xe68] sm:$0xff]  ;;  %2762 = vmatpush.msrb.mxu2 %v2340_v9  ;;  %v2093_v9 = vld [vmem:[#allocation14 + $0x490] sm:$0xff] }
 0x3a7   : > { %v2212_v59 = vld [vmem:[#allocation14 + $0x848] sm:$0xff]  ;;  %2781 = vmatpush.msrb.mxu3 %v2408_v16  ;;  %v2161_v16 = vld [vmem:[#allocation14 + $0x6b0] sm:$0xff] }
 0x3a8   : > { %v2280_v60 = vld [vmem:[#allocation14 + $0xa68] sm:$0xff]  ;;  %2722 = vmatpush.msrb.mxu0 %v2212_v59  ;;  %v1965_v59 = vld [vmem:[#allocation14 + $0x90] sm:$0xff] }
 0x3a9   : > { %v2336_v10 = vld [vmem:[#allocation14 + $0xc28] sm:$0xff]  ;;  %2741 = vmatpush.msrb.mxu1 %v2280_v60  ;;  %v2033_v60 = vld [vmem:[#allocation14 + $0x2b0] sm:$0xff] }
 0x3aa   : > { %v2404_v2 = vld [vmem:[#allocation14 + $0xe48] sm:$0xff]  ;;  %2763 = vmatpush.msrb.mxu2 %v2336_v10  ;;  %v2089_v10 = vld [vmem:[#allocation14 + $0x470] sm:$0xff] }
 0x3ab   : > { %v2208_v13 = vld [vmem:[#allocation14 + $0x828] sm:$0xff]  ;;  %2782 = vmatpush.msrb.mxu3 %v2404_v2  ;;  %v2157_v2 = vld [vmem:[#allocation14 + $0x690] sm:$0xff] }
 0x3ac   : > { %v2276_v15 = vld [vmem:[#allocation14 + $0xa48] sm:$0xff]  ;;  %2723 = vmatpush.msrb.mxu0 %v2208_v13  ;;  %v1961_v13 = vld [vmem:[#allocation14 + $0x70] sm:$0xff] }
 0x3ad   : > { %v2332_v45 = vld [vmem:[#allocation14 + $0xc08] sm:$0xff]  ;;  %2742 = vmatpush.msrb.mxu1 %v2276_v15  ;;  %v2029_v15 = vld [vmem:[#allocation14 + $0x290] sm:$0xff] }
 0x3ae   : > { %v2400_v24 = vld [vmem:[#allocation14 + $0xe28] sm:$0xff]  ;;  %2764 = vmatpush.msrb.mxu2 %v2332_v45  ;;  %v2085_v45 = vld [vmem:[#allocation14 + $0x450] sm:$0xff] }
 0x3af   : > { %v2204_v26 = vld [vmem:[#allocation14 + $0x808] sm:$0xff]  ;;  %2783 = vmatpush.msrb.mxu3 %v2400_v24  ;;  %2765 = vmatmul.f32.vlgmr.msrb.gmra.mxu2 %v4922_v50  ;;  %v2153_v24 = vld [vmem:[#allocation14 + $0x670] sm:$0xff] }
 0x3b0   : > { %v2272_v49 = vld [vmem:[#allocation14 + $0xa28] sm:$0xff]  ;;  %2829 = vmatpush.msra.mxu2 %v2137_v25  ;;  %2724 = vmatpush.msrb.mxu0 %v2204_v26  ;;  %v1957_v25 = vld [vmem:[#allocation14 + $0x50] sm:$0xff] }
 0x3b1   : > { %v2396_v34 = vld [vmem:[#allocation14 + $0xe08] sm:$0xff]  ;;  %2743 = vmatpush.msrb.mxu1 %v2272_v49  ;;  %2725 = vmatmul.f32.vlgmr.msrb.gmra.mxu0 %v4924_v1  ;;  %v2025_v26 = vld [vmem:[#allocation14 + $0x270] sm:$0xff] }
 0x3b2   : > { %2784 = vmatpush.msrb.mxu3 %v2396_v34  ;;  %v2268_v3 = vld [vmem:[#allocation14 + $0xa08] sm:$0xff]  ;;  %2789 = vmatpush.msra.mxu0 %v2009_v22  ;;  %v2081_v49 = vld [vmem:[#allocation14 + $0x430] sm:$0xff] }
 0x3b3   : > { %2785 = vmatmul.f32.vlgmr.msrb.gmra.mxu3 %v4931_v21  ;;  %2830 = vmatpush.msra.mxu2 %v2133_v12  ;;  %v2149_v34 = vld [vmem:[#allocation14 + $0x650] sm:$0xff] }
 0x3b4   : > { %2849 = vmatpush.msra.mxu3 %v2201_v14  ;;  %2744 = vmatpush.msrb.mxu1 %v2268_v3  ;;  %v1953_v22 = vld [vmem:[#allocation14 + $0x30] sm:$0xff] }
 0x3b5   : > { %2745 = vmatmul.f32.vlgmr.msrb.gmra.mxu1 %v4933_v23  ;;  %2790 = vmatpush.msra.mxu0 %v2005_v46  ;;  %v2021_v12 = vld [vmem:[#allocation14 + $0x250] sm:$0xff] }
 0x3b6   : > { %2809 = vmatpush.msra.mxu1 %v2073_v30  ;;  %2831 = vmatpush.msra.mxu2 %v2129_v33  ;;  %v2077_v14 = vld [vmem:[#allocation14 + $0x410] sm:$0xff] }
 0x3b7   : > { %2850 = vmatpush.msra.mxu3 %v2197_v54  ;;  %2791 = vmatpush.msra.mxu0 %v2001_v28  ;;  %v2145_v3 = vld [vmem:[#allocation14 + $0x630] sm:$0xff] }
 0x3b8   : > { %2810 = vmatpush.msra.mxu1 %v2069_v40  ;;  %2832 = vmatpush.msra.mxu2 %v2125_v41  ;;  %v2393_v46 = vld [vmem:[#allocation14 + $0xdf0] sm:$0xff] }
 0x3b9   : > { %2851 = vmatpush.msra.mxu3 %v2193_v29  ;;  %2792 = vmatpush.msra.mxu0 %v1997_v52  ;;  %v1949_v30 = vld [vmem:[#allocation14 + $0x10] sm:$0xff] }
 0x3ba   : > { %2811 = vmatpush.msra.mxu1 %v2065_v36  ;;  %2833 = vmatpush.msra.mxu2 %v2121_v55  ;;  %v2017_v33 = vld [vmem:[#allocation14 + $0x230] sm:$0xff] }
 0x3bb   : > { %2852 = vmatpush.msra.mxu3 %v2189_v51  ;;  %2793 = vmatpush.msra.mxu0 %v1993_v48  ;;  %v2141_v54 = vld [vmem:[#allocation14 + $0x610] sm:$0xff] }
 0x3bc   : > { %2812 = vmatpush.msra.mxu1 %v2061_v8  ;;  %2834 = vmatpush.msra.mxu2 %v2117_v27  ;;  %v2265_v28 = vld [vmem:[#allocation14 + $0x9f0] sm:$0xff] }
 0x3bd   : > { %2853 = vmatpush.msra.mxu3 %v2185_v58  ;;  %2794 = vmatpush.msra.mxu0 %v1989_v11  ;;  %v2389_v40 = vld [vmem:[#allocation14 + $0xdd0] sm:$0xff] }
 0x3be   : > { %2813 = vmatpush.msra.mxu1 %v2057_v31  ;;  %2835 = vmatpush.msra.mxu2 %v2113_v35  ;;  %v2457_v41 = vld [vmem:[#allocation14 + $0xff0] sm:$0xff] }
 0x3bf   : > { %2854 = vmatpush.msra.mxu3 %v2181_v39  ;;  %2795 = vmatpush.msra.mxu0 %v1985_v56  ;;  %v2013_v29 = vld [vmem:[#allocation14 + $0x210] sm:$0xff] }
 0x3c0   : > { %2814 = vmatpush.msra.mxu1 %v2053_v17  ;;  %2836 = vmatpush.msra.mxu2 %v2109_v19  ;;  %v2261_v52 = vld [vmem:[#allocation14 + $0x9d0] sm:$0xff] }
 0x3c1   : > { %2855 = vmatpush.msra.mxu3 %v2177_v42  ;;  %2796 = vmatpush.msra.mxu0 %v1981_v61  ;;  %v2329_v36 = vld [vmem:[#allocation14 + $0xbf0] sm:$0xff] }
 0x3c2   : > { %2815 = vmatpush.msra.mxu1 %v2049_v5  ;;  %2837 = vmatpush.msra.mxu2 %v2105_v0  ;;  %v2385_v55 = vld [vmem:[#allocation14 + $0xdb0] sm:$0xff] }
 0x3c3   : > { %2856 = vmatpush.msra.mxu3 %v2173_v62  ;;  %2797 = vmatpush.msra.mxu0 %v1977_v43  ;;  %v2453_v51 = vld [vmem:[#allocation14 + $0xfd0] sm:$0xff] }
 0x3c4   : > { %2816 = vmatpush.msra.mxu1 %v2045_v53  ;;  %2838 = vmatpush.msra.mxu2 %v2101_v57  ;;  %v2257_v48 = vld [vmem:[#allocation14 + $0x9b0] sm:$0xff] }
 0x3c5   : > { %2857 = vmatpush.msra.mxu3 %v2169_v44  ;;  %2798 = vmatpush.msra.mxu0 %v1973_v20  ;;  %v2325_v8 = vld [vmem:[#allocation14 + $0xbd0] sm:$0xff] }
 0x3c6   : > { %2817 = vmatpush.msra.mxu1 %v2041_v6  ;;  %2839 = vmatpush.msra.mxu2 %v2097_v7  ;;  %v2381_v27 = vld [vmem:[#allocation14 + $0xd90] sm:$0xff] }
 0x3c7   : > { %2858 = vmatpush.msra.mxu3 %v2165_v63  ;;  %2799 = vmatpush.msra.mxu0 %v1969_v18  ;;  %v2449_v58 = vld [vmem:[#allocation14 + $0xfb0] sm:$0xff] }
 0x3c8   : > { %2818 = vmatpush.msra.mxu1 %v2037_v4  ;;  %2840 = vmatpush.msra.mxu2 %v2093_v9  ;;  %v2253_v11 = vld [vmem:[#allocation14 + $0x990] sm:$0xff] }
 0x3c9   : > { %2859 = vmatpush.msra.mxu3 %v2161_v16  ;;  %2800 = vmatpush.msra.mxu0 %v1965_v59  ;;  %v2321_v31 = vld [vmem:[#allocation14 + $0xbb0] sm:$0xff] }
 0x3ca   : > { %2819 = vmatpush.msra.mxu1 %v2033_v60  ;;  %2841 = vmatpush.msra.mxu2 %v2089_v10  ;;  %v2377_v35 = vld [vmem:[#allocation14 + $0xd70] sm:$0xff] }
 0x3cb   : > { %2860 = vmatpush.msra.mxu3 %v2157_v2  ;;  %2801 = vmatpush.msra.mxu0 %v1961_v13  ;;  %v2445_v39 = vld [vmem:[#allocation14 + $0xf90] sm:$0xff] }
 0x3cc   : > { %2820 = vmatpush.msra.mxu1 %v2029_v15  ;;  %2842 = vmatpush.msra.mxu2 %v2085_v45  ;;  %v2249_v56 = vld [vmem:[#allocation14 + $0x970] sm:$0xff] }
 0x3cd   : > { %2861 = vmatpush.msra.mxu3 %v2153_v24  ;;  %2802 = vmatpush.msra.mxu0 %v1957_v25  ;;  %v2317_v17 = vld [vmem:[#allocation14 + $0xb90] sm:$0xff] }
 0x3ce   : > { %2821 = vmatpush.msra.mxu1 %v2025_v26  ;;  %2843 = vmatpush.msra.mxu2 %v2081_v49  ;;  %v2373_v19 = vld [vmem:[#allocation14 + $0xd50] sm:$0xff] }
 0x3cf   : > { %2862 = vmatpush.msra.mxu3 %v2149_v34  ;;  %2803 = vmatpush.msra.mxu0 %v1953_v22  ;;  %v2441_v42 = vld [vmem:[#allocation14 + $0xf70] sm:$0xff] }
 0x3d0   : > { %2822 = vmatpush.msra.mxu1 %v2021_v12  ;;  %2844 = vmatpush.msra.mxu2 %v2077_v14  ;;  %v2245_v61 = vld [vmem:[#allocation14 + $0x950] sm:$0xff] }
 0x3d1   : > { %2863 = vmatpush.msra.mxu3 %v2145_v3  ;;  %2804 = vmatpush.msra.mxu0 %v1949_v30  ;;  %v2313_v5 = vld [vmem:[#allocation14 + $0xb70] sm:$0xff] }
 0x3d2   : > { %2909 = vmatpush.msrb.mxu2 %v2393_v46  ;;  %2823 = vmatpush.msra.mxu1 %v2017_v33  ;;  %v2369_v0 = vld [vmem:[#allocation14 + $0xd30] sm:$0xff] }
 0x3d3   : > { %2864 = vmatpush.msra.mxu3 %v2141_v54  ;;  %2869 = vmatpush.msrb.mxu0 %v2265_v28  ;;  %v2437_v62 = vld [vmem:[#allocation14 + $0xf50] sm:$0xff] }
 0x3d4   : > { %2910 = vmatpush.msrb.mxu2 %v2389_v40  ;;  %2824 = vmatpush.msra.mxu1 %v2013_v29  ;;  %v2241_v43 = vld [vmem:[#allocation14 + $0x930] sm:$0xff] }
 0x3d5   : > { %2929 = vmatpush.msrb.mxu3 %v2457_v41  ;;  %2870 = vmatpush.msrb.mxu0 %v2261_v52  ;;  %v2309_v53 = vld [vmem:[#allocation14 + $0xb50] sm:$0xff]  ;;  %v2138_v52 = vld [vmem:[#allocation14 + $0x5f8] sm:$0xff] }
 0x3d6   : > { %2889 = vmatpush.msrb.mxu1 %v2329_v36  ;;  %2911 = vmatpush.msrb.mxu2 %v2385_v55  ;;  %v2365_v57 = vld [vmem:[#allocation14 + $0xd10] sm:$0xff] }
 0x3d7   : > { %2930 = vmatpush.msrb.mxu3 %v2453_v51  ;;  %2871 = vmatpush.msrb.mxu0 %v2257_v48  ;;  %v2433_v44 = vld [vmem:[#allocation14 + $0xf30] sm:$0xff]  ;;  %v2010_v48 = vld [vmem:[#allocation14 + $0x1f8] sm:$0xff] }
 0x3d8   : > { %2890 = vmatpush.msrb.mxu1 %v2325_v8  ;;  %2912 = vmatpush.msrb.mxu2 %v2381_v27  ;;  %v2237_v20 = vld [vmem:[#allocation14 + $0x910] sm:$0xff]  ;;  %v2134_v8 = vld [vmem:[#allocation14 + $0x5d8] sm:$0xff] }
 0x3d9   : > { %2931 = vmatpush.msrb.mxu3 %v2449_v58  ;;  %2872 = vmatpush.msrb.mxu0 %v2253_v11  ;;  %v2305_v6 = vld [vmem:[#allocation14 + $0xb30] sm:$0xff]  ;;  %v2202_v27 = vld [vmem:[#allocation14 + $0x7f8] sm:$0xff] }
 0x3da   : > { %2891 = vmatpush.msrb.mxu1 %v2321_v31  ;;  %2913 = vmatpush.msrb.mxu2 %v2377_v35  ;;  %v2361_v7 = vld [vmem:[#allocation14 + $0xcf0] sm:$0xff]  ;;  %v2006_v11 = vld [vmem:[#allocation14 + $0x1d8] sm:$0xff] }
 0x3db   : > { %2932 = vmatpush.msrb.mxu3 %v2445_v39  ;;  %2873 = vmatpush.msrb.mxu0 %v2249_v56  ;;  %v2429_v63 = vld [vmem:[#allocation14 + $0xf10] sm:$0xff]  ;;  %v2074_v31 = vld [vmem:[#allocation14 + $0x3f8] sm:$0xff] }
 0x3dc   : > { %2892 = vmatpush.msrb.mxu1 %v2317_v17  ;;  %2914 = vmatpush.msrb.mxu2 %v2373_v19  ;;  %v2233_v18 = vld [vmem:[#allocation14 + $0x8f0] sm:$0xff]  ;;  %v2130_v35 = vld [vmem:[#allocation14 + $0x5b8] sm:$0xff] }
 0x3dd   : > { %2933 = vmatpush.msrb.mxu3 %v2441_v42  ;;  %2874 = vmatpush.msrb.mxu0 %v2245_v61  ;;  %v2301_v4 = vld [vmem:[#allocation14 + $0xb10] sm:$0xff]  ;;  %v2198_v39 = vld [vmem:[#allocation14 + $0x7d8] sm:$0xff] }
 0x3de   : > { %2893 = vmatpush.msrb.mxu1 %v2313_v5  ;;  %2915 = vmatpush.msrb.mxu2 %v2369_v0  ;;  %v2357_v9 = vld [vmem:[#allocation14 + $0xcd0] sm:$0xff]  ;;  %v2002_v56 = vld [vmem:[#allocation14 + $0x1b8] sm:$0xff] }
 0x3df   : > { %2934 = vmatpush.msrb.mxu3 %v2437_v62  ;;  %2875 = vmatpush.msrb.mxu0 %v2241_v43  ;;  %v2425_v16 = vld [vmem:[#allocation14 + $0xef0] sm:$0xff]  ;;  %v2070_v17 = vld [vmem:[#allocation14 + $0x3d8] sm:$0xff] }
 0x3e0   : > { %2894 = vmatpush.msrb.mxu1 %v2309_v53  ;;  %2916 = vmatpush.msrb.mxu2 %v2365_v57  ;;  %v2229_v59 = vld [vmem:[#allocation14 + $0x8d0] sm:$0xff]  ;;  %v2126_v19 = vld [vmem:[#allocation14 + $0x598] sm:$0xff] }
 0x3e1   : > { %2935 = vmatpush.msrb.mxu3 %v2433_v44  ;;  %2876 = vmatpush.msrb.mxu0 %v2237_v20  ;;  %v2297_v60 = vld [vmem:[#allocation14 + $0xaf0] sm:$0xff]  ;;  %v2194_v42 = vld [vmem:[#allocation14 + $0x7b8] sm:$0xff] }
 0x3e2   : > { %2895 = vmatpush.msrb.mxu1 %v2305_v6  ;;  %2917 = vmatpush.msrb.mxu2 %v2361_v7  ;;  %v2353_v10 = vld [vmem:[#allocation14 + $0xcb0] sm:$0xff]  ;;  %v1998_v61 = vld [vmem:[#allocation14 + $0x198] sm:$0xff] }
 0x3e3   : > { %2936 = vmatpush.msrb.mxu3 %v2429_v63  ;;  %2877 = vmatpush.msrb.mxu0 %v2233_v18  ;;  %v2421_v2 = vld [vmem:[#allocation14 + $0xed0] sm:$0xff]  ;;  %v2066_v5 = vld [vmem:[#allocation14 + $0x3b8] sm:$0xff] }
 0x3e4   : > { %2896 = vmatpush.msrb.mxu1 %v2301_v4  ;;  %2918 = vmatpush.msrb.mxu2 %v2357_v9  ;;  %v2225_v13 = vld [vmem:[#allocation14 + $0x8b0] sm:$0xff]  ;;  %v2122_v0 = vld [vmem:[#allocation14 + $0x578] sm:$0xff] }
 0x3e5   : > { %2937 = vmatpush.msrb.mxu3 %v2425_v16  ;;  %2878 = vmatpush.msrb.mxu0 %v2229_v59  ;;  %v2293_v15 = vld [vmem:[#allocation14 + $0xad0] sm:$0xff]  ;;  %v2190_v62 = vld [vmem:[#allocation14 + $0x798] sm:$0xff] }
 0x3e6   : > { %v2349_v45 = vld [vmem:[#allocation14 + $0xc90] sm:$0xff]  ;;  %2897 = vmatpush.msrb.mxu1 %v2297_v60  ;;  %2919 = vmatpush.msrb.mxu2 %v2353_v10  ;;  %v1994_v43 = vld [vmem:[#allocation14 + $0x178] sm:$0xff] }
 0x3e7   : > { %v2417_v24 = vld [vmem:[#allocation14 + $0xeb0] sm:$0xff]  ;;  %2938 = vmatpush.msrb.mxu3 %v2421_v2  ;;  %2879 = vmatpush.msrb.mxu0 %v2225_v13  ;;  %v2062_v53 = vld [vmem:[#allocation14 + $0x398] sm:$0xff] }
 0x3e8   : > { %v2221_v25 = vld [vmem:[#allocation14 + $0x890] sm:$0xff]  ;;  %2898 = vmatpush.msrb.mxu1 %v2293_v15  ;;  %2920 = vmatpush.msrb.mxu2 %v2349_v45  ;;  %v2118_v57 = vld [vmem:[#allocation14 + $0x558] sm:$0xff] }
 0x3e9   : > { %v2289_v26 = vld [vmem:[#allocation14 + $0xab0] sm:$0xff]  ;;  %2939 = vmatpush.msrb.mxu3 %v2417_v24  ;;  %2845 = vmatmul.f32.vlgmr.msra.gmra.mxu2 %v4876_v37  ;;  %v2186_v44 = vld [vmem:[#allocation14 + $0x778] sm:$0xff] }
 0x3ea   : > { %v2345_v49 = vld [vmem:[#allocation14 + $0xc70] sm:$0xff]  ;;  %2880 = vmatpush.msrb.mxu0 %v2221_v25  ;;  %2899 = vmatpush.msrb.mxu1 %v2289_v26  ;;  %v1990_v20 = vld [vmem:[#allocation14 + $0x158] sm:$0xff] }
 0x3eb   : > { %v2413_v34 = vld [vmem:[#allocation14 + $0xe90] sm:$0xff]  ;;  %2921 = vmatpush.msrb.mxu2 %v2345_v49  ;;  %2805 = vmatmul.f32.vlgmr.msra.gmra.mxu0 %v4878_v38  ;;  %v2058_v6 = vld [vmem:[#allocation14 + $0x378] sm:$0xff] }
 0x3ec   : > { %v2217_v22 = vld [vmem:[#allocation14 + $0x870] sm:$0xff]  ;;  %2940 = vmatpush.msrb.mxu3 %v2413_v34  ;;  %2825 = vmatmul.f32.vlgmr.msra.gmra.mxu1 %v4888_v47  ;;  %v2114_v7 = vld [vmem:[#allocation14 + $0x538] sm:$0xff] }
 0x3ed   : > { %v2285_v12 = vld [vmem:[#allocation14 + $0xa90] sm:$0xff]  ;;  %2865 = vmatmul.f32.vlgmr.msra.gmra.mxu3 %v4886_v32  ;;  %2881 = vmatpush.msrb.mxu0 %v2217_v22  ;;  %v2182_v63 = vld [vmem:[#allocation14 + $0x758] sm:$0xff] }
 0x3ee   : > { %v2341_v14 = vld [vmem:[#allocation14 + $0xc50] sm:$0xff]  ;;  %2900 = vmatpush.msrb.mxu1 %v2285_v12  ;;  %v1986_v18 = vld [vmem:[#allocation14 + $0x138] sm:$0xff] }
 0x3ef   : > { %v2409_v3 = vld [vmem:[#allocation14 + $0xe70] sm:$0xff]  ;;  %2922 = vmatpush.msrb.mxu2 %v2341_v14  ;;  %v2054_v4 = vld [vmem:[#allocation14 + $0x358] sm:$0xff] }
 0x3f0   : > { %v2213_v46 = vld [vmem:[#allocation14 + $0x850] sm:$0xff]  ;;  %2941 = vmatpush.msrb.mxu3 %v2409_v3  ;;  %v2110_v9 = vld [vmem:[#allocation14 + $0x518] sm:$0xff] }
 0x3f1   : > { %v2281_v30 = vld [vmem:[#allocation14 + $0xa70] sm:$0xff]  ;;  %2882 = vmatpush.msrb.mxu0 %v2213_v46  ;;  %v2178_v16 = vld [vmem:[#allocation14 + $0x738] sm:$0xff] }
 0x3f2   : > { %v2337_v33 = vld [vmem:[#allocation14 + $0xc30] sm:$0xff]  ;;  %2901 = vmatpush.msrb.mxu1 %v2281_v30  ;;  %v1982_v59 = vld [vmem:[#allocation14 + $0x118] sm:$0xff] }
 0x3f3   : > { %v2405_v54 = vld [vmem:[#allocation14 + $0xe50] sm:$0xff]  ;;  %2923 = vmatpush.msrb.mxu2 %v2337_v33  ;;  %v2050_v60 = vld [vmem:[#allocation14 + $0x338] sm:$0xff] }
 0x3f4   : > { %v2209_v28 = vld [vmem:[#allocation14 + $0x830] sm:$0xff]  ;;  %2942 = vmatpush.msrb.mxu3 %v2405_v54  ;;  %v2106_v10 = vld [vmem:[#allocation14 + $0x4f8] sm:$0xff] }
 0x3f5   : > { %v2277_v40 = vld [vmem:[#allocation14 + $0xa50] sm:$0xff]  ;;  %2883 = vmatpush.msrb.mxu0 %v2209_v28  ;;  %v2174_v2 = vld [vmem:[#allocation14 + $0x718] sm:$0xff] }
 0x3f6   : > { %v2333_v41 = vld [vmem:[#allocation14 + $0xc10] sm:$0xff]  ;;  %2902 = vmatpush.msrb.mxu1 %v2277_v40  ;;  %v1978_v13 = vld [vmem:[#allocation14 + $0xf8] sm:$0xff] }
 0x3f7   : > { %v2401_v29 = vld [vmem:[#allocation14 + $0xe30] sm:$0xff]  ;;  %2924 = vmatpush.msrb.mxu2 %v2333_v41  ;;  %v2046_v15 = vld [vmem:[#allocation14 + $0x318] sm:$0xff] }
 0x3f8   : > { %v2205_v36 = vld [vmem:[#allocation14 + $0x810] sm:$0xff]  ;;  %2943 = vmatpush.msrb.mxu3 %v2401_v29  ;;  %2925 = vmatmul.f32.vlgmr.msrb.gmra.mxu2 %v4922_v50  ;;  %v2102_v45 = vld [vmem:[#allocation14 + $0x4d8] sm:$0xff] }
 0x3f9   : > { %v2273_v55 = vld [vmem:[#allocation14 + $0xa30] sm:$0xff]  ;;  %2989 = vmatpush.msra.mxu2 %v2138_v52  ;;  %2884 = vmatpush.msrb.mxu0 %v2205_v36  ;;  %v2170_v24 = vld [vmem:[#allocation14 + $0x6f8] sm:$0xff] }
 0x3fa   : > { %v2397_v51 = vld [vmem:[#allocation14 + $0xe10] sm:$0xff]  ;;  %2903 = vmatpush.msrb.mxu1 %v2273_v55  ;;  %2885 = vmatmul.f32.vlgmr.msrb.gmra.mxu0 %v4924_v1  ;;  %v1974_v25 = vld [vmem:[#allocation14 + $0xd8] sm:$0xff] }
 0x3fb   : > { %2944 = vmatpush.msrb.mxu3 %v2397_v51  ;;  %v2269_v58 = vld [vmem:[#allocation14 + $0xa10] sm:$0xff]  ;;  %2949 = vmatpush.msra.mxu0 %v2010_v48  ;;  %v2042_v26 = vld [vmem:[#allocation14 + $0x2f8] sm:$0xff] }
 0x3fc   : > { %2945 = vmatmul.f32.vlgmr.msrb.gmra.mxu3 %v4931_v21  ;;  %2990 = vmatpush.msra.mxu2 %v2134_v8  ;;  %v2098_v49 = vld [vmem:[#allocation14 + $0x4b8] sm:$0xff] }
 0x3fd   : > { %3009 = vmatpush.msra.mxu3 %v2202_v27  ;;  %2904 = vmatpush.msrb.mxu1 %v2269_v58  ;;  %v2166_v34 = vld [vmem:[#allocation14 + $0x6d8] sm:$0xff] }
 0x3fe   : > { %2905 = vmatmul.f32.vlgmr.msrb.gmra.mxu1 %v4933_v23  ;;  %2950 = vmatpush.msra.mxu0 %v2006_v11  ;;  %v1970_v22 = vld [vmem:[#allocation14 + $0xb8] sm:$0xff] }
 0x3ff   : > { %2969 = vmatpush.msra.mxu1 %v2074_v31  ;;  %2991 = vmatpush.msra.mxu2 %v2130_v35  ;;  %v2038_v12 = vld [vmem:[#allocation14 + $0x2d8] sm:$0xff] }
 0x400   : > { %3010 = vmatpush.msra.mxu3 %v2198_v39  ;;  %2951 = vmatpush.msra.mxu0 %v2002_v56  ;;  %v2094_v14 = vld [vmem:[#allocation14 + $0x498] sm:$0xff] }
 0x401   : > { %2970 = vmatpush.msra.mxu1 %v2070_v17  ;;  %2992 = vmatpush.msra.mxu2 %v2126_v19  ;;  %v2162_v3 = vld [vmem:[#allocation14 + $0x6b8] sm:$0xff] }
 0x402   : > { %3011 = vmatpush.msra.mxu3 %v2194_v42  ;;  %2952 = vmatpush.msra.mxu0 %v1998_v61  ;;  %v1966_v46 = vld [vmem:[#allocation14 + $0x98] sm:$0xff] }
 0x403   : > { %2971 = vmatpush.msra.mxu1 %v2066_v5  ;;  %2993 = vmatpush.msra.mxu2 %v2122_v0  ;;  %v2034_v30 = vld [vmem:[#allocation14 + $0x2b8] sm:$0xff] }
 0x404   : > { %3012 = vmatpush.msra.mxu3 %v2190_v62  ;;  %2953 = vmatpush.msra.mxu0 %v1994_v43  ;;  %v2090_v33 = vld [vmem:[#allocation14 + $0x478] sm:$0xff] }
 0x405   : > { %2972 = vmatpush.msra.mxu1 %v2062_v53  ;;  %2994 = vmatpush.msra.mxu2 %v2118_v57  ;;  %v2158_v54 = vld [vmem:[#allocation14 + $0x698] sm:$0xff] }
 0x406   : > { %3013 = vmatpush.msra.mxu3 %v2186_v44  ;;  %2954 = vmatpush.msra.mxu0 %v1990_v20  ;;  %v1962_v28 = vld [vmem:[#allocation14 + $0x78] sm:$0xff] }
 0x407   : > { %2973 = vmatpush.msra.mxu1 %v2058_v6  ;;  %2995 = vmatpush.msra.mxu2 %v2114_v7  ;;  %v2030_v40 = vld [vmem:[#allocation14 + $0x298] sm:$0xff] }
 0x408   : > { %3014 = vmatpush.msra.mxu3 %v2182_v63  ;;  %2955 = vmatpush.msra.mxu0 %v1986_v18  ;;  %v2086_v41 = vld [vmem:[#allocation14 + $0x458] sm:$0xff] }
 0x409   : > { %2974 = vmatpush.msra.mxu1 %v2054_v4  ;;  %2996 = vmatpush.msra.mxu2 %v2110_v9  ;;  %v2154_v29 = vld [vmem:[#allocation14 + $0x678] sm:$0xff] }
 0x40a   : > { %3015 = vmatpush.msra.mxu3 %v2178_v16  ;;  %2956 = vmatpush.msra.mxu0 %v1982_v59  ;;  %v1958_v52 = vld [vmem:[#allocation14 + $0x58] sm:$0xff] }
 0x40b   : > { %2975 = vmatpush.msra.mxu1 %v2050_v60  ;;  %2997 = vmatpush.msra.mxu2 %v2106_v10  ;;  %v2026_v36 = vld [vmem:[#allocation14 + $0x278] sm:$0xff] }
 0x40c   : > { %3016 = vmatpush.msra.mxu3 %v2174_v2  ;;  %2957 = vmatpush.msra.mxu0 %v1978_v13  ;;  %v2082_v55 = vld [vmem:[#allocation14 + $0x438] sm:$0xff] }
 0x40d   : > { %2976 = vmatpush.msra.mxu1 %v2046_v15  ;;  %2998 = vmatpush.msra.mxu2 %v2102_v45  ;;  %v2150_v51 = vld [vmem:[#allocation14 + $0x658] sm:$0xff] }
 0x40e   : > { %3017 = vmatpush.msra.mxu3 %v2170_v24  ;;  %2958 = vmatpush.msra.mxu0 %v1974_v25  ;;  %v1954_v48 = vld [vmem:[#allocation14 + $0x38] sm:$0xff] }
 0x40f   : > { %2977 = vmatpush.msra.mxu1 %v2042_v26  ;;  %2999 = vmatpush.msra.mxu2 %v2098_v49  ;;  %v2022_v8 = vld [vmem:[#allocation14 + $0x258] sm:$0xff] }
 0x410   : > { %3018 = vmatpush.msra.mxu3 %v2166_v34  ;;  %2959 = vmatpush.msra.mxu0 %v1970_v22  ;;  %v2078_v27 = vld [vmem:[#allocation14 + $0x418] sm:$0xff] }
 0x411   : > { %2978 = vmatpush.msra.mxu1 %v2038_v12  ;;  %3000 = vmatpush.msra.mxu2 %v2094_v14  ;;  %v2146_v58 = vld [vmem:[#allocation14 + $0x638] sm:$0xff] }
 0x412   : > { %3019 = vmatpush.msra.mxu3 %v2162_v3  ;;  %2960 = vmatpush.msra.mxu0 %v1966_v46  ;;  %v2394_v11 = vld [vmem:[#allocation14 + $0xdf8] sm:$0xff] }
 0x413   : > { %2979 = vmatpush.msra.mxu1 %v2034_v30  ;;  %3001 = vmatpush.msra.mxu2 %v2090_v33  ;;  %v1950_v31 = vld [vmem:[#allocation14 + $0x18] sm:$0xff] }
 0x414   : > { %3020 = vmatpush.msra.mxu3 %v2158_v54  ;;  %2961 = vmatpush.msra.mxu0 %v1962_v28  ;;  %v2018_v35 = vld [vmem:[#allocation14 + $0x238] sm:$0xff] }
 0x415   : > { %2980 = vmatpush.msra.mxu1 %v2030_v40  ;;  %3002 = vmatpush.msra.mxu2 %v2086_v41  ;;  %v2142_v39 = vld [vmem:[#allocation14 + $0x618] sm:$0xff] }
 0x416   : > { %3021 = vmatpush.msra.mxu3 %v2154_v29  ;;  %2962 = vmatpush.msra.mxu0 %v1958_v52  ;;  %v2266_v56 = vld [vmem:[#allocation14 + $0x9f8] sm:$0xff] }
 0x417   : > { %2981 = vmatpush.msra.mxu1 %v2026_v36  ;;  %3003 = vmatpush.msra.mxu2 %v2082_v55  ;;  %v2390_v17 = vld [vmem:[#allocation14 + $0xdd8] sm:$0xff] }
 0x418   : > { %3022 = vmatpush.msra.mxu3 %v2150_v51  ;;  %2963 = vmatpush.msra.mxu0 %v1954_v48  ;;  %v2458_v19 = vld [vmem:[#allocation14 + $0xff8] sm:$0xff] }
 0x419   : > { %2982 = vmatpush.msra.mxu1 %v2022_v8  ;;  %3004 = vmatpush.msra.mxu2 %v2078_v27  ;;  %v2014_v42 = vld [vmem:[#allocation14 + $0x218] sm:$0xff] }
 0x41a   : > { %3023 = vmatpush.msra.mxu3 %v2146_v58  ;;  %2964 = vmatpush.msra.mxu0 %v1950_v31  ;;  %v2262_v61 = vld [vmem:[#allocation14 + $0x9d8] sm:$0xff] }
 0x41b   : > { %3069 = vmatpush.msrb.mxu2 %v2394_v11  ;;  %2983 = vmatpush.msra.mxu1 %v2018_v35  ;;  %v2330_v5 = vld [vmem:[#allocation14 + $0xbf8] sm:$0xff] }
 0x41c   : > { %3024 = vmatpush.msra.mxu3 %v2142_v39  ;;  %3029 = vmatpush.msrb.mxu0 %v2266_v56  ;;  %v2386_v0 = vld [vmem:[#allocation14 + $0xdb8] sm:$0xff] }
 0x41d   : > { %3070 = vmatpush.msrb.mxu2 %v2390_v17  ;;  %v2454_v62 = vld [vmem:[#allocation14 + $0xfd8] sm:$0xff]  ;;  %2984 = vmatpush.msra.mxu1 %v2014_v42 }
 0x41e   : > { %3089 = vmatpush.msrb.mxu3 %v2458_v19  ;;  %v2258_v43 = vld [vmem:[#allocation14 + $0x9b8] sm:$0xff]  ;;  %3030 = vmatpush.msrb.mxu0 %v2262_v61 }
 0x41f   : > { %v2326_v53 = vld [vmem:[#allocation14 + $0xbd8] sm:$0xff]  ;;  %3049 = vmatpush.msrb.mxu1 %v2330_v5  ;;  %3071 = vmatpush.msrb.mxu2 %v2386_v0  ;;  %v2506_v5 = vpop.f32.mrf.mxu1  ;;  %v2526_v0 = vpop.f32.mrf.mxu2 }
 0x420   : > { %v2382_v57 = vld [vmem:[#allocation14 + $0xd98] sm:$0xff]  ;;  %3090 = vmatpush.msrb.mxu3 %v2454_v62  ;;  %3031 = vmatpush.msrb.mxu0 %v2258_v43  ;;  %v2546_v43 = vpop.f32.mrf.mxu3 }
 0x421   : > { %v2450_v44 = vld [vmem:[#allocation14 + $0xfb8] sm:$0xff]  ;;  %3050 = vmatpush.msrb.mxu1 %v2326_v53  ;;  %3072 = vmatpush.msrb.mxu2 %v2382_v57 }
 0x422   : > { %v2254_v20 = vld [vmem:[#allocation14 + $0x998] sm:$0xff]  ;;  %3091 = vmatpush.msrb.mxu3 %v2450_v44  ;;  %3005 = vmatmul.f32.vlgmr.msra.gmra.mxu2 %v4876_v37 }
 0x423   : > { %v2322_v6 = vld [vmem:[#allocation14 + $0xbb8] sm:$0xff]  ;;  %3032 = vmatpush.msrb.mxu0 %v2254_v20  ;;  %3025 = vmatmul.f32.vlgmr.msra.gmra.mxu3 %v4886_v32 }
 0x424   : > { %v2378_v7 = vld [vmem:[#allocation14 + $0xd78] sm:$0xff]  ;;  %3051 = vmatpush.msrb.mxu1 %v2322_v6  ;;  %2965 = vmatmul.f32.vlgmr.msra.gmra.mxu0 %v4878_v38 }
 0x425   : > { %v2446_v63 = vld [vmem:[#allocation14 + $0xf98] sm:$0xff]  ;;  %3073 = vmatpush.msrb.mxu2 %v2378_v7  ;;  %2985 = vmatmul.f32.vlgmr.msra.gmra.mxu1 %v4888_v47  ;;  %v2486_v47 = vpop.f32.mrf.mxu0 }
 0x426   : > { %v2250_v18 = vld [vmem:[#allocation14 + $0x978] sm:$0xff]  ;;  %3092 = vmatpush.msrb.mxu3 %v2446_v63 }
 0x427   : > { %v2318_v4 = vld [vmem:[#allocation14 + $0xb98] sm:$0xff]  ;;  %3033 = vmatpush.msrb.mxu0 %v2250_v18  ;;  %v2586_v53 = vpop.f32.mrf.mxu1  ;;  %v2606_v57 = vpop.f32.mrf.mxu2 }
 0x428   : > { %v2374_v9 = vld [vmem:[#allocation14 + $0xd58] sm:$0xff]  ;;  %3052 = vmatpush.msrb.mxu1 %v2318_v4 }
 0x429   : > { %v2442_v16 = vld [vmem:[#allocation14 + $0xf78] sm:$0xff]  ;;  %3074 = vmatpush.msrb.mxu2 %v2374_v9 }
 0x42a   : > { %v2246_v59 = vld [vmem:[#allocation14 + $0x958] sm:$0xff]  ;;  %3093 = vmatpush.msrb.mxu3 %v2442_v16 }
 0x42b   : > { %v2314_v60 = vld [vmem:[#allocation14 + $0xb78] sm:$0xff]  ;;  %3034 = vmatpush.msrb.mxu0 %v2246_v59 }
 0x42c   : > { %v2370_v10 = vld [vmem:[#allocation14 + $0xd38] sm:$0xff]  ;;  %3053 = vmatpush.msrb.mxu1 %v2314_v60 }
 0x42d   : > { %v2438_v2 = vld [vmem:[#allocation14 + $0xf58] sm:$0xff]  ;;  %3075 = vmatpush.msrb.mxu2 %v2370_v10  ;;  %v2566_v62 = vpop.f32.mrf.mxu0 }
 0x42e   : > { %v2242_v13 = vld [vmem:[#allocation14 + $0x938] sm:$0xff]  ;;  %3094 = vmatpush.msrb.mxu3 %v2438_v2 }
 0x42f   : > { %v2310_v15 = vld [vmem:[#allocation14 + $0xb58] sm:$0xff]  ;;  %3035 = vmatpush.msrb.mxu0 %v2242_v13  ;;  %v2666_v20 = vpop.f32.mrf.mxu1  ;;  %v2686_v6 = vpop.f32.mrf.mxu2 }
 0x430   : > { %v2366_v45 = vld [vmem:[#allocation14 + $0xd18] sm:$0xff]  ;;  %3054 = vmatpush.msrb.mxu1 %v2310_v15 }
 0x431   : > { %v2434_v24 = vld [vmem:[#allocation14 + $0xf38] sm:$0xff]  ;;  %3076 = vmatpush.msrb.mxu2 %v2366_v45 }
 0x432   : > { %v2238_v25 = vld [vmem:[#allocation14 + $0x918] sm:$0xff]  ;;  %3095 = vmatpush.msrb.mxu3 %v2434_v24 }
 0x433   : > { %v2306_v26 = vld [vmem:[#allocation14 + $0xb38] sm:$0xff]  ;;  %3036 = vmatpush.msrb.mxu0 %v2238_v25 }
 0x434   : > { %v2362_v49 = vld [vmem:[#allocation14 + $0xcf8] sm:$0xff]  ;;  %3055 = vmatpush.msrb.mxu1 %v2306_v26 }
 0x435   : > { %v2430_v34 = vld [vmem:[#allocation14 + $0xf18] sm:$0xff]  ;;  %3077 = vmatpush.msrb.mxu2 %v2362_v49  ;;  %v2646_v44 = vpop.f32.mrf.mxu0 }
 0x436   : > { %v2234_v22 = vld [vmem:[#allocation14 + $0x8f8] sm:$0xff]  ;;  %3096 = vmatpush.msrb.mxu3 %v2430_v34 }
 0x437   : > { %v2302_v12 = vld [vmem:[#allocation14 + $0xb18] sm:$0xff]  ;;  %3037 = vmatpush.msrb.mxu0 %v2234_v22  ;;  %v2766_v4 = vpop.f32.mrf.mxu2 }
 0x438   : > { %v2358_v14 = vld [vmem:[#allocation14 + $0xcd8] sm:$0xff]  ;;  %3056 = vmatpush.msrb.mxu1 %v2302_v12 }
 0x439   : > { %v2426_v3 = vld [vmem:[#allocation14 + $0xef8] sm:$0xff]  ;;  %3078 = vmatpush.msrb.mxu2 %v2358_v14 }
 0x43a   : > { %v2230_v46 = vld [vmem:[#allocation14 + $0x8d8] sm:$0xff]  ;;  %3097 = vmatpush.msrb.mxu3 %v2426_v3 }
 0x43b   : > { %v2298_v30 = vld [vmem:[#allocation14 + $0xaf8] sm:$0xff]  ;;  %3038 = vmatpush.msrb.mxu0 %v2230_v46 }
 0x43c   : > { %v2354_v33 = vld [vmem:[#allocation14 + $0xcb8] sm:$0xff]  ;;  %3057 = vmatpush.msrb.mxu1 %v2298_v30 }
 0x43d   : > { %v2422_v54 = vld [vmem:[#allocation14 + $0xed8] sm:$0xff]  ;;  %3079 = vmatpush.msrb.mxu2 %v2354_v33  ;;  %v2726_v7 = vpop.f32.mrf.mxu0 }
 0x43e   : > { %v2226_v28 = vld [vmem:[#allocation14 + $0x8b8] sm:$0xff]  ;;  %3098 = vmatpush.msrb.mxu3 %v2422_v54 }
 0x43f   : > { %v2294_v40 = vld [vmem:[#allocation14 + $0xad8] sm:$0xff]  ;;  %3039 = vmatpush.msrb.mxu0 %v2226_v28 }
 0x440   : > { %v2350_v41 = vld [vmem:[#allocation14 + $0xc98] sm:$0xff]  ;;  %3058 = vmatpush.msrb.mxu1 %v2294_v40 }
 0x441   : > { %v2418_v29 = vld [vmem:[#allocation14 + $0xeb8] sm:$0xff]  ;;  %3080 = vmatpush.msrb.mxu2 %v2350_v41 }
 0x442   : > { %v2222_v52 = vld [vmem:[#allocation14 + $0x898] sm:$0xff]  ;;  %3099 = vmatpush.msrb.mxu3 %v2418_v29 }
 0x443   : > { %v2290_v36 = vld [vmem:[#allocation14 + $0xab8] sm:$0xff]  ;;  %3040 = vmatpush.msrb.mxu0 %v2222_v52 }
 0x444   : > { %v2346_v55 = vld [vmem:[#allocation14 + $0xc78] sm:$0xff]  ;;  %3059 = vmatpush.msrb.mxu1 %v2290_v36 }
 0x445   : > { %v2414_v51 = vld [vmem:[#allocation14 + $0xe98] sm:$0xff]  ;;  %3081 = vmatpush.msrb.mxu2 %v2346_v55 }
 0x446   : > { %v2218_v48 = vld [vmem:[#allocation14 + $0x878] sm:$0xff]  ;;  %3100 = vmatpush.msrb.mxu3 %v2414_v51 }
 0x447   : > { %v2286_v8 = vld [vmem:[#allocation14 + $0xa98] sm:$0xff]  ;;  %3041 = vmatpush.msrb.mxu0 %v2218_v48 }
 0x448   : > { %v2342_v27 = vld [vmem:[#allocation14 + $0xc58] sm:$0xff]  ;;  %3060 = vmatpush.msrb.mxu1 %v2286_v8 }
 0x449   : > { %v2410_v58 = vld [vmem:[#allocation14 + $0xe78] sm:$0xff]  ;;  %3082 = vmatpush.msrb.mxu2 %v2342_v27 }
 0x44a   : > { %v2214_v11 = vld [vmem:[#allocation14 + $0x858] sm:$0xff]  ;;  %3101 = vmatpush.msrb.mxu3 %v2410_v58 }
 0x44b   : > { %v2282_v31 = vld [vmem:[#allocation14 + $0xa78] sm:$0xff]  ;;  %3042 = vmatpush.msrb.mxu0 %v2214_v11 }
 0x44c   : > { %v2338_v35 = vld [vmem:[#allocation14 + $0xc38] sm:$0xff]  ;;  %3061 = vmatpush.msrb.mxu1 %v2282_v31 }
 0x44d   : > { %v2406_v37 = vld [vmem:[#allocation14 + $0xe58] sm:$0xff]  ;;  %3083 = vmatpush.msrb.mxu2 %v2338_v35 }
 0x44e   : > { %v2210_v39 = vld [vmem:[#allocation14 + $0x838] sm:$0xff]  ;;  %3102 = vmatpush.msrb.mxu3 %v2406_v37 }
 0x44f   : > { %v2278_v56 = vld [vmem:[#allocation14 + $0xa58] sm:$0xff]  ;;  %3043 = vmatpush.msrb.mxu0 %v2210_v39 }
 0x450   : > { %v2334_v17 = vld [vmem:[#allocation14 + $0xc18] sm:$0xff]  ;;  %3062 = vmatpush.msrb.mxu1 %v2278_v56  ;;  %v4338_v56 = vmov 2.0  }
 0x451   : > { %v2402_v19 = vld [vmem:[#allocation14 + $0xe38] sm:$0xff]  ;;  %3084 = vmatpush.msrb.mxu2 %v2334_v17  ;;  %4054 = vrcp.f32 %v4338_v56  ;;  %v3388_v56 = vld [vmem:[#allocation16 + $0x2b0] sm:$0xff] }
 0x452   : > { %v2206_v38 = vld [vmem:[#allocation14 + $0x818] sm:$0xff]  ;;  %3103 = vmatpush.msrb.mxu3 %v2402_v19  ;;  %3085 = vmatmul.f32.vlgmr.msrb.gmra.mxu2 %v4922_v50  ;;  %v2626_v50 = vpop.f32.mrf.mxu3 }
 0x453   : > { %v2274_v32 = vld [vmem:[#allocation14 + $0xa38] sm:$0xff]  ;;  %3044 = vmatpush.msrb.mxu0 %v2206_v38 }
 0x454   : > { %v2398_v42 = vld [vmem:[#allocation14 + $0xe18] sm:$0xff]  ;;  %3063 = vmatpush.msrb.mxu1 %v2274_v32  ;;  %3045 = vmatmul.f32.vlgmr.msrb.gmra.mxu0 %v4924_v1  ;;  %v4966_v1 = vld [vmem:[%s5283_s10] ss:$4 sm:$0xf] }
 0x455   : > { %v2270_v61 = vld [vmem:[#allocation14 + $0xa18] sm:$0xff]  ;;  %3104 = vmatpush.msrb.mxu3 %v2398_v42  ;;  %v2463_v18 = vperm.slane %v4966_v1, 2  ;;  %v2461_v59 = vperm.slane %v4966_v1, 0 }
 0x456   : > { %3105 = vmatmul.f32.vlgmr.msrb.gmra.mxu3 %v4931_v21  ;;  %3064 = vmatpush.msrb.mxu1 %v2270_v61  ;;  %v2746_v21 = vpop.f32.mrf.mxu1 }
 0x457   : > { %3065 = vmatmul.f32.vlgmr.msrb.gmra.mxu1 %v4933_v23  ;;  %v2462_v23 = vperm.slane %v4966_v1, 1  ;;  %v2487_v15 = vadd.f32 %v2486_v47, %v2461_v59  ;;  %v3396_v59 = vld [vmem:[#allocation16 + $0x2f0] sm:$0xff] }
 0x458   : > { %3476 = vmatpush.msra.mxu2 %v3396_v59 }
 0x459   : > { %v2647_v16 = vadd.f32 %v2646_v44, %v2462_v23  ;;  %v2507_v26 = vadd.f32 %v2506_v5, %v2487_v15 }
 0x45a   : > { %v2706_v63 = vpop.f32.mrf.mxu3 }
 0x45b   : > { %v2667_v13 = vadd.f32 %v2666_v20, %v2647_v16  ;;  %v2527_v12 = vadd.f32 %v2526_v0, %v2507_v26  ;;  %v4991_v0 = vpop.eup %4054  ;;  %v3364_v16 = vld [vmem:[#allocation16 + $0x1f0] sm:$0xff]  ;;  %v3394_v26 = vld [vmem:[#allocation16 + $0x2e0] sm:$0xff] }
 0x45c   : > { %v3142_v20 = vmul.f32 2.0, %v4991_v0  ;;  %3456 = vmatpush.msra.mxu1 %v3364_v16  ;;  %3477 = vmatpush.msra.mxu2 %v3394_v26  ;;  %vm3146_vm10 = vweird.f32 %v4991_v0  ;;  %v3348_v26 = vld [vmem:[#allocation16 + $0x170] sm:$0xff] }
 0x45d   : > { %v2687_v25 = vadd.f32 %v2686_v6, %v2667_v13  ;;  %v2547_v30 = vadd.f32 %v2546_v43, %v2527_v12 }
 0x45f   : > { %v2707_v22 = vadd.f32 %v2706_v63, %v2687_v25  ;;  %v2567_v40 = vadd.f32 %v2566_v62, %v2547_v30  ;;  %v3362_v25 = vld [vmem:[#allocation16 + $0x1e0] sm:$0xff] }
 0x460   : > { %3457 = vmatpush.msra.mxu1 %v3362_v25  ;;  %v3316_v25 = vld [vmem:[#allocation16 + $0x70] sm:$0xff] }
 0x461   : > { %v2727_v46 = vadd.f32 %v2726_v7, %v2707_v22  ;;  %v2587_v36 = vadd.f32 %v2586_v53, %v2567_v40  ;;  %v3426_v22 = vld [vmem:[#allocation16 + $0x3e0] sm:$0xff] }
 0x462   : > { %v2786_v10 = vpop.f32.mrf.mxu3 }
 0x463   : > { %v2747_v28 = vadd.f32 %v2746_v21, %v2727_v46  ;;  %v2607_v8 = vadd.f32 %v2606_v57, %v2587_v36  ;;  %v3392_v46 = vld [vmem:[#allocation16 + $0x2d0] sm:$0xff]  ;;  %v3390_v36 = vld [vmem:[#allocation16 + $0x2c0] sm:$0xff] }
 0x464   : > { %3478 = vmatpush.msra.mxu2 %v3392_v46 }
 0x465   : > { %v2767_v52 = vadd.f32 %v2766_v4, %v2747_v28  ;;  %v2627_v11 = vadd.f32 %v2626_v50, %v2607_v8  ;;  %v3143_v4 = vsub.f32 1.0, %v3142_v20 }
 0x466   : > { %3479 = vmatpush.msra.mxu2 %v3390_v36  ;;  %v3344_v36 = vld [vmem:[#allocation16 + $0x150] sm:$0xff] }
 0x467   : > { %v2787_v48 = vadd.f32 %v2786_v10, %v2767_v52  ;;  %v4979_v39 = vmax.f32 %v2627_v11, 0.0  ;;  %v3144_v12 = vmul.f32 %v4991_v0, %v3143_v4  ;;  %v3358_v52 = vld [vmem:[#allocation16 + $0x1c0] sm:$0xff]  ;;  %v3416_v4 = vld [vmem:[#allocation16 + $0x390] sm:$0xff] }
 0x468   : > { %v2806_v9 = vpop.f32.mrf.mxu0  ;;  %3480 = vmatpush.msra.mxu2 %v3388_v56  ;;  %v3342_v56 = vld [vmem:[#allocation16 + $0x140] sm:$0xff] }
 0x469   : > { %v2807_v60 = vadd.f32 %v2806_v9, %v2463_v18  ;;  %v2826_v2 = vpop.f32.mrf.mxu1  ;;  %v4971_v58 = vmax.f32 %v2787_v48, 0.0  ;;  %v3113_v42 = vsel %vm1442_vm4, %v4979_v39, 0.0  ;;  %v3152_v61 = vmul.f32 %v4979_v39, %v4979_v39  ;;  %v3332_v9 = vld [vmem:[#allocation16 + $0xf0] sm:$0xff]  ;;  %v3422_v48 = vld [vmem:[#allocation16 + $0x3c0] sm:$0xff] }
 0x46a   : > { %v3114_v53 = vrot.slane %v3113_v42, 4  ;;  %3436 = vmatpush.msra.mxu0 %v3332_v9  ;;  %v3145_v8 = vadd.f32 %v4991_v0, %v3144_v12 }
 0x46b   : > { %v2827_v45 = vadd.f32 %v2826_v2, %v2807_v60  ;;  %v3120_v35 = vsel %vm1442_vm4, %v4971_v58, 0.0  ;;  %v3153_v37 = vmul.f32 %v4971_v58, %v4971_v58  ;;  %v3156_v57 = vsel %vm1442_vm4, %v3152_v61, 0.0  ;;  %v3428_v2 = vld [vmem:[#allocation16 + $0x3f0] sm:$0xff] }
 0x46c   : > { %v2846_v24 = vpop.f32.mrf.mxu2  ;;  %v3121_v38 = vrot.slane %v3120_v35, 4  ;;  %v3115_v63 = vadd.f32 %v3114_v53, %v3113_v42  ;;  %v3157_v21 = vrot.slane %v3156_v57, 4  ;;  %3496 = vmatpush.msra.mxu3 %v3428_v2  ;;  %v5002_v20 = vsel %vm3146_vm10, %v4991_v0, %v3145_v8  ;;  %v3318_v0 = vld [vmem:[#allocation16 + $0x80] sm:$0xff]  ;;  %v3408_v8 = vld [vmem:[#allocation16 + $0x350] sm:$0xff] }
 0x46d   : > { %v2847_v49 = vadd.f32 %v2846_v24, %v2827_v45  ;;  %v3163_v32 = vsel %vm1442_vm4, %v3153_v37, 0.0  ;;  %v2464_v45 = vperm.slane %v4966_v1, 3  ;;  %v3330_v24 = vld [vmem:[#allocation16 + $0xe0] sm:$0xff]  ;;  %v3356_v37 = vld [vmem:[#allocation16 + $0x1b0] sm:$0xff] }
 0x46e   : > { %v3122_v62 = vadd.f32 %v3121_v38, %v3120_v35  ;;  %v3164_v43 = vrot.slane %v3163_v32, 4  ;;  %v3116_v13 = vrot.slane %v3115_v63, 2  ;;  %v3158_v15 = vadd.f32 %v3157_v21, %v3156_v57  ;;  %3437 = vmatpush.msra.mxu0 %v3330_v24  ;;  %3497 = vmatpush.msra.mxu3 %v3426_v22  ;;  %v3324_v35 = vld [vmem:[#allocation16 + $0xb0] sm:$0xff] }
 0x470   : > { %v2866_v34 = vpop.f32.mrf.mxu3  ;;  %v3123_v6 = vrot.slane %v3122_v62, 2  ;;  %v3165_v7 = vadd.f32 %v3164_v43, %v3163_v32  ;;  %v3117_v28 = vadd.f32 %v3116_v13, %v3115_v63  ;;  %v3159_v40 = vrot.slane %v3158_v15, 2  ;;  %v3420_v32 = vld [vmem:[#allocation16 + $0x3b0] sm:$0xff] }
 0x471   : > { %v2867_v14 = vadd.f32 %v2866_v34, %v2847_v49  ;;  %v3384_v63 = vld [vmem:[#allocation16 + $0x290] sm:$0xff] }
 0x472   : > { %v3124_v60 = vadd.f32 %v3123_v6, %v3122_v62  ;;  %v3166_v10 = vrot.slane %v3165_v7, 2  ;;  %v3118_v42 = vrot.slane %v3117_v28, 1  ;;  %v3160_v61 = vadd.f32 %v3159_v40, %v3158_v15  ;;  %v3386_v62 = vld [vmem:[#allocation16 + $0x2a0] sm:$0xff]  ;;  %v3320_v6 = vld [vmem:[#allocation16 + $0x90] sm:$0xff] }
 0x473   : > { %3481 = vmatpush.msra.mxu2 %v3386_v62  ;;  %v3404_v62 = vld [vmem:[#allocation16 + $0x330] sm:$0xff] }
 0x474   : > { %v3125_v30 = vrot.slane %v3124_v60, 1  ;;  %v3119_v9 = vadd.f32 %v3118_v42, %v3117_v28  ;;  %v3161_v16 = vrot.slane %v3160_v61, 1  ;;  %v3308_v42 = vld [vmem:[#allocation16 + $0x30] sm:$0xff] }
 0x475   : > { %3482 = vmatpush.msra.mxu2 %v3384_v63 }
 0x476   : > { %v3162_v46 = vadd.f32 %v3161_v16, %v3160_v61  ;;  %v3340_v61 = vld [vmem:[#allocation16 + $0x130] sm:$0xff] }
 0x477   : > { %v2886_v3 = vpop.f32.mrf.mxu0  ;;  %v3368_v16 = vld [vmem:[#allocation16 + $0x210] sm:$0xff] }
 0x478   : > { %v2887_v33 = vadd.f32 %v2886_v3, %v2867_v14  ;;  %v3328_v14 = vld [vmem:[#allocation16 + $0xd0] sm:$0xff] }
 0x479   : > { %v3360_v3 = vld [vmem:[#allocation16 + $0x1d0] sm:$0xff]  ;;  %3438 = vmatpush.msra.mxu0 %v3328_v14 }
 0x47a   : > { %3458 = vmatpush.msra.mxu1 %v3360_v3  ;;  %v3412_v14 = vld [vmem:[#allocation16 + $0x370] sm:$0xff]  ;;  %v5014_v3 = vmul.f32 %v5002_v20, %v3119_v9 }
 0x47b   : > { %v2906_v54 = vpop.f32.mrf.mxu1  ;;  %v2926_v29 = vpop.f32.mrf.mxu2  ;;  %v3336_v9 = vld [vmem:[#allocation16 + $0x110] sm:$0xff] }
 0x47c   : > { %v2907_v41 = vadd.f32 %v2906_v54, %v2887_v33  ;;  %v3167_v33 = vadd.f32 %v3166_v10, %v3165_v7  ;;  %v3424_v54 = vld [vmem:[#allocation16 + $0x3d0] sm:$0xff]  ;;  %3459 = vmatpush.msra.mxu1 %v3358_v52  ;;  %v3382_v10 = vld [vmem:[#allocation16 + $0x280] sm:$0xff] }
 0x47d   : > { %3498 = vmatpush.msra.mxu3 %v3424_v54  ;;  %v3352_v7 = vld [vmem:[#allocation16 + $0x190] sm:$0xff]  ;;  %3483 = vmatpush.msra.mxu2 %v3382_v10  ;;  %v3378_v54 = vld [vmem:[#allocation16 + $0x260] sm:$0xff] }
 0x47e   : > { %v2927_v55 = vadd.f32 %v2926_v29, %v2907_v41  ;;  %v3326_v29 = vld [vmem:[#allocation16 + $0xc0] sm:$0xff]  ;;  %3460 = vmatpush.msra.mxu1 %v3356_v37  ;;  %v3312_v52 = vld [vmem:[#allocation16 + $0x50] sm:$0xff] }
 0x47f   : > { %v2946_v51 = vpop.f32.mrf.mxu3  ;;  %3439 = vmatpush.msra.mxu0 %v3326_v29  ;;  %3499 = vmatpush.msra.mxu3 %v3422_v48  ;;  %v3410_v29 = vld [vmem:[#allocation16 + $0x360] sm:$0xff]  ;;  %v3400_v10 = vld [vmem:[#allocation16 + $0x310] sm:$0xff] }
 0x480   : > { %v2947_v27 = vadd.f32 %v2946_v51, %v2927_v55  ;;  %v3310_v37 = vld [vmem:[#allocation16 + $0x40] sm:$0xff] }
 0x481   : > { %3440 = vmatpush.msra.mxu0 %v3324_v35  ;;  %3500 = vmatpush.msra.mxu3 %v3420_v32 }
 0x482   : > { %v4973_v31 = vmax.f32 %v2947_v27, 0.0 }
 0x484   : > { %v3127_v17 = vsel %vm1442_vm4, %v4973_v31, 0.0  ;;  %v3154_v19 = vmul.f32 %v4973_v31, %v4973_v31 }
 0x485   : > { %v3128_v47 = vrot.slane %v3127_v17, 4 }
 0x486   : > { %v3170_v5 = vsel %vm1442_vm4, %v3154_v19, 0.0  ;;  %v3168_v19 = vrot.slane %v3167_v33, 1 }
 0x487   : > { %v3129_v44 = vadd.f32 %v3128_v47, %v3127_v17  ;;  %v3171_v50 = vrot.slane %v3170_v5, 4  ;;  %v3126_v17 = vadd.f32 %v3125_v30, %v3124_v60  ;;  %v3322_v47 = vld [vmem:[#allocation16 + $0xa0] sm:$0xff] }
 0x488   : > { %3441 = vmatpush.msra.mxu0 %v3322_v47  ;;  %v3350_v60 = vld [vmem:[#allocation16 + $0x180] sm:$0xff]  ;;  %v3372_v47 = vld [vmem:[#allocation16 + $0x230] sm:$0xff] }
 0x489   : > { %v3130_v23 = vrot.slane %v3129_v44, 2  ;;  %v3172_v18 = vadd.f32 %v3171_v50, %v3170_v5  ;;  %v3354_v5 = vld [vmem:[#allocation16 + $0x1a0] sm:$0xff]  ;;  %v5005_v21 = vmul.f32 %v5002_v20, %v3126_v17 }
 0x48a   : > { %3461 = vmatpush.msra.mxu1 %v3354_v5  ;;  %v3418_v50 = vld [vmem:[#allocation16 + $0x3a0] sm:$0xff]  ;;  %3442 = vmatpush.msra.mxu0 %v3320_v6 }
 0x48b   : > { %v3131_v49 = vadd.f32 %v3130_v23, %v3129_v44  ;;  %v3173_v34 = vrot.slane %v3172_v18, 2  ;;  %3501 = vmatpush.msra.mxu3 %v3418_v50  ;;  %v3169_v23 = vadd.f32 %v3168_v19, %v3167_v33  ;;  %v3189_v22 = vmul.f32 %v5005_v21, %v5005_v21  ;;  %v3314_v33 = vld [vmem:[#allocation16 + $0x60] sm:$0xff] }
 0x48c   : > { %3462 = vmatpush.msra.mxu1 %v3352_v7  ;;  %3443 = vmatpush.msra.mxu0 %v3318_v0  ;;  %v3374_v17 = vld [vmem:[#allocation16 + $0x240] sm:$0xff] }
 0x48d   : > { %v3132_v55 = vrot.slane %v3131_v49, 1  ;;  %v3174_v51 = vadd.f32 %v3173_v34, %v3172_v18  ;;  %3502 = vmatpush.msra.mxu3 %v3416_v4  ;;  %v3185_v34 = vmul.f32 %v3169_v23, %v5002_v20  ;;  %v3338_v50 = vld [vmem:[#allocation16 + $0x120] sm:$0xff]  ;;  %v3304_v4 = vld [vmem:[#allocation16 + $0x10] sm:$0xff] }
 0x48e   : > { %3463 = vmatpush.msra.mxu1 %v3350_v60  ;;  %3444 = vmatpush.msra.mxu0 %v3316_v25  ;;  %v3370_v6 = vld [vmem:[#allocation16 + $0x220] sm:$0xff] }
 0x48f   : > { %v3133_v43 = vadd.f32 %v3132_v55, %v3131_v49  ;;  %v3175_v53 = vrot.slane %v3174_v51, 1  ;;  %v3380_v49 = vld [vmem:[#allocation16 + $0x270] sm:$0xff]  ;;  %v3402_v23 = vld [vmem:[#allocation16 + $0x320] sm:$0xff] }
 0x490   : > { %3464 = vmatpush.msra.mxu1 %v3348_v26  ;;  %3484 = vmatpush.msra.mxu2 %v3380_v49  ;;  %v3376_v55 = vld [vmem:[#allocation16 + $0x250] sm:$0xff] }
 0x491   : > { %v5008_v2 = vmul.f32 %v5002_v20, %v3133_v43  ;;  %v3176_v13 = vadd.f32 %v3175_v53, %v3174_v51  ;;  %3445 = vmatpush.msra.mxu0 %v3314_v33  ;;  %v3193_v51 = vsub.f32 %v3185_v34, %v3189_v22  ;;  %v3398_v34 = vld [vmem:[#allocation16 + $0x300] sm:$0xff]  ;;  %v3333_v22 = vld [vmem:[#allocation16 + $0xf8] sm:$0xff] }
 0x492   : > { %3485 = vmatpush.msra.mxu2 %v3378_v54  ;;  %v3363_v54 = vld [vmem:[#allocation16 + $0x1e8] sm:$0xff] }
 0x493   : > { %v3186_v28 = vmul.f32 %v3176_v13, %v5002_v20  ;;  %v3190_v40 = vmul.f32 %v5008_v2, %v5008_v2  ;;  %3446 = vmatpush.msra.mxu0 %v3312_v52  ;;  %v3197_v5 = vmax.f32 %v3193_v51, 0.0  ;;  %v3393_v51 = vld [vmem:[#allocation16 + $0x2d8] sm:$0xff] }
 0x494   : > { %3486 = vmatpush.msra.mxu2 %v3376_v55  ;;  %v3361_v55 = vld [vmem:[#allocation16 + $0x1d8] sm:$0xff] }
 0x495   : > { %v3194_v19 = vsub.f32 %v3186_v28, %v3190_v40  ;;  %3447 = vmatpush.msra.mxu0 %v3310_v37  ;;  %v3395_v28 = vld [vmem:[#allocation16 + $0x2e8] sm:$0xff] }
 0x496   : > { %3487 = vmatpush.msra.mxu2 %v3374_v17  ;;  %v3427_v40 = vld [vmem:[#allocation16 + $0x3e8] sm:$0xff] }
 0x497   : > { %3448 = vmatpush.msra.mxu0 %v3308_v42  ;;  %v3198_v7 = vmax.f32 %v3194_v19, 0.0  ;;  %v3391_v37 = vld [vmem:[#allocation16 + $0x2c8] sm:$0xff]  ;;  %v3325_v42 = vld [vmem:[#allocation16 + $0xb8] sm:$0xff] }
 0x498   : > { %3488 = vmatpush.msra.mxu2 %v3372_v47  ;;  %v3389_v47 = vld [vmem:[#allocation16 + $0x2b8] sm:$0xff] }
 0x499   : > { %v5031_v25 = vadd.f32 1e-05, %v3198_v7  ;;  %v3419_v7 = vld [vmem:[#allocation16 + $0x3a8] sm:$0xff] }
 0x49a   : > { %3489 = vmatpush.msra.mxu2 %v3370_v6 }
 0x49b   : > { %vm3232_vm15 = vweird.f32 %v5031_v25 }
 0x49c   : > { %3490 = vmatpush.msra.mxu2 %v3368_v16  ;;  %v3417_v16 = vld [vmem:[#allocation16 + $0x398] sm:$0xff] }
 0x4a1   : > { %v2966_v1 = vpop.f32.mrf.mxu0 }
 0x4a2   : > { %v2967_v41 = vadd.f32 %v2966_v1, %v2464_v45  ;;  %v2986_v27 = vpop.f32.mrf.mxu1  ;;  %v3414_v45 = vld [vmem:[#allocation16 + $0x380] sm:$0xff] }
 0x4a3   : > { %3503 = vmatpush.msra.mxu3 %v3414_v45  ;;  %v3346_v1 = vld [vmem:[#allocation16 + $0x160] sm:$0xff] }
 0x4a4   : > { %v2987_v38 = vadd.f32 %v2986_v27, %v2967_v41  ;;  %3465 = vmatpush.msra.mxu1 %v3346_v1  ;;  %v3184_v27 = vmul.f32 %v3162_v46, %v5002_v20  ;;  %v3334_v45 = vld [vmem:[#allocation16 + $0x100] sm:$0xff]  ;;  %v3429_v46 = vld [vmem:[#allocation16 + $0x3f8] sm:$0xff]  ;;  %v3331_v1 = vld [vmem:[#allocation16 + $0xe8] sm:$0xff] }
 0x4a5   : > { %v3006_v11 = vpop.f32.mrf.mxu2  ;;  %3504 = vmatpush.msra.mxu3 %v3412_v14  ;;  %v3397_v14 = vld [vmem:[#allocation16 + $0x2f8] sm:$0xff] }
 0x4a6   : > { %v3007_v57 = vadd.f32 %v3006_v11, %v2987_v38  ;;  %v3026_v44 = vpop.f32.mrf.mxu3  ;;  %3466 = vmatpush.msra.mxu1 %v3344_v36  ;;  %v3188_v11 = vmul.f32 %v5014_v3, %v5014_v3  ;;  %v3406_v38 = vld [vmem:[#allocation16 + $0x340] sm:$0xff]  ;;  %v3329_v36 = vld [vmem:[#allocation16 + $0xd8] sm:$0xff] }
 0x4a7   : > { %3505 = vmatpush.msra.mxu3 %v3410_v29 }
 0x4a8   : > { %v3027_v18 = vadd.f32 %v3026_v44, %v3007_v57  ;;  %3467 = vmatpush.msra.mxu1 %v3342_v56  ;;  %v3192_v43 = vsub.f32 %v3184_v27, %v3188_v11  ;;  %v3306_v44 = vld [vmem:[#allocation16 + $0x20] sm:$0xff]  ;;  %v3327_v11 = vld [vmem:[#allocation16 + $0xc8] sm:$0xff] }
 0x4a9   : > { %3506 = vmatpush.msra.mxu3 %v3408_v8  ;;  %3449 = vmatpush.msra.mxu0 %v3306_v44  ;;  %v3423_v56 = vld [vmem:[#allocation16 + $0x3c8] sm:$0xff] }
 0x4aa   : > { %3468 = vmatpush.msra.mxu1 %v3340_v61  ;;  %v3196_v13 = vmax.f32 %v3192_v43, 0.0  ;;  %v3357_v61 = vld [vmem:[#allocation16 + $0x1b8] sm:$0xff]  ;;  %v3355_v44 = vld [vmem:[#allocation16 + $0x1a8] sm:$0xff] }
 0x4ab   : > { %3507 = vmatpush.msra.mxu3 %v3406_v38  ;;  %3450 = vmatpush.msra.mxu0 %v3304_v4  ;;  %v3385_v4 = vld [vmem:[#allocation16 + $0x298] sm:$0xff] }
 0x4ac   : > { %3469 = vmatpush.msra.mxu1 %v3338_v50  ;;  %v3387_v50 = vld [vmem:[#allocation16 + $0x2a8] sm:$0xff] }
 0x4ad   : > { %3508 = vmatpush.msra.mxu3 %v3404_v62 }
 0x4ae   : > { %3470 = vmatpush.msra.mxu1 %v3336_v9 }
 0x4af   : > { %3509 = vmatpush.msra.mxu3 %v3402_v23  ;;  %v3321_v23 = vld [vmem:[#allocation16 + $0x98] sm:$0xff] }
 0x4b0   : > { %3471 = vmatpush.msra.mxu1 %v3334_v45 }
 0x4b1   : > { %3510 = vmatpush.msra.mxu3 %v3400_v10  ;;  %v3319_v10 = vld [vmem:[#allocation16 + $0x88] sm:$0xff] }
 0x4b3   : > { %3511 = vmatpush.msra.mxu3 %v3398_v34  ;;  %v3349_v34 = vld [vmem:[#allocation16 + $0x178] sm:$0xff] }
 0x4b5   : > { %3576 = vmatpush.msrb.mxu3 %v3429_v46  ;;  %v3413_v46 = vld [vmem:[#allocation16 + $0x378] sm:$0xff] }
 0x4b7   : > { %3577 = vmatpush.msrb.mxu3 %v3427_v40  ;;  %v3313_v40 = vld [vmem:[#allocation16 + $0x58] sm:$0xff] }
 0x4d1   : > { %v3046_v59 = vpop.f32.mrf.mxu0 }
 0x4d2   : > { %v3047_v15 = vadd.f32 %v3046_v59, %v3027_v18  ;;  %v5029_v59 = vadd.f32 1e-05, %v3197_v5  ;;  %v3421_v5 = vld [vmem:[#allocation16 + $0x3b8] sm:$0xff] }
 0x4d4   : > { %v3066_v24 = vpop.f32.mrf.mxu1  ;;  %4056 = vrsqrt.f32 %v5029_v59  ;;  %vm3222_vm12 = vweird.f32 %v5029_v59 }
 0x4d5   : > { %v3067_v12 = vadd.f32 %v3066_v24, %v3047_v15  ;;  %v3086_v30 = vpop.f32.mrf.mxu2  ;;  %v3302_v15 = vld [vmem:[#allocation16] sm:$0xff]  ;;  %4058 = vrsqrt.f32 %v5031_v25 }
 0x4d6   : > { %v3366_v24 = vld [vmem:[#allocation16 + $0x200] sm:$0xff]  ;;  %3451 = vmatpush.msra.mxu0 %v3302_v15  ;;  %v3383_v15 = vld [vmem:[#allocation16 + $0x288] sm:$0xff] }
 0x4d7   : > { %v3087_v41 = vadd.f32 %v3086_v30, %v3067_v12  ;;  %v3365_v12 = vld [vmem:[#allocation16 + $0x1f8] sm:$0xff]  ;;  %3491 = vmatpush.msra.mxu2 %v3366_v24  ;;  %v3415_v24 = vld [vmem:[#allocation16 + $0x388] sm:$0xff] }
 0x4d8   : > { %3516 = vmatpush.msrb.mxu0 %v3333_v22  ;;  %3536 = vmatpush.msrb.mxu1 %v3365_v12  ;;  %v3381_v22 = vld [vmem:[#allocation16 + $0x278] sm:$0xff] }
 0x4d9   : > { %v3106_v48 = vpop.f32.mrf.mxu3  ;;  %3556 = vmatpush.msrb.mxu2 %v3397_v14 }
 0x4da   : > { %v3107_v35 = vadd.f32 %v3106_v48, %v3087_v41  ;;  %v5034_v41 = vadd.f32 1e-05, %v3196_v13  ;;  %3517 = vmatpush.msrb.mxu0 %v3331_v1  ;;  %3537 = vmatpush.msrb.mxu1 %v3363_v54  ;;  %v3425_v48 = vld [vmem:[#allocation16 + $0x3d8] sm:$0xff]  ;;  %v5037_v17 = vpop.eup %4056  ;;  %v3351_v13 = vld [vmem:[#allocation16 + $0x188] sm:$0xff] }
 0x4db   : > { %3557 = vmatpush.msrb.mxu2 %v3395_v28  ;;  %3578 = vmatpush.msrb.mxu3 %v3425_v48  ;;  %v5043_v62 = vpop.eup %4058  ;;  %v3217_v6 = vmul.f32 %v5037_v17, %v5029_v59  ;;  %v3379_v1 = vld [vmem:[#allocation16 + $0x268] sm:$0xff]  ;;  %vm3223_vm11 = vweird.f32 %v5037_v17  ;;  %v3405_v59 = vld [vmem:[#allocation16 + $0x338] sm:$0xff] }
 0x4dc   : > { %v5022_v32 = vmax.f32 %v3107_v35, 0.0  ;;  %3518 = vmatpush.msrb.mxu0 %v3329_v36  ;;  %3538 = vmatpush.msrb.mxu1 %v3361_v55  ;;  %v3359_v35 = vld [vmem:[#allocation16 + $0x1c8] sm:$0xff]  ;;  %4060 = vrsqrt.f32 %v5034_v41  ;;  %v3227_v9 = vmul.f32 %v5043_v62, %v5031_v25  ;;  %v3409_v36 = vld [vmem:[#allocation16 + $0x358] sm:$0xff]  ;;  %vm5068_vm13 = vmor %vm3222_vm12, %vm3223_vm11  ;;  %vm3233_vm14 = vweird.f32 %v5043_v62 }
 0x4dd   : > { %3558 = vmatpush.msrb.mxu2 %v3393_v51  ;;  %3579 = vmatpush.msrb.mxu3 %v3423_v56  ;;  %v3218_v45 = vmul.f32 %v5037_v17, %v3217_v6  ;;  %v3411_v54 = vld [vmem:[#allocation16 + $0x368] sm:$0xff]  ;;  %vm5083_vm1 = vmor %vm3232_vm15, %vm3233_vm14  ;;  %vm3212_vm6 = vweird.f32 %v5034_v41  ;;  %vm3768_vm14 = vcmask 123904  }
 0x4de   : > { %v3134_v53 = vsel %vm1442_vm4, %v5022_v32, 0.0  ;;  %v3155_v57 = vmul.f32 %v5022_v32, %v5022_v32  ;;  %3519 = vmatpush.msrb.mxu0 %v3327_v11  ;;  %3539 = vmatpush.msrb.mxu1 %v3359_v35  ;;  %v3228_v14 = vmul.f32 %v5043_v62, %v3227_v9  ;;  %v3311_v48 = vld [vmem:[#allocation16 + $0x48] sm:$0xff]  ;;  %v3337_v9 = vld [vmem:[#allocation16 + $0x118] sm:$0xff] }
 0x4df   : > { %v3135_v63 = vrot.slane %v3134_v53, 4  ;;  %3559 = vmatpush.msrb.mxu2 %v3391_v37  ;;  %3580 = vmatpush.msrb.mxu3 %v3421_v5  ;;  %v3219_v28 = vmul.f32 0.5, %v3218_v45  ;;  %v3407_v11 = vld [vmem:[#allocation16 + $0x348] sm:$0xff]  ;;  %v3341_v5 = vld [vmem:[#allocation16 + $0x138] sm:$0xff] }
 0x4e0   : > { %v3177_v18 = vsel %vm1442_vm4, %v3155_v57, 0.0  ;;  %3520 = vmatpush.msrb.mxu0 %v3325_v42  ;;  %3540 = vmatpush.msrb.mxu1 %v3357_v61  ;;  %v3323_v57 = vld [vmem:[#allocation16 + $0xa8] sm:$0xff]  ;;  %v3229_v51 = vmul.f32 0.5, %v3228_v14 }
 0x4e1   : > { %v3136_v0 = vadd.f32 %v3135_v63, %v3134_v53  ;;  %v3178_v60 = vrot.slane %v3177_v18, 4  ;;  %3560 = vmatpush.msrb.mxu2 %v3389_v47  ;;  %3581 = vmatpush.msrb.mxu3 %v3419_v7  ;;  %v3220_v35 = vsub.f32 1.5, %v3219_v28  ;;  %v3309_v47 = vld [vmem:[#allocation16 + $0x38] sm:$0xff]  ;;  %v3371_v6 = vld [vmem:[#allocation16 + $0x228] sm:$0xff] }
 0x4e2   : > { %3521 = vmatpush.msrb.mxu0 %v3323_v57  ;;  %3541 = vmatpush.msrb.mxu1 %v3355_v44  ;;  %v3373_v57 = vld [vmem:[#allocation16 + $0x238] sm:$0xff]  ;;  %v3307_v44 = vld [vmem:[#allocation16 + $0x28] sm:$0xff] }
 0x4e3   : > { %v3137_v26 = vrot.slane %v3136_v0, 2  ;;  %v3179_v49 = vadd.f32 %v3178_v60, %v3177_v18  ;;  %v3353_v18 = vld [vmem:[#allocation16 + $0x198] sm:$0xff]  ;;  %3561 = vmatpush.msrb.mxu2 %v3387_v50  ;;  %3582 = vmatpush.msrb.mxu3 %v3417_v16  ;;  %v3339_v50 = vld [vmem:[#allocation16 + $0x128] sm:$0xff] }
 0x4e4   : > { %3522 = vmatpush.msrb.mxu0 %v3321_v23  ;;  %3542 = vmatpush.msrb.mxu1 %v3353_v18  ;;  %v3403_v7 = vld [vmem:[#allocation16 + $0x328] sm:$0xff]  ;;  %v3369_v16 = vld [vmem:[#allocation16 + $0x218] sm:$0xff] }
 0x4e5   : > { %v3138_v30 = vadd.f32 %v3137_v26, %v3136_v0  ;;  %v3180_v33 = vrot.slane %v3179_v49, 2  ;;  %v5052_v0 = vpop.eup %4060  ;;  %3562 = vmatpush.msrb.mxu2 %v3385_v4  ;;  %3583 = vmatpush.msrb.mxu3 %v3415_v24  ;;  %v3305_v4 = vld [vmem:[#allocation16 + $0x18] sm:$0xff]  ;;  %v3367_v24 = vld [vmem:[#allocation16 + $0x208] sm:$0xff] }
 0x4e6   : > { %3523 = vmatpush.msrb.mxu0 %v3319_v10  ;;  %3543 = vmatpush.msrb.mxu1 %v3351_v13  ;;  %v3207_v12 = vmul.f32 %v5052_v0, %v5034_v41  ;;  %v3303_v10 = vld [vmem:[#allocation16 + $0x8] sm:$0xff]  ;;  %vm3213_vm2 = vweird.f32 %v5052_v0 }
 0x4e7   : > { %v3139_v29 = vrot.slane %v3138_v30, 1  ;;  %v3181_v52 = vadd.f32 %v3180_v33, %v3179_v49  ;;  %v3317_v49 = vld [vmem:[#allocation16 + $0x78] sm:$0xff]  ;;  %3563 = vmatpush.msrb.mxu2 %v3383_v15  ;;  %v3347_v33 = vld [vmem:[#allocation16 + $0x168] sm:$0xff]  ;;  %3584 = vmatpush.msrb.mxu3 %v3413_v46  ;;  %vm3214_vm9 = vmor %vm3212_vm6, %vm3213_vm2 }
 0x4e8   : > { %3524 = vmatpush.msrb.mxu0 %v3317_v49  ;;  %3544 = vmatpush.msrb.mxu1 %v3349_v34  ;;  %v3208_v55 = vmul.f32 %v5052_v0, %v3207_v12  ;;  %v3335_v13 = vld [vmem:[#allocation16 + $0x108] sm:$0xff] }
 0x4e9   : > { %v3140_v8 = vadd.f32 %v3139_v29, %v3138_v30  ;;  %v3182_v27 = vrot.slane %v3181_v52, 1  ;;  %v3315_v30 = vld [vmem:[#allocation16 + $0x68] sm:$0xff]  ;;  %3564 = vmatpush.msrb.mxu2 %v3381_v22  ;;  %v3345_v29 = vld [vmem:[#allocation16 + $0x158] sm:$0xff]  ;;  %3585 = vmatpush.msrb.mxu3 %v3411_v54 }
 0x4ea   : > { %3525 = vmatpush.msrb.mxu0 %v3315_v30  ;;  %3545 = vmatpush.msrb.mxu1 %v3347_v33  ;;  %v3209_v56 = vmul.f32 0.5, %v3208_v55  ;;  %v3399_v49 = vld [vmem:[#allocation16 + $0x308] sm:$0xff] }
 0x4eb   : > { %v5041_v19 = vmul.f32 %v5002_v20, %v3140_v8  ;;  %v3183_v38 = vadd.f32 %v3182_v27, %v3181_v52  ;;  %v3377_v52 = vld [vmem:[#allocation16 + $0x258] sm:$0xff]  ;;  %3565 = vmatpush.msrb.mxu2 %v3379_v1  ;;  %v3343_v8 = vld [vmem:[#allocation16 + $0x148] sm:$0xff]  ;;  %3586 = vmatpush.msrb.mxu3 %v3409_v36 }
 0x4ec   : > { %3526 = vmatpush.msrb.mxu0 %v3313_v40  ;;  %3546 = vmatpush.msrb.mxu1 %v3345_v29  ;;  %v3375_v27 = vld [vmem:[#allocation16 + $0x248] sm:$0xff] }
 0x4ed   : > { %v3187_v43 = vmul.f32 %v3183_v38, %v5002_v20  ;;  %v3191_v53 = vmul.f32 %v5041_v19, %v5041_v19  ;;  %3566 = vmatpush.msrb.mxu2 %v3377_v52  ;;  %v3230_v38 = vsub.f32 1.5, %v3229_v51  ;;  %3587 = vmatpush.msrb.mxu3 %v3407_v11 }
 0x4ee   : > { %3527 = vmatpush.msrb.mxu0 %v3311_v48  ;;  %3547 = vmatpush.msrb.mxu1 %v3343_v8 }
 0x4ef   : > { %v3195_v63 = vsub.f32 %v3187_v43, %v3191_v53  ;;  %3567 = vmatpush.msrb.mxu2 %v3375_v27  ;;  %v3221_v43 = vmul.f32 %v5037_v17, %v3220_v35  ;;  %3588 = vmatpush.msrb.mxu3 %v3405_v59  ;;  %v3231_v23 = vmul.f32 %v5043_v62, %v3230_v38  ;;  %v3928_v35 = vld [vmem:[%s5283_s10 + $0x2] ss:$4 sm:$0xf] }
 0x4f0   : > { %3528 = vmatpush.msrb.mxu0 %v3309_v47  ;;  %3548 = vmatpush.msrb.mxu1 %v3341_v5 }
 0x4f1   : > { %v3199_v60 = vmax.f32 %v3195_v63, 0.0  ;;  %3568 = vmatpush.msrb.mxu2 %v3373_v57  ;;  %v3210_v63 = vsub.f32 1.5, %v3209_v56  ;;  %3589 = vmatpush.msrb.mxu3 %v3403_v7  ;;  %v3225_v15 = vsel %vm5068_vm13, %v5037_v17, %v3221_v43  ;;  %v3235_v17 = vsel %vm5083_vm1, %v5043_v62, %v3231_v23 }
 0x4f2   : > { %3529 = vmatpush.msrb.mxu0 %v3307_v44  ;;  %3549 = vmatpush.msrb.mxu1 %v3339_v50  ;;  %v3250_v12 = vrot.slane %v3225_v15, 7  ;;  %v3251_v62 = vrot.slane %v3235_v17, 6 }
 0x4f3   : > { %v5055_v26 = vadd.f32 1e-05, %v3199_v60  ;;  %3569 = vmatpush.msrb.mxu2 %v3371_v6  ;;  %v3401_v60 = vld [vmem:[#allocation16 + $0x318] sm:$0xff]  ;;  %v3211_v25 = vmul.f32 %v5052_v0, %v3210_v63 }
 0x4f4   : > { %3530 = vmatpush.msrb.mxu0 %v3305_v4  ;;  %3550 = vmatpush.msrb.mxu1 %v3337_v9 }
 0x4f5   : > { %4062 = vrsqrt.f32 %v5055_v26  ;;  %3570 = vmatpush.msrb.mxu2 %v3369_v16  ;;  %3590 = vmatpush.msrb.mxu3 %v3401_v60  ;;  %vm3242_vm3 = vweird.f32 %v5055_v26  ;;  %v3215_v30 = vsel %vm3214_vm9, %v5052_v0, %v3211_v25 }
 0x4f6   : > { %3531 = vmatpush.msrb.mxu0 %v3303_v10  ;;  %3551 = vmatpush.msrb.mxu1 %v3335_v13  ;;  %v3253_v33 = vsel %vm1438_vm7, %v3215_v30, %v3250_v12  ;;  %v3707_v12 = vld [vmem:[%s5286_s13 + $0x78] sm:$0xff]  ;;  %v3706_v30 = vld [vmem:[%s5286_s13 + $0x70] sm:$0xff] }
 0x4f7   : > { %3571 = vmatpush.msrb.mxu2 %v3367_v24  ;;  %3591 = vmatpush.msrb.mxu3 %v3399_v49 }
 0x4fb   : > { %v5063_v37 = vpop.eup %4062 }
 0x4fc   : > { %v3237_v42 = vmul.f32 %v5063_v37, %v5055_v26  ;;  %vm3243_vm0 = vweird.f32 %v5063_v37  ;;  %v3927_v26 = vld [vmem:[%s5283_s10 + $0x1] ss:$4 sm:$0xf] }
 0x4fd   : > { %vm3244_vm5 = vmor %vm3242_vm3, %vm3243_vm0 }
 0x4fe   : > { %v3238_v53 = vmul.f32 %v5063_v37, %v3237_v42 }
 0x500   : > { %v3239_v18 = vmul.f32 0.5, %v3238_v53 }
 0x502   : > { %v3240_v45 = vsub.f32 1.5, %v3239_v18 }
 0x504   : > { %v3241_v22 = vmul.f32 %v5063_v37, %v3240_v45 }
 0x506   : > { %v3245_v14 = vsel %vm3244_vm5, %v5063_v37, %v3241_v22 }
 0x507   : > { %v3252_v46 = vrot.slane %v3245_v14, 5  ;;  %v3723_v14 = vld [vmem:[%s5286_s13 + $0xf8] sm:$0xff] }
 0x509   : > { %v3254_v1 = vsel %vm1440_vm8, %v3251_v62, %v3252_v46 }
 0x50a   : > { %v3255_v54 = vsel %vm1442_vm4, %v3253_v33, %v3254_v1  ;;  %v3722_v33 = vld [vmem:[%s5286_s13 + $0xf0] sm:$0xff] }
 0x50b   : > { %v3257_v41 = vmul.f32 %v3927_v26, %v3255_v54 }
 0x50d   : > { %v3261_v28 = vperm.slane %v3257_v41, 2  ;;  %v3262_v40 = vperm.slane %v3257_v41, 3  ;;  %v3260_v29 = vperm.slane %v3257_v41, 1  ;;  %v3259_v52 = vperm.slane %v3257_v41, 0 }
 0x50f   : > { %v3275_v36 = vmul.f32 %v3261_v28, %v5008_v2  ;;  %v3276_v55 = vmul.f32 %v3262_v40, %v5041_v19  ;;  %v3274_v51 = vmul.f32 %v3260_v29, %v5005_v21  ;;  %v3273_v0 = vmul.f32 %v3259_v52, %v5014_v3 }
 0x510   : > { %v3270_v19 = vmul.f32 %v3262_v40, %v5022_v32  ;;  %v3267_v21 = vmul.f32 %v3259_v52, %v4979_v39  ;;  %v3268_v38 = vmul.f32 %v3260_v29, %v4971_v58  ;;  %v3269_v3 = vmul.f32 %v3261_v28, %v4973_v31  ;;  %v3430_v58 = vld [vmem:[%s5285_s12] ss:$4 sm:$0x3]  ;;  %v3705_v28 = vld [vmem:[%s5286_s13 + $0x68] sm:$0xff] }
 0x511   : > { %v3282_v48 = vrot.slane %v3275_v36, 6  ;;  %v3283_v8 = vrot.slane %v3276_v55, 5  ;;  %v3281_v27 = vrot.slane %v3274_v51, 7  ;;  %v3432_v31 = vperm.slane %v3430_v58, 0  ;;  %v3721_v40 = vld [vmem:[%s5286_s13 + $0xe8] sm:$0xff] }
 0x512   : > { %v3433_v6 = vperm.slane %v3430_v58, 1 }
 0x513   : > { %v3285_v11 = vsel %vm1440_vm8, %v3282_v48, %v3283_v8  ;;  %v3284_v37 = vsel %vm1438_vm7, %v3273_v0, %v3281_v27  ;;  %v3704_v48 = vld [vmem:[%s5286_s13 + $0x60] sm:$0xff] }
 0x514   : > { %v3286_v56 = vsel %vm1442_vm4, %v3284_v37, %v3285_v11  ;;  %v3720_v8 = vld [vmem:[%s5286_s13 + $0xe0] sm:$0xff] }
 0x515   : > { %v3288_v2 = vsub.f32 %v3928_v35, %v3286_v56  ;;  %v3703_v56 = vld [vmem:[%s5286_s13 + $0x58] sm:$0xff] }
 0x517   : > { %v3290_v42 = vperm.slane %v3288_v2, 0  ;;  %v3291_v61 = vperm.slane %v3288_v2, 1  ;;  %v3292_v47 = vperm.slane %v3288_v2, 2  ;;  %v3293_v5 = vperm.slane %v3288_v2, 3  ;;  %v3719_v2 = vld [vmem:[%s5286_s13 + $0xd8] sm:$0xff] }
 0x519   : > { %v3298_v43 = vadd.f32 %v3290_v42, %v3267_v21  ;;  %v3299_v53 = vadd.f32 %v3291_v61, %v3268_v38  ;;  %v3300_v57 = vadd.f32 %v3292_v47, %v3269_v3  ;;  %v3301_v59 = vadd.f32 %v3293_v5, %v3270_v19  ;;  %v3702_v42 = vld [vmem:[%s5286_s13 + $0x50] sm:$0xff] }
 0x51a   : > { %v3718_v61 = vld [vmem:[%s5286_s13 + $0xd0] sm:$0xff] }
 0x51b   : > { %3452 = vmatmul.f32.vlgmr.msra.gmra.mxu0 %v3298_v43  ;;  %3472 = vmatmul.f32.vlgmr.msra.gmra.mxu1 %v3299_v53 }
 0x51c   : > { %3492 = vmatmul.f32.vlgmr.msra.gmra.mxu2 %v3300_v57  ;;  %3512 = vmatmul.f32.vlgmr.msra.gmra.mxu3 %v3301_v59 }
 0x51d   : > { %3728 = vmatpush.msra.mxu0 %v3707_v12  ;;  %3748 = vmatpush.msra.mxu1 %v3723_v14  ;;  %v3694_v12 = vld [vmem:[%s5286_s13 + $0x10] sm:$0xff] }
 0x51e   : > { %v3710_v14 = vld [vmem:[%s5286_s13 + $0x90] sm:$0xff] }
 0x51f   : > { %3729 = vmatpush.msra.mxu0 %v3706_v30  ;;  %3749 = vmatpush.msra.mxu1 %v3722_v33  ;;  %v3709_v30 = vld [vmem:[%s5286_s13 + $0x88] sm:$0xff] }
 0x521   : > { %3730 = vmatpush.msra.mxu0 %v3705_v28  ;;  %3750 = vmatpush.msra.mxu1 %v3721_v40 }
 0x523   : > { %3532 = vmatmul.f32.vlgmr.msrb.gmra.mxu0 %v3298_v43  ;;  %3552 = vmatmul.f32.vlgmr.msrb.gmra.mxu1 %v3299_v53 }
 0x524   : > { %3572 = vmatmul.f32.vlgmr.msrb.gmra.mxu2 %v3300_v57  ;;  %3592 = vmatmul.f32.vlgmr.msrb.gmra.mxu3 %v3301_v59  ;;  %v3701_v57 = vld [vmem:[%s5286_s13 + $0x48] sm:$0xff] }
 0x525   : > { %3731 = vmatpush.msra.mxu0 %v3704_v48  ;;  %3751 = vmatpush.msra.mxu1 %v3720_v8  ;;  %v3717_v59 = vld [vmem:[%s5286_s13 + $0xc8] sm:$0xff] }
 0x527   : > { %3732 = vmatpush.msra.mxu0 %v3703_v56  ;;  %3752 = vmatpush.msra.mxu1 %v3719_v2 }
 0x529   : > { %3733 = vmatpush.msra.mxu0 %v3702_v42  ;;  %3753 = vmatpush.msra.mxu1 %v3718_v61  ;;  %v3930_v61 = vld [vmem:[%s5285_s12 + $0x2] ss:$4 sm:$0x3] }
 0x52b   : > { %3734 = vmatpush.msra.mxu0 %v3701_v57  ;;  %3754 = vmatpush.msra.mxu1 %v3717_v59 }
 0x598   : > { %v3453_v39 = vpop.f32.mrf.mxu0  ;;  %v3473_v44 = vpop.f32.mrf.mxu1 }
 0x599   : > { %v3454_v32 = vadd.f32 %v3453_v39, %v3432_v31 }
 0x59b   : > { %v3474_v50 = vadd.f32 %v3473_v44, %v3454_v32  ;;  %v3700_v32 = vld [vmem:[%s5286_s13 + $0x40] sm:$0xff] }
 0x59c   : > { %v3716_v44 = vld [vmem:[%s5286_s13 + $0xc0] sm:$0xff]  ;;  %3735 = vmatpush.msra.mxu0 %v3700_v32 }
 0x59d   : > { %3755 = vmatpush.msra.mxu1 %v3716_v44  ;;  %v4051_v32 = vld [vmem:[%s5287_s14] ss:$0 sm:$0xff] }
 0x59f   : > { %v3493_v7 = vpop.f32.mrf.mxu2  ;;  %v3513_v63 = vpop.f32.mrf.mxu3 }
 0x5a0   : > { %v3494_v23 = vadd.f32 %v3493_v7, %v3474_v50  ;;  %v3533_v18 = vpop.f32.mrf.mxu0  ;;  %v3553_v60 = vpop.f32.mrf.mxu1 }
 0x5a1   : > { %v3534_v9 = vadd.f32 %v3533_v18, %v3433_v6 }
 0x5a2   : > { %v3514_v4 = vadd.f32 %v3513_v63, %v3494_v23  ;;  %v3699_v63 = vld [vmem:[%s5286_s13 + $0x38] sm:$0xff] }
 0x5a3   : > { %v3554_v15 = vadd.f32 %v3553_v60, %v3534_v9  ;;  %v3715_v23 = vld [vmem:[%s5286_s13 + $0xb8] sm:$0xff]  ;;  %3736 = vmatpush.msra.mxu0 %v3699_v63  ;;  %v3698_v60 = vld [vmem:[%s5286_s13 + $0x30] sm:$0xff] }
 0x5a4   : > { %v5124_v16 = vmax.f32 %v3514_v4, 0.0  ;;  %3756 = vmatpush.msra.mxu1 %v3715_v23 }
 0x5a5   : > { %3737 = vmatpush.msra.mxu0 %v3698_v60 }
 0x5a6   : > { %v3598_v10 = vsel %vm1442_vm4, %v5124_v16, 0.0  ;;  %v3614_v13 = vmul.f32 %v5124_v16, %v5124_v16 }
 0x5a7   : > { %v3599_v45 = vrot.slane %v3598_v10, 4  ;;  %v3573_v24 = vpop.f32.mrf.mxu2  ;;  %v3593_v22 = vpop.f32.mrf.mxu3 }
 0x5a8   : > { %v3616_v49 = vsel %vm1442_vm4, %v3614_v13, 0.0  ;;  %v3574_v34 = vadd.f32 %v3573_v24, %v3554_v15  ;;  %v3713_v24 = vld [vmem:[%s5286_s13 + $0xa8] sm:$0xff] }
 0x5a9   : > { %v3600_v25 = vadd.f32 %v3599_v45, %v3598_v10  ;;  %v3617_v17 = vrot.slane %v3616_v49, 4  ;;  %v3714_v10 = vld [vmem:[%s5286_s13 + $0xb0] sm:$0xff]  ;;  %v3697_v45 = vld [vmem:[%s5286_s13 + $0x28] sm:$0xff] }
 0x5aa   : > { %v3594_v62 = vadd.f32 %v3593_v22, %v3574_v34  ;;  %3757 = vmatpush.msra.mxu1 %v3714_v10  ;;  %3738 = vmatpush.msra.mxu0 %v3697_v45  ;;  %v3696_v34 = vld [vmem:[%s5286_s13 + $0x20] sm:$0xff] }
 0x5ab   : > { %v3601_v46 = vrot.slane %v3600_v25, 2  ;;  %v3618_v26 = vadd.f32 %v3617_v17, %v3616_v49  ;;  %v3711_v17 = vld [vmem:[%s5286_s13 + $0x98] sm:$0xff] }
 0x5ac   : > { %v5143_v1 = vmax.f32 %v3594_v62, 0.0  ;;  %3758 = vmatpush.msra.mxu1 %v3713_v24  ;;  %3739 = vmatpush.msra.mxu0 %v3696_v34 }
 0x5ad   : > { %v3602_v54 = vadd.f32 %v3601_v46, %v3600_v25  ;;  %v3619_v41 = vrot.slane %v3618_v26, 2  ;;  %v3695_v25 = vld [vmem:[%s5286_s13 + $0x18] sm:$0xff] }
 0x5ae   : > { %v3605_v29 = vsel %vm1442_vm4, %v5143_v1, 0.0  ;;  %v3615_v52 = vmul.f32 %v5143_v1, %v5143_v1  ;;  %3740 = vmatpush.msra.mxu0 %v3695_v25 }
 0x5af   : > { %v3603_v36 = vrot.slane %v3602_v54, 1  ;;  %v3620_v55 = vadd.f32 %v3619_v41, %v3618_v26  ;;  %v3606_v51 = vrot.slane %v3605_v29, 4  ;;  %v3693_v26 = vld [vmem:[%s5286_s13 + $0x8] sm:$0xff]  ;;  %v3708_v41 = vld [vmem:[%s5286_s13 + $0x80] sm:$0xff] }
 0x5b0   : > { %v3623_v0 = vsel %vm1442_vm4, %v3615_v52, 0.0  ;;  %3741 = vmatpush.msra.mxu0 %v3694_v12 }
 0x5b1   : > { %v3604_v27 = vadd.f32 %v3603_v36, %v3602_v54  ;;  %v3621_v11 = vrot.slane %v3620_v55, 1  ;;  %v3607_v35 = vadd.f32 %v3606_v51, %v3605_v29  ;;  %v3624_v37 = vrot.slane %v3623_v0, 4  ;;  %v3692_v54 = vld [vmem:[%s5286_s13] sm:$0xff] }
 0x5b2   : > { %3742 = vmatpush.msra.mxu0 %v3693_v26 }
 0x5b3   : > { %v5169_v19 = vmul.f32 %v3604_v27, %v5002_v20  ;;  %v3622_v21 = vadd.f32 %v3621_v11, %v3620_v55  ;;  %v3608_v38 = vrot.slane %v3607_v35, 2  ;;  %v3625_v3 = vadd.f32 %v3624_v37, %v3623_v0  ;;  %v3929_v11 = vld [vmem:[%s5285_s12 + $0x1] ss:$4 sm:$0x3] }
 0x5b4   : > { %3743 = vmatpush.msra.mxu0 %v3692_v54 }
 0x5b5   : > { %v3630_v47 = vmul.f32 %v3622_v21, %v5002_v20  ;;  %v3632_v5 = vmul.f32 %v5169_v19, %v5169_v19  ;;  %v3609_v43 = vadd.f32 %v3608_v38, %v3607_v35  ;;  %v3626_v53 = vrot.slane %v3625_v3, 2 }
 0x5b7   : > { %v3634_v58 = vsub.f32 %v3630_v47, %v3632_v5  ;;  %v3610_v31 = vrot.slane %v3609_v43, 1  ;;  %v3627_v39 = vadd.f32 %v3626_v53, %v3625_v3 }
 0x5b9   : > { %v3636_v50 = vmax.f32 %v3634_v58, 0.0  ;;  %v3611_v6 = vadd.f32 %v3610_v31, %v3609_v43  ;;  %v3628_v7 = vrot.slane %v3627_v39, 1 }
 0x5bb   : > { %v3640_v18 = vadd.f32 1e-05, %v3636_v50  ;;  %v5199_v4 = vmul.f32 %v3611_v6, %v5002_v20  ;;  %v3629_v9 = vadd.f32 %v3628_v7, %v3627_v39 }
 0x5bd   : > { %4064 = vrsqrt.f32 %v3640_v18  ;;  %v3631_v13 = vmul.f32 %v3629_v9, %v5002_v20  ;;  %v3633_v15 = vmul.f32 %v5199_v4, %v5199_v4  ;;  %v3712_v20 = vld [vmem:[%s5286_s13 + $0xa0] sm:$0xff]  ;;  %vm3648_vm12 = vweird.f32 %v3640_v18 }
 0x5be   : > { %3759 = vmatpush.msra.mxu1 %v3712_v20 }
 0x5bf   : > { %v3635_v49 = vsub.f32 %v3631_v13, %v3633_v15 }
 0x5c0   : > { %3760 = vmatpush.msra.mxu1 %v3711_v17 }
 0x5c1   : > { %v3637_v22 = vmax.f32 %v3635_v49, 0.0 }
 0x5c2   : > { %3761 = vmatpush.msra.mxu1 %v3710_v14 }
 0x5c3   : > { %v4065_v62 = vpop.eup %4064  ;;  %v3641_v46 = vadd.f32 1e-05, %v3637_v22 }
 0x5c4   : > { %v3643_v33 = vmul.f32 %v4065_v62, %v3640_v18  ;;  %3762 = vmatpush.msra.mxu1 %v3709_v30  ;;  %vm3649_vm8 = vweird.f32 %v4065_v62 }
 0x5c5   : > { %4066 = vrsqrt.f32 %v3641_v46  ;;  %vm3658_vm10 = vweird.f32 %v3641_v46  ;;  %vm3650_vm13 = vmor %vm3648_vm12, %vm3649_vm8 }
 0x5c6   : > { %v3644_v28 = vmul.f32 %v4065_v62, %v3643_v33  ;;  %3763 = vmatpush.msra.mxu1 %v3708_v41 }
 0x5c8   : > { %v3645_v29 = vmul.f32 0.5, %v3644_v28 }
 0x5ca   : > { %v3646_v55 = vsub.f32 1.5, %v3645_v29 }
 0x5cb   : > { %v4067_v40 = vpop.eup %4066 }
 0x5cc   : > { %v3653_v52 = vmul.f32 %v4067_v40, %v3641_v46  ;;  %vm3659_vm4 = vweird.f32 %v4067_v40  ;;  %v3647_v8 = vmul.f32 %v4065_v62, %v3646_v55 }
 0x5cd   : > { %vm3660_vm11 = vmor %vm3658_vm10, %vm3659_vm4 }
 0x5ce   : > { %v3654_v36 = vmul.f32 %v4067_v40, %v3653_v52  ;;  %v3651_v37 = vsel %vm3650_vm13, %v4065_v62, %v3647_v8 }
 0x5d0   : > { %v3655_v51 = vmul.f32 0.5, %v3654_v36 }
 0x5d2   : > { %v3656_v48 = vsub.f32 1.5, %v3655_v51 }
 0x5d4   : > { %v3657_v0 = vmul.f32 %v4067_v40, %v3656_v48 }
 0x5d6   : > { %v3661_v27 = vsel %vm3660_vm11, %v4067_v40, %v3657_v0 }
 0x5d7   : > { %v3664_v35 = vrot.slane %v3661_v27, 7 }
 0x5d9   : > { %v3665_v56 = vsel %vm1438_vm7, %v3651_v37, %v3664_v35 }
 0x5da   : > { %v3667_v2 = vmul.f32 %v3929_v11, %v3665_v56 }
 0x5dc   : > { %v3670_v21 = vperm.slane %v3667_v2, 1  ;;  %v3669_v38 = vperm.slane %v3667_v2, 0 }
 0x5de   : > { %v3678_v3 = vmul.f32 %v3670_v21, %v5199_v4  ;;  %v3677_v47 = vmul.f32 %v3669_v38, %v5169_v19  ;;  %v3674_v53 = vmul.f32 %v3670_v21, %v5143_v1  ;;  %v3673_v57 = vmul.f32 %v3669_v38, %v5124_v16 }
 0x5e0   : > { %v3681_v42 = vrot.slane %v3678_v3, 7 }
 0x5e2   : > { %v3682_v5 = vsel %vm1438_vm7, %v3677_v47, %v3681_v42 }
 0x5e3   : > { %v3684_v43 = vsub.f32 %v3930_v61, %v3682_v5 }
 0x5e5   : > { %v3686_v59 = vperm.slane %v3684_v43, 0  ;;  %v3687_v58 = vperm.slane %v3684_v43, 1 }
 0x5e7   : > { %v3690_v31 = vadd.f32 %v3686_v59, %v3673_v57  ;;  %v3691_v39 = vadd.f32 %v3687_v58, %v3674_v53 }
 0x5e9   : > { %3744 = vmatmul.f32.vlgmr.msra.gmra.mxu0 %v3690_v31  ;;  %3764 = vmatmul.f32.vlgmr.msra.gmra.mxu1 %v3691_v39 }
 0x666   : > { %v3745_v44 = vpop.f32.mrf.mxu0  ;;  %v3765_v19 = vpop.f32.mrf.mxu1 }
 0x667   : > { %v3746_v50 = vadd.f32 %v4051_v32, %v3745_v44 }
 0x669   : > { %v3766_v6 = vadd.f32 %v3765_v19, %v3746_v50 }
 0x66b   : > { %3769 = vst.msk [vmem:[%s5331_s20] sm:$0x3] %vm3768_vm14, %v3766_v6 }
 0x66c PF: > { %s5332_s25 = sld [smem:[#allocation21_spill]]  ;;  %s5333_s18 = smov %s4312_s19 }
 0x66d   : > { %s5334_s19 = smov %s5336_s6 }
 0x672   : > { %s29_s20 = sadd.s32 1, %s5332_s25  }
 0x673   : > { %p26_p10 = scmp.ge.s32.totalorder %s29_s20, 4  }
 0x675   :  { %28 = sbr.rel (!%p26_p10) target bundleno = 12 (0xc), region = 155 }
 0x67a   :  { %3781 = vsyncpa [#allocation7], 1 }
 0x67b   :  { %3783 = vsyncpa [#allocation7 + $0x1], 1 }
 0x67c   :  { %3784 = vsyncpa [#allocation9], 1 }
 0x67d   :  { %3785 = vsyncpa [#allocation12], 1 }
 0x67e   :  { %3786 = vsyncpa [#allocation15], 1 }

</bundles_post_ra>
